<compile_context>
chip_gen: v7x
topology: tpu7x:2x2x1
jax: 0.10.0
libtpu: 0.0.40
codegen_flags: <defaults>
</compile_context>

<pallas_src>
import math

import jax
import jax.numpy as jnp
from jax.experimental import pallas as pl
from jax.experimental.pallas import tpu as pltpu


def _gelu_exact(x):
    """Exact (erf-based) GELU via A&S 7.1.26 polynomial; divide on the EUP."""
    a1, a2, a3, a4, a5 = (0.254829592, -0.284496736, 1.421413741,
                          -1.453152027, 1.061405429)
    p = 0.3275911
    z = x * (1.0 / math.sqrt(2.0))
    s = jnp.where(z >= 0.0, 1.0, -1.0)
    az = jnp.abs(z)
    t = pl.reciprocal(1.0 + p * az, approx=True)
    poly = ((((a5 * t + a4) * t + a3) * t + a2) * t + a1) * t
    erf = s * (1.0 - poly * jnp.exp(-az * az))
    return 0.5 * x * (1.0 + erf)


def _vab_kernel(x_ref, w1_ref, b1_ref, pw_ref, pwb_ref,
                dw_ref, dwb_ref, dwd_ref, dwdb_ref,
                w2_ref, b2_ref, lnp_ref, lnw_ref, lnb_ref,
                o_ref, xh_ref, ah_ref, dh_ref):
    Nb, H, Lm = x_ref.shape            # Lm = W * d_model (lane-dense)
    La = ah_ref.shape[-1]              # La = W * d_atten
    M = Nb * H

    x = x_ref[...]                                     # (Nb, H, Lm) f32

    # ---- proj_1: 3x3 conv (pad=1) = 3 banded MXU matmuls over H-shifted
    #      row bands; the kx shifts / zero pad are inside the banded weights.
    zin = jnp.zeros((Nb, 1, Lm), jnp.bfloat16)
    xh_ref[:, 0:1, :] = zin
    xh_ref[:, H + 1:H + 2, :] = zin
    xh_ref[:, 1:1 + H, :] = x.astype(jnp.bfloat16)
    h = jnp.zeros((M, La), jnp.float32)
    for ky in range(3):
        band = xh_ref[:, ky:ky + H, :].reshape(M, Lm)
        h = h + jnp.dot(band, w1_ref[ky], preferred_element_type=jnp.float32)
    h = h + b1_ref[...]

    # ---- GELU (exact erf), lane-dense ----
    u = _gelu_exact(h)                                 # (M, La) f32

    # ---- attention pointwise 1x1: block-diagonal MXU matmul ----
    attn = jnp.dot(u.astype(jnp.bfloat16), pw_ref[...],
                   preferred_element_type=jnp.float32) + pwb_ref[...]

    # ---- depthwise 5x5 (pad=2, groups=Ca): 5 banded-diagonal f32 matmuls ----
    za = jnp.zeros((Nb, 2, La), jnp.float32)
    ah_ref[:, 0:2, :] = za
    ah_ref[:, H + 2:H + 4, :] = za
    ah_ref[:, 2:2 + H, :] = attn.reshape(Nb, H, La)
    d = jnp.zeros((M, La), jnp.float32)
    for ky in range(5):
        band = ah_ref[:, ky:ky + H, :].reshape(M, La)
        d = d + jnp.dot(band, dw_ref[ky], preferred_element_type=jnp.float32)
    d = d + dwb_ref[...]

    # ---- depthwise 5x5, dilation=3 (pad=6): same trick, 6-row H halo ----
    zd = jnp.zeros((Nb, 6, La), jnp.float32)
    dh_ref[:, 0:6, :] = zd
    dh_ref[:, H + 6:H + 12, :] = zd
    dh_ref[:, 6:6 + H, :] = d.reshape(Nb, H, La)
    d2 = jnp.zeros((M, La), jnp.float32)
    for ky in range(5):
        band = dh_ref[:, 3 * ky:3 * ky + H, :].reshape(M, La)
        d2 = d2 + jnp.dot(band, dwd_ref[ky], preferred_element_type=jnp.float32)
    d2 = d2 + dwdb_ref[...]

    # ---- gate (u * attention branch), proj_2 (1x1), residual ----
    att = u * d2
    y = jnp.dot(att.astype(jnp.bfloat16), w2_ref[...],
                preferred_element_type=jnp.float32) + b2_ref[...]
    y = y + x.reshape(M, Lm)

    # ---- pixel_norm: per-pixel channel LayerNorm (eps=1e-5).
    #      Moments via block-diagonal averaging matmul on the idle MXU,
    #      two-pass variance (no mean*mean cancellation), clamped >= 0. ----
    p_ln = lnp_ref[...]
    mean = jnp.dot(y, p_ln, preferred_element_type=jnp.float32)
    c = y - mean
    var = jnp.maximum(
        jnp.dot(c * c, p_ln, preferred_element_type=jnp.float32), 0.0)
    yn = c * jax.lax.rsqrt(var + 1e-5)
    yn = yn * lnw_ref[...] + lnb_ref[...]

    # lane-dense store (last dim W*Cm >= 128 -> unmasked vst)
    o_ref[...] = yn.reshape(Nb, H, Lm)


def _band_matrix(w_row, width, dilation=1):
    """(K, Cin, Cout) taps along W -> (width*Cin, width*Cout) banded block
    matrix implementing a 'same' zero-padded 1-D conv along W fused with the
    Cin->Cout mixing, in the lane-dense (w*C + c) layout."""
    K, cin, cout = w_row.shape
    half = (K - 1) // 2
    wi = jnp.arange(width)[:, None]
    wo = jnp.arange(width)[None, :]
    delta = wi - wo
    k = delta // dilation + half
    valid = (delta % dilation == 0) & (k >= 0) & (k < K)
    blocks = jnp.where(valid[:, :, None, None],
                       w_row[jnp.clip(k, 0, K - 1)], 0.0)   # (W, W, Cin, Cout)
    return jnp.transpose(blocks, (0, 2, 1, 3)).reshape(width * cin, width * cout)


def _diag_taps(w):
    """(K, C) per-channel taps -> (K, C, C) diagonal mixing blocks."""
    return jax.vmap(jnp.diag)(w)


def _vmem_limit_bytes():
    # ~3/4 of the local generation's physical VMEM (64 MiB v7x, 128 MiB
    # v5e/v6e), capped to leave Mosaic internal-scratch headroom.
    try:
        cap = getattr(pltpu.get_tpu_info(), "vmem_capacity_bytes", None)
        if cap:
            return int(min(cap * 3 // 4, 112 * 1024 * 1024))
    except Exception:
        pass
    return 48 * 1024 * 1024


def vab_forward(x_nchw, p, *, batch_block=None):
    """x_nchw: (N, d_model, H, W) float32 -> (N, d_model, H, W) float32."""
    N, Cm, H, W = x_nchw.shape
    Ca = p['w1'].shape[-1]
    # lane-dense input: (N, H, W*Cm) so input / output BlockSpecs match.
    x = jnp.transpose(x_nchw, (0, 2, 3, 1)).astype(jnp.float32)
    x = x.reshape(N, H, W * Cm)

    # ---- precompute lane-dense banded weights / tiled biases (XLA side) ----
    w1_3x3 = p['w1'].reshape(3, 3, Cm, Ca)
    w1_band = jnp.stack([_band_matrix(w1_3x3[ky], W) for ky in range(3)]
                        ).astype(jnp.bfloat16)                     # (3, W*Cm, W*Ca)
    pw_band = _band_matrix(p['pw'][None], W).astype(jnp.bfloat16)  # (W*Ca, W*Ca)
    dw_band = jnp.stack(
        [_band_matrix(_diag_taps(p['dw'][5 * ky:5 * ky + 5]), W)
         for ky in range(5)])                                      # (5, W*Ca, W*Ca) f32
    dwd_band = jnp.stack(
        [_band_matrix(_diag_taps(p['dwd'][5 * ky:5 * ky + 5]), W, dilation=3)
         for ky in range(5)])
    w2_band = _band_matrix(p['w2'][None], W).astype(jnp.bfloat16)  # (W*Ca, W*Cm)
    ln_avg = _band_matrix((jnp.ones((Cm, Cm), jnp.float32) / Cm)[None], W)

    b1_d = jnp.tile(p['b1'], (1, W))
    pwb_d = jnp.tile(p['pwb'], (1, W))
    dwb_d = jnp.tile(p['dwb'], (1, W))
    dwdb_d = jnp.tile(p['dwdb'], (1, W))
    b2_d = jnp.tile(p['b2'], (1, W))
    lnw_d = jnp.tile(p['lnw'], (1, W))
    lnb_d = jnp.tile(p['lnb'], (1, W))

    weight_args = [w1_band, b1_d, pw_band, pwb_d,
                   dw_band, dwb_d, dwd_band, dwdb_d,
                   w2_band, b2_d, ln_avg, lnw_d, lnb_d]

    # Keep >= 2 grid steps (v7x has 2 TensorCores; >= 2 steps also lets the
    # BlockSpec pipeline overlap the x DMA / writeback with compute), and only
    # fold batches while >= 4 steps remain and the working set stays modest.
    if batch_block is None:
        batch_block = 1
        while (N % (2 * batch_block) == 0 and N // (2 * batch_block) >= 4
               and 2 * batch_block * H * W * max(Cm, Ca) <= 512 * 1024):
            batch_block *= 2
    Nb = batch_block
    assert N % Nb == 0, (N, Nb)
    # TODO(synk): for large images / N < 4, strip-tile H (6-row halo for the
    # dilated 5x5) to recover grid parallelism and bound VMEM on v7x.

    def full_spec(a):
        return pl.BlockSpec(a.shape, lambda b, nd=a.ndim: (0,) * nd)

    in_specs = ([pl.BlockSpec((Nb, H, W * Cm), lambda b: (b, 0, 0))] +
                [full_spec(a) for a in weight_args])

    out = pl.pallas_call(
        _vab_kernel,
        out_shape=jax.ShapeDtypeStruct((N, H, W * Cm), jnp.float32),
        grid=(N // Nb,),
        in_specs=in_specs,
        out_specs=pl.BlockSpec((Nb, H, W * Cm), lambda b: (b, 0, 0)),
        scratch_shapes=[
            pltpu.VMEM((Nb, H + 2, W * Cm), jnp.bfloat16),   # H halo, 3x3
            pltpu.VMEM((Nb, H + 4, W * Ca), jnp.float32),    # H halo, dw 5x5
            pltpu.VMEM((Nb, H + 12, W * Ca), jnp.float32),   # H halo, dilated
        ],
        compiler_params=pltpu.CompilerParams(
            dimension_semantics=("parallel",),
            vmem_limit_bytes=_vmem_limit_bytes()),
    )(x, *weight_args)

    out = out.reshape(N, H, W, Cm)
    return jnp.transpose(out, (0, 3, 1, 2))                       # -> NCHW


def init_params(key, d_model, d_atten):
    """Deterministic synthetic parameters (kaiming-style fan-in scaling)."""
    ks = jax.random.split(key, 10)

    def kn(k, shape, fan_in):
        return math.sqrt(2.0 / fan_in) * jax.random.normal(k, shape, jnp.float32)

    def ub(k, shape, fan_in):
        b = 1.0 / math.sqrt(fan_in)
        return jax.random.uniform(k, shape, jnp.float32, -b, b)

    p = {}
    # proj_1: Conv2d(d_model, d_atten, 3, padding=1); (tap=ky*3+kx, Cin, Cout)
    p['w1'] = kn(ks[0], (9, d_model, d_atten), 9 * d_model)
    p['b1'] = ub(ks[1], (1, d_atten), 9 * d_model)
    # Attention.pointwise: Conv2d(d_atten, d_atten, 1); (Cin, Cout)
    p['pw'] = kn(ks[2], (d_atten, d_atten), d_atten)
    p['pwb'] = ub(ks[3], (1, d_atten), d_atten)
    # Attention.depthwise: Conv2d(.., 5, pad=2, groups=d_atten); (tap, C)
    p['dw'] = kn(ks[4], (25, d_atten), 25)
    p['dwb'] = ub(ks[5], (1, d_atten), 25)
    # Attention.depthwise_dilated: 5x5, pad=6, dilation=3, groups=d_atten
    p['dwd'] = kn(ks[6], (25, d_atten), 25)
    p['dwdb'] = ub(ks[7], (1, d_atten), 25)
    # proj_2: Conv2d(d_atten, d_model, 1); (Cin, Cout)
    p['w2'] = kn(ks[8], (d_atten, d_model), d_atten)
    p['b2'] = ub(ks[9], (1, d_model), d_atten)
    # pixel_norm: nn.LayerNorm(d_model) default init (default_init_weights is a
    # no-op for LayerNorm: neither Conv2d, Linear nor _BatchNorm).
    p['lnw'] = jnp.ones((1, d_model), jnp.float32)
    p['lnb'] = jnp.zeros((1, d_model), jnp.float32)
    return p


def vab_reference(x_nchw, p):
    """Pure-JAX (XLA, full f32) reference of the PyTorch forward."""
    x = jnp.transpose(x_nchw, (0, 2, 3, 1)).astype(jnp.float32)   # NHWC
    Cm = x.shape[-1]
    Ca = p['w1'].shape[-1]
    dn = ('NHWC', 'HWIO', 'NHWC')

    h = jax.lax.conv_general_dilated(
        x, p['w1'].reshape(3, 3, Cm, Ca), (1, 1), [(1, 1), (1, 1)],
        dimension_numbers=dn) + p['b1'].reshape(1, 1, 1, Ca)
    u = 0.5 * h * (1.0 + jax.lax.erf(h / jnp.sqrt(2.0)))          # exact GELU

    a = jax.lax.conv_general_dilated(
        u, p['pw'].reshape(1, 1, Ca, Ca), (1, 1), [(0, 0), (0, 0)],
        dimension_numbers=dn) + p['pwb'].reshape(1, 1, 1, Ca)
    a = jax.lax.conv_general_dilated(
        a, p['dw'].reshape(5, 5, 1, Ca), (1, 1), [(2, 2), (2, 2)],
        dimension_numbers=dn,
        feature_group_count=Ca) + p['dwb'].reshape(1, 1, 1, Ca)
    a = jax.lax.conv_general_dilated(
        a, p['dwd'].reshape(5, 5, 1, Ca), (1, 1), [(6, 6), (6, 6)],
        rhs_dilation=(3, 3), dimension_numbers=dn,
        feature_group_count=Ca) + p['dwdb'].reshape(1, 1, 1, Ca)
    a = u * a

    y = jax.lax.conv_general_dilated(
        a, p['w2'].reshape(1, 1, Ca, Cm), (1, 1), [(0, 0), (0, 0)],
        dimension_numbers=dn) + p['b2'].reshape(1, 1, 1, Cm)
    y = y + x

    mean = jnp.mean(y, axis=-1, keepdims=True)
    var = jnp.mean(jnp.square(y - mean), axis=-1, keepdims=True)
    yn = (y - mean) / jnp.sqrt(var + 1e-5)
    yn = yn * p['lnw'].reshape(1, 1, 1, Cm) + p['lnb'].reshape(1, 1, 1, Cm)
    return jnp.transpose(yn, (0, 3, 1, 2))


if __name__ == "__main__":
    key = jax.random.PRNGKey(0)
    N, d_model, d_atten, H, W = 2, 8, 16, 16, 16

    pkey, xkey = jax.random.split(key)
    params = init_params(pkey, d_model, d_atten)
    x = jax.random.normal(xkey, (N, d_model, H, W), jnp.float32)

    out = jax.block_until_ready(vab_forward(x, params))
    ref = vab_reference(x, params)

    assert out.shape == x.shape
    err_max = float(jnp.max(jnp.abs(out - ref)))
    err_mean = float(jnp.mean(jnp.abs(out - ref)))
    # proj_1 / pointwise / proj_2 use bf16 MXU operands (f32 accumulation), so
    # the tolerance vs the full-f32 reference is bf16-level, not f32-level.
    assert err_max < 1e-1 and err_mean < 1e-2, (err_max, err_mean)

    print("KERNEL_OK")
</pallas_src>

<mosaic_0001>
module attributes {stable_mosaic.version = 11 : i64} {
  func.func @_vab_kernel(%arg0: i32, %arg1: memref<1x16x128xf32, #tpu.memory_space<vmem>>, %arg2: memref<3x128x256xbf16, #tpu.memory_space<vmem>>, %arg3: memref<1x256xf32, #tpu.memory_space<vmem>>, %arg4: memref<256x256xbf16, #tpu.memory_space<vmem>>, %arg5: memref<1x256xf32, #tpu.memory_space<vmem>>, %arg6: memref<5x256x256xf32, #tpu.memory_space<vmem>>, %arg7: memref<1x256xf32, #tpu.memory_space<vmem>>, %arg8: memref<5x256x256xf32, #tpu.memory_space<vmem>>, %arg9: memref<1x256xf32, #tpu.memory_space<vmem>>, %arg10: memref<256x128xbf16, #tpu.memory_space<vmem>>, %arg11: memref<1x128xf32, #tpu.memory_space<vmem>>, %arg12: memref<128x128xf32, #tpu.memory_space<vmem>>, %arg13: memref<1x128xf32, #tpu.memory_space<vmem>>, %arg14: memref<1x128xf32, #tpu.memory_space<vmem>>, %arg15: memref<1x16x128xf32, #tpu.memory_space<vmem>>, %arg16: memref<1x18x128xbf16, #tpu.memory_space<vmem>>, %arg17: memref<1x20x256xf32, #tpu.memory_space<vmem>>, %arg18: memref<1x28x256xf32, #tpu.memory_space<vmem>>) attributes {dimension_semantics = [#tpu.dimension_semantics<parallel>], iteration_bounds = array<i64: 2>, scalar_prefetch = 0 : i64, scratch_operands = 3 : i64, tpu.core_type = #tpu.core_type<tc>, window_params = [{transform_indices = @transform_0, window_bounds = array<i64: 1, 16, 128>}, {pipeline_mode = #tpu.pipeline_mode<synchronous>, transform_indices = @transform_1, window_bounds = array<i64: 3, 128, 256>}, {pipeline_mode = #tpu.pipeline_mode<synchronous>, transform_indices = @transform_2, window_bounds = array<i64: 1, 256>}, {pipeline_mode = #tpu.pipeline_mode<synchronous>, transform_indices = @transform_3, window_bounds = array<i64: 256, 256>}, {pipeline_mode = #tpu.pipeline_mode<synchronous>, transform_indices = @transform_4, window_bounds = array<i64: 1, 256>}, {pipeline_mode = #tpu.pipeline_mode<synchronous>, transform_indices = @transform_5, window_bounds = array<i64: 5, 256, 256>}, {pipeline_mode = #tpu.pipeline_mode<synchronous>, transform_indices = @transform_6, window_bounds = array<i64: 1, 256>}, {pipeline_mode = #tpu.pipeline_mode<synchronous>, transform_indices = @transform_7, window_bounds = array<i64: 5, 256, 256>}, {pipeline_mode = #tpu.pipeline_mode<synchronous>, transform_indices = @transform_8, window_bounds = array<i64: 1, 256>}, {pipeline_mode = #tpu.pipeline_mode<synchronous>, transform_indices = @transform_9, window_bounds = array<i64: 256, 128>}, {pipeline_mode = #tpu.pipeline_mode<synchronous>, transform_indices = @transform_10, window_bounds = array<i64: 1, 128>}, {pipeline_mode = #tpu.pipeline_mode<synchronous>, transform_indices = @transform_11, window_bounds = array<i64: 128, 128>}, {pipeline_mode = #tpu.pipeline_mode<synchronous>, transform_indices = @transform_12, window_bounds = array<i64: 1, 128>}, {pipeline_mode = #tpu.pipeline_mode<synchronous>, transform_indices = @transform_13, window_bounds = array<i64: 1, 128>}, {transform_indices = @transform_14, window_bounds = array<i64: 1, 16, 128>}]} {
    %c0 = arith.constant 0 : index
    %c0_0 = arith.constant 0 : index
    %c0_1 = arith.constant 0 : index
    %0 = vector.load %arg1[%c0, %c0_0, %c0_1] : memref<1x16x128xf32, #tpu.memory_space<vmem>>, vector<1x16x128xf32>
    %cst = arith.constant 0.000000e+00 : bf16
    %1 = vector.broadcast %cst : bf16 to vector<1x1x128xbf16>
    %c0_2 = arith.constant 0 : index
    %c0_3 = arith.constant 0 : index
    %c0_4 = arith.constant 0 : index
    %2 = vector.load %arg16[%c0_2, %c0_3, %c0_4] : memref<1x18x128xbf16, #tpu.memory_space<vmem>>, vector<1x1x128xbf16>
    tpu.vector_store %arg16[%c0_2, %c0_3, %c0_4], %1 {strides = array<i32>} : memref<1x18x128xbf16, #tpu.memory_space<vmem>>, vector<1x1x128xbf16>,
    %c0_5 = arith.constant 0 : index
    %c17 = arith.constant 17 : index
    %c0_6 = arith.constant 0 : index
    %3 = vector.load %arg16[%c0_5, %c17, %c0_6] : memref<1x18x128xbf16, #tpu.memory_space<vmem>>, vector<1x1x128xbf16>
    tpu.vector_store %arg16[%c0_5, %c17, %c0_6], %1 {strides = array<i32>} : memref<1x18x128xbf16, #tpu.memory_space<vmem>>, vector<1x1x128xbf16>,
    %4 = arith.truncf %0 : vector<1x16x128xf32> to vector<1x16x128xbf16>
    %c0_7 = arith.constant 0 : index
    %c1 = arith.constant 1 : index
    %c0_8 = arith.constant 0 : index
    %5 = vector.load %arg16[%c0_7, %c1, %c0_8] : memref<1x18x128xbf16, #tpu.memory_space<vmem>>, vector<1x16x128xbf16>
    tpu.vector_store %arg16[%c0_7, %c1, %c0_8], %4 {strides = array<i32>} : memref<1x18x128xbf16, #tpu.memory_space<vmem>>, vector<1x16x128xbf16>,
    %cst_9 = arith.constant 0.000000e+00 : f32
    %6 = vector.broadcast %cst_9 : f32 to vector<16x256xf32>
    %c0_10 = arith.constant 0 : index
    %c0_11 = arith.constant 0 : index
    %c0_12 = arith.constant 0 : index
    %7 = vector.load %arg16[%c0_10, %c0_11, %c0_12] : memref<1x18x128xbf16, #tpu.memory_space<vmem>>, vector<1x16x128xbf16>
    %8 = vector.shape_cast %7 : vector<1x16x128xbf16> to vector<16x128xbf16>
    %c0_13 = arith.constant 0 : index
    %c0_14 = arith.constant 0 : index
    %c0_15 = arith.constant 0 : index
    %9 = vector.load %arg2[%c0_13, %c0_14, %c0_15] : memref<3x128x256xbf16, #tpu.memory_space<vmem>>, vector<1x128x256xbf16>
    %10 = vector.shape_cast %9 : vector<1x128x256xbf16> to vector<128x256xbf16>
    %cst_16 = arith.constant dense<0.000000e+00> : vector<16x256xf32>
    %11 = tpu.matmul %8, %10, %cst_16 {dimension_numbers = #tpu.dot_dimension_numbers<[1], [0], [0], [1], [0, 0, 1, 1], [], []>} : vector<16x128xbf16>, vector<128x256xbf16>, vector<16x256xf32> -> vector<16x256xf32>
    %12 = arith.addf %6, %11 : vector<16x256xf32>
    %c0_17 = arith.constant 0 : index
    %c1_18 = arith.constant 1 : index
    %c0_19 = arith.constant 0 : index
    %13 = vector.load %arg16[%c0_17, %c1_18, %c0_19] : memref<1x18x128xbf16, #tpu.memory_space<vmem>>, vector<1x16x128xbf16>
    %14 = vector.shape_cast %13 : vector<1x16x128xbf16> to vector<16x128xbf16>
    %c1_20 = arith.constant 1 : index
    %c0_21 = arith.constant 0 : index
    %c0_22 = arith.constant 0 : index
    %15 = vector.load %arg2[%c1_20, %c0_21, %c0_22] : memref<3x128x256xbf16, #tpu.memory_space<vmem>>, vector<1x128x256xbf16>
    %16 = vector.shape_cast %15 : vector<1x128x256xbf16> to vector<128x256xbf16>
    %cst_23 = arith.constant dense<0.000000e+00> : vector<16x256xf32>
    %17 = tpu.matmul %14, %16, %cst_23 {dimension_numbers = #tpu.dot_dimension_numbers<[1], [0], [0], [1], [0, 0, 1, 1], [], []>} : vector<16x128xbf16>, vector<128x256xbf16>, vector<16x256xf32> -> vector<16x256xf32>
    %18 = arith.addf %12, %17 : vector<16x256xf32>
    %c0_24 = arith.constant 0 : index
    %c2 = arith.constant 2 : index
    %c0_25 = arith.constant 0 : index
    %19 = vector.load %arg16[%c0_24, %c2, %c0_25] : memref<1x18x128xbf16, #tpu.memory_space<vmem>>, vector<1x16x128xbf16>
    %20 = vector.shape_cast %19 : vector<1x16x128xbf16> to vector<16x128xbf16>
    %c2_26 = arith.constant 2 : index
    %c0_27 = arith.constant 0 : index
    %c0_28 = arith.constant 0 : index
    %21 = vector.load %arg2[%c2_26, %c0_27, %c0_28] : memref<3x128x256xbf16, #tpu.memory_space<vmem>>, vector<1x128x256xbf16>
    %22 = vector.shape_cast %21 : vector<1x128x256xbf16> to vector<128x256xbf16>
    %cst_29 = arith.constant dense<0.000000e+00> : vector<16x256xf32>
    %23 = tpu.matmul %20, %22, %cst_29 {dimension_numbers = #tpu.dot_dimension_numbers<[1], [0], [0], [1], [0, 0, 1, 1], [], []>} : vector<16x128xbf16>, vector<128x256xbf16>, vector<16x256xf32> -> vector<16x256xf32>
    %24 = arith.addf %18, %23 : vector<16x256xf32>
    %c0_30 = arith.constant 0 : index
    %c0_31 = arith.constant 0 : index
    %25 = vector.load %arg3[%c0_30, %c0_31] : memref<1x256xf32, #tpu.memory_space<vmem>>, vector<1x256xf32>
    %26 = vector.broadcast %25 : vector<1x256xf32> to vector<16x256xf32>
    %27 = arith.addf %24, %26 : vector<16x256xf32>
    %cst_32 = arith.constant 0.707106769 : f32
    %28 = vector.broadcast %cst_32 : f32 to vector<16x256xf32>
    %29 = arith.mulf %27, %28 : vector<16x256xf32>
    %cst_33 = arith.constant 0.000000e+00 : f32
    %30 = vector.broadcast %cst_33 : f32 to vector<16x256xf32>
    %31 = arith.cmpf oge, %29, %30 : vector<16x256xf32>
    %cst_34 = arith.constant 1.000000e+00 : f32
    %cst_35 = arith.constant -1.000000e+00 : f32
    %32 = vector.broadcast %cst_34 : f32 to vector<16x256xf32>
    %33 = vector.broadcast %cst_35 : f32 to vector<16x256xf32>
    %34 = arith.select %31, %32, %33 : vector<16x256xi1>, vector<16x256xf32>
    %35 = math.absf %29 : vector<16x256xf32>
    %cst_36 = arith.constant 0.327591091 : f32
    %36 = vector.broadcast %cst_36 : f32 to vector<16x256xf32>
    %37 = arith.mulf %36, %35 : vector<16x256xf32>
    %cst_37 = arith.constant 1.000000e+00 : f32
    %38 = vector.broadcast %cst_37 : f32 to vector<16x256xf32>
    %39 = arith.addf %38, %37 : vector<16x256xf32>
    %40 = tpu.reciprocal %39 {approx = true} : vector<16x256xf32> -> vector<16x256xf32>
    %cst_38 = arith.constant 1.06140542 : f32
    %41 = vector.broadcast %cst_38 : f32 to vector<16x256xf32>
    %42 = arith.mulf %41, %40 : vector<16x256xf32>
    %cst_39 = arith.constant -1.45315206 : f32
    %43 = vector.broadcast %cst_39 : f32 to vector<16x256xf32>
    %44 = arith.addf %42, %43 : vector<16x256xf32>
    %45 = arith.mulf %44, %40 : vector<16x256xf32>
    %cst_40 = arith.constant 1.42141378 : f32
    %46 = vector.broadcast %cst_40 : f32 to vector<16x256xf32>
    %47 = arith.addf %45, %46 : vector<16x256xf32>
    %48 = arith.mulf %47, %40 : vector<16x256xf32>
    %cst_41 = arith.constant -0.284496725 : f32
    %49 = vector.broadcast %cst_41 : f32 to vector<16x256xf32>
    %50 = arith.addf %48, %49 : vector<16x256xf32>
    %51 = arith.mulf %50, %40 : vector<16x256xf32>
    %cst_42 = arith.constant 0.254829586 : f32
    %52 = vector.broadcast %cst_42 : f32 to vector<16x256xf32>
    %53 = arith.addf %51, %52 : vector<16x256xf32>
    %54 = arith.mulf %53, %40 : vector<16x256xf32>
    %cst_43 = arith.constant 0.000000e+00 : f32
    %55 = vector.broadcast %cst_43 : f32 to vector<16x256xf32>
    %56 = arith.subf %55, %35 : vector<16x256xf32>
    %57 = arith.mulf %56, %35 : vector<16x256xf32>
    %58 = math.exp %57 : vector<16x256xf32>
    %59 = arith.mulf %54, %58 : vector<16x256xf32>
    %cst_44 = arith.constant 1.000000e+00 : f32
    %60 = vector.broadcast %cst_44 : f32 to vector<16x256xf32>
    %61 = arith.subf %60, %59 : vector<16x256xf32>
    %62 = arith.mulf %34, %61 : vector<16x256xf32>
    %cst_45 = arith.constant 5.000000e-01 : f32
    %63 = vector.broadcast %cst_45 : f32 to vector<16x256xf32>
    %64 = arith.mulf %63, %27 : vector<16x256xf32>
    %cst_46 = arith.constant 1.000000e+00 : f32
    %65 = vector.broadcast %cst_46 : f32 to vector<16x256xf32>
    %66 = arith.addf %65, %62 : vector<16x256xf32>
    %67 = arith.mulf %64, %66 : vector<16x256xf32>
    %68 = arith.truncf %67 : vector<16x256xf32> to vector<16x256xbf16>
    %c0_47 = arith.constant 0 : index
    %c0_48 = arith.constant 0 : index
    %69 = vector.load %arg4[%c0_47, %c0_48] : memref<256x256xbf16, #tpu.memory_space<vmem>>, vector<256x256xbf16>
    %cst_49 = arith.constant dense<0.000000e+00> : vector<16x256xf32>
    %70 = tpu.matmul %68, %69, %cst_49 {dimension_numbers = #tpu.dot_dimension_numbers<[1], [0], [0], [1], [0, 0, 1, 1], [], []>} : vector<16x256xbf16>, vector<256x256xbf16>, vector<16x256xf32> -> vector<16x256xf32>
    %c0_50 = arith.constant 0 : index
    %c0_51 = arith.constant 0 : index
    %71 = vector.load %arg5[%c0_50, %c0_51] : memref<1x256xf32, #tpu.memory_space<vmem>>, vector<1x256xf32>
    %72 = vector.broadcast %71 : vector<1x256xf32> to vector<16x256xf32>
    %73 = arith.addf %70, %72 : vector<16x256xf32>
    %cst_52 = arith.constant 0.000000e+00 : f32
    %74 = vector.broadcast %cst_52 : f32 to vector<1x2x256xf32>
    %c0_53 = arith.constant 0 : index
    %c0_54 = arith.constant 0 : index
    %c0_55 = arith.constant 0 : index
    %75 = vector.load %arg17[%c0_53, %c0_54, %c0_55] : memref<1x20x256xf32, #tpu.memory_space<vmem>>, vector<1x2x256xf32>
    tpu.vector_store %arg17[%c0_53, %c0_54, %c0_55], %74 {strides = array<i32>} : memref<1x20x256xf32, #tpu.memory_space<vmem>>, vector<1x2x256xf32>,
    %c0_56 = arith.constant 0 : index
    %c18 = arith.constant 18 : index
    %c0_57 = arith.constant 0 : index
    %76 = vector.load %arg17[%c0_56, %c18, %c0_57] : memref<1x20x256xf32, #tpu.memory_space<vmem>>, vector<1x2x256xf32>
    tpu.vector_store %arg17[%c0_56, %c18, %c0_57], %74 {strides = array<i32>} : memref<1x20x256xf32, #tpu.memory_space<vmem>>, vector<1x2x256xf32>,
    %77 = vector.shape_cast %73 : vector<16x256xf32> to vector<1x16x256xf32>
    %c0_58 = arith.constant 0 : index
    %c2_59 = arith.constant 2 : index
    %c0_60 = arith.constant 0 : index
    %78 = vector.load %arg17[%c0_58, %c2_59, %c0_60] : memref<1x20x256xf32, #tpu.memory_space<vmem>>, vector<1x16x256xf32>
    tpu.vector_store %arg17[%c0_58, %c2_59, %c0_60], %77 {strides = array<i32>} : memref<1x20x256xf32, #tpu.memory_space<vmem>>, vector<1x16x256xf32>,
    %cst_61 = arith.constant 0.000000e+00 : f32
    %79 = vector.broadcast %cst_61 : f32 to vector<16x256xf32>
    %c0_62 = arith.constant 0 : index
    %c0_63 = arith.constant 0 : index
    %c0_64 = arith.constant 0 : index
    %80 = vector.load %arg17[%c0_62, %c0_63, %c0_64] : memref<1x20x256xf32, #tpu.memory_space<vmem>>, vector<1x16x256xf32>
    %81 = vector.shape_cast %80 : vector<1x16x256xf32> to vector<16x256xf32>
    %c0_65 = arith.constant 0 : index
    %c0_66 = arith.constant 0 : index
    %c0_67 = arith.constant 0 : index
    %82 = vector.load %arg6[%c0_65, %c0_66, %c0_67] : memref<5x256x256xf32, #tpu.memory_space<vmem>>, vector<1x256x256xf32>
    %83 = vector.shape_cast %82 : vector<1x256x256xf32> to vector<256x256xf32>
    %cst_68 = arith.constant dense<0.000000e+00> : vector<16x256xf32>
    %84 = tpu.matmul %81, %83, %cst_68 {dimension_numbers = #tpu.dot_dimension_numbers<[1], [0], [0], [1], [0, 0, 1, 1], [], []>} : vector<16x256xf32>, vector<256x256xf32>, vector<16x256xf32> -> vector<16x256xf32>
    %85 = arith.addf %79, %84 : vector<16x256xf32>
    %c0_69 = arith.constant 0 : index
    %c1_70 = arith.constant 1 : index
    %c0_71 = arith.constant 0 : index
    %86 = vector.load %arg17[%c0_69, %c1_70, %c0_71] : memref<1x20x256xf32, #tpu.memory_space<vmem>>, vector<1x16x256xf32>
    %87 = vector.shape_cast %86 : vector<1x16x256xf32> to vector<16x256xf32>
    %c1_72 = arith.constant 1 : index
    %c0_73 = arith.constant 0 : index
    %c0_74 = arith.constant 0 : index
    %88 = vector.load %arg6[%c1_72, %c0_73, %c0_74] : memref<5x256x256xf32, #tpu.memory_space<vmem>>, vector<1x256x256xf32>
    %89 = vector.shape_cast %88 : vector<1x256x256xf32> to vector<256x256xf32>
    %cst_75 = arith.constant dense<0.000000e+00> : vector<16x256xf32>
    %90 = tpu.matmul %87, %89, %cst_75 {dimension_numbers = #tpu.dot_dimension_numbers<[1], [0], [0], [1], [0, 0, 1, 1], [], []>} : vector<16x256xf32>, vector<256x256xf32>, vector<16x256xf32> -> vector<16x256xf32>
    %91 = arith.addf %85, %90 : vector<16x256xf32>
    %c0_76 = arith.constant 0 : index
    %c2_77 = arith.constant 2 : index
    %c0_78 = arith.constant 0 : index
    %92 = vector.load %arg17[%c0_76, %c2_77, %c0_78] : memref<1x20x256xf32, #tpu.memory_space<vmem>>, vector<1x16x256xf32>
    %93 = vector.shape_cast %92 : vector<1x16x256xf32> to vector<16x256xf32>
    %c2_79 = arith.constant 2 : index
    %c0_80 = arith.constant 0 : index
    %c0_81 = arith.constant 0 : index
    %94 = vector.load %arg6[%c2_79, %c0_80, %c0_81] : memref<5x256x256xf32, #tpu.memory_space<vmem>>, vector<1x256x256xf32>
    %95 = vector.shape_cast %94 : vector<1x256x256xf32> to vector<256x256xf32>
    %cst_82 = arith.constant dense<0.000000e+00> : vector<16x256xf32>
    %96 = tpu.matmul %93, %95, %cst_82 {dimension_numbers = #tpu.dot_dimension_numbers<[1], [0], [0], [1], [0, 0, 1, 1], [], []>} : vector<16x256xf32>, vector<256x256xf32>, vector<16x256xf32> -> vector<16x256xf32>
    %97 = arith.addf %91, %96 : vector<16x256xf32>
    %c0_83 = arith.constant 0 : index
    %c3 = arith.constant 3 : index
    %c0_84 = arith.constant 0 : index
    %98 = vector.load %arg17[%c0_83, %c3, %c0_84] : memref<1x20x256xf32, #tpu.memory_space<vmem>>, vector<1x16x256xf32>
    %99 = vector.shape_cast %98 : vector<1x16x256xf32> to vector<16x256xf32>
    %c3_85 = arith.constant 3 : index
    %c0_86 = arith.constant 0 : index
    %c0_87 = arith.constant 0 : index
    %100 = vector.load %arg6[%c3_85, %c0_86, %c0_87] : memref<5x256x256xf32, #tpu.memory_space<vmem>>, vector<1x256x256xf32>
    %101 = vector.shape_cast %100 : vector<1x256x256xf32> to vector<256x256xf32>
    %cst_88 = arith.constant dense<0.000000e+00> : vector<16x256xf32>
    %102 = tpu.matmul %99, %101, %cst_88 {dimension_numbers = #tpu.dot_dimension_numbers<[1], [0], [0], [1], [0, 0, 1, 1], [], []>} : vector<16x256xf32>, vector<256x256xf32>, vector<16x256xf32> -> vector<16x256xf32>
    %103 = arith.addf %97, %102 : vector<16x256xf32>
    %c0_89 = arith.constant 0 : index
    %c4 = arith.constant 4 : index
    %c0_90 = arith.constant 0 : index
    %104 = vector.load %arg17[%c0_89, %c4, %c0_90] : memref<1x20x256xf32, #tpu.memory_space<vmem>>, vector<1x16x256xf32>
    %105 = vector.shape_cast %104 : vector<1x16x256xf32> to vector<16x256xf32>
    %c4_91 = arith.constant 4 : index
    %c0_92 = arith.constant 0 : index
    %c0_93 = arith.constant 0 : index
    %106 = vector.load %arg6[%c4_91, %c0_92, %c0_93] : memref<5x256x256xf32, #tpu.memory_space<vmem>>, vector<1x256x256xf32>
    %107 = vector.shape_cast %106 : vector<1x256x256xf32> to vector<256x256xf32>
    %cst_94 = arith.constant dense<0.000000e+00> : vector<16x256xf32>
    %108 = tpu.matmul %105, %107, %cst_94 {dimension_numbers = #tpu.dot_dimension_numbers<[1], [0], [0], [1], [0, 0, 1, 1], [], []>} : vector<16x256xf32>, vector<256x256xf32>, vector<16x256xf32> -> vector<16x256xf32>
    %109 = arith.addf %103, %108 : vector<16x256xf32>
    %c0_95 = arith.constant 0 : index
    %c0_96 = arith.constant 0 : index
    %110 = vector.load %arg7[%c0_95, %c0_96] : memref<1x256xf32, #tpu.memory_space<vmem>>, vector<1x256xf32>
    %111 = vector.broadcast %110 : vector<1x256xf32> to vector<16x256xf32>
    %112 = arith.addf %109, %111 : vector<16x256xf32>
    %cst_97 = arith.constant 0.000000e+00 : f32
    %113 = vector.broadcast %cst_97 : f32 to vector<1x6x256xf32>
    %c0_98 = arith.constant 0 : index
    %c0_99 = arith.constant 0 : index
    %c0_100 = arith.constant 0 : index
    %114 = vector.load %arg18[%c0_98, %c0_99, %c0_100] : memref<1x28x256xf32, #tpu.memory_space<vmem>>, vector<1x6x256xf32>
    tpu.vector_store %arg18[%c0_98, %c0_99, %c0_100], %113 {strides = array<i32>} : memref<1x28x256xf32, #tpu.memory_space<vmem>>, vector<1x6x256xf32>,
    %c0_101 = arith.constant 0 : index
    %c22 = arith.constant 22 : index
    %c0_102 = arith.constant 0 : index
    %115 = vector.load %arg18[%c0_101, %c22, %c0_102] : memref<1x28x256xf32, #tpu.memory_space<vmem>>, vector<1x6x256xf32>
    tpu.vector_store %arg18[%c0_101, %c22, %c0_102], %113 {strides = array<i32>} : memref<1x28x256xf32, #tpu.memory_space<vmem>>, vector<1x6x256xf32>,
    %116 = vector.shape_cast %112 : vector<16x256xf32> to vector<1x16x256xf32>
    %c0_103 = arith.constant 0 : index
    %c6 = arith.constant 6 : index
    %c0_104 = arith.constant 0 : index
    %117 = vector.load %arg18[%c0_103, %c6, %c0_104] : memref<1x28x256xf32, #tpu.memory_space<vmem>>, vector<1x16x256xf32>
    tpu.vector_store %arg18[%c0_103, %c6, %c0_104], %116 {strides = array<i32>} : memref<1x28x256xf32, #tpu.memory_space<vmem>>, vector<1x16x256xf32>,
    %cst_105 = arith.constant 0.000000e+00 : f32
    %118 = vector.broadcast %cst_105 : f32 to vector<16x256xf32>
    %c0_106 = arith.constant 0 : index
    %c0_107 = arith.constant 0 : index
    %c0_108 = arith.constant 0 : index
    %119 = vector.load %arg18[%c0_106, %c0_107, %c0_108] : memref<1x28x256xf32, #tpu.memory_space<vmem>>, vector<1x16x256xf32>
    %120 = vector.shape_cast %119 : vector<1x16x256xf32> to vector<16x256xf32>
    %c0_109 = arith.constant 0 : index
    %c0_110 = arith.constant 0 : index
    %c0_111 = arith.constant 0 : index
    %121 = vector.load %arg8[%c0_109, %c0_110, %c0_111] : memref<5x256x256xf32, #tpu.memory_space<vmem>>, vector<1x256x256xf32>
    %122 = vector.shape_cast %121 : vector<1x256x256xf32> to vector<256x256xf32>
    %cst_112 = arith.constant dense<0.000000e+00> : vector<16x256xf32>
    %123 = tpu.matmul %120, %122, %cst_112 {dimension_numbers = #tpu.dot_dimension_numbers<[1], [0], [0], [1], [0, 0, 1, 1], [], []>} : vector<16x256xf32>, vector<256x256xf32>, vector<16x256xf32> -> vector<16x256xf32>
    %124 = arith.addf %118, %123 : vector<16x256xf32>
    %c0_113 = arith.constant 0 : index
    %c3_114 = arith.constant 3 : index
    %c0_115 = arith.constant 0 : index
    %125 = vector.load %arg18[%c0_113, %c3_114, %c0_115] : memref<1x28x256xf32, #tpu.memory_space<vmem>>, vector<1x16x256xf32>
    %126 = vector.shape_cast %125 : vector<1x16x256xf32> to vector<16x256xf32>
    %c1_116 = arith.constant 1 : index
    %c0_117 = arith.constant 0 : index
    %c0_118 = arith.constant 0 : index
    %127 = vector.load %arg8[%c1_116, %c0_117, %c0_118] : memref<5x256x256xf32, #tpu.memory_space<vmem>>, vector<1x256x256xf32>
    %128 = vector.shape_cast %127 : vector<1x256x256xf32> to vector<256x256xf32>
    %cst_119 = arith.constant dense<0.000000e+00> : vector<16x256xf32>
    %129 = tpu.matmul %126, %128, %cst_119 {dimension_numbers = #tpu.dot_dimension_numbers<[1], [0], [0], [1], [0, 0, 1, 1], [], []>} : vector<16x256xf32>, vector<256x256xf32>, vector<16x256xf32> -> vector<16x256xf32>
    %130 = arith.addf %124, %129 : vector<16x256xf32>
    %c0_120 = arith.constant 0 : index
    %c6_121 = arith.constant 6 : index
    %c0_122 = arith.constant 0 : index
    %131 = vector.load %arg18[%c0_120, %c6_121, %c0_122] : memref<1x28x256xf32, #tpu.memory_space<vmem>>, vector<1x16x256xf32>
    %132 = vector.shape_cast %131 : vector<1x16x256xf32> to vector<16x256xf32>
    %c2_123 = arith.constant 2 : index
    %c0_124 = arith.constant 0 : index
    %c0_125 = arith.constant 0 : index
    %133 = vector.load %arg8[%c2_123, %c0_124, %c0_125] : memref<5x256x256xf32, #tpu.memory_space<vmem>>, vector<1x256x256xf32>
    %134 = vector.shape_cast %133 : vector<1x256x256xf32> to vector<256x256xf32>
    %cst_126 = arith.constant dense<0.000000e+00> : vector<16x256xf32>
    %135 = tpu.matmul %132, %134, %cst_126 {dimension_numbers = #tpu.dot_dimension_numbers<[1], [0], [0], [1], [0, 0, 1, 1], [], []>} : vector<16x256xf32>, vector<256x256xf32>, vector<16x256xf32> -> vector<16x256xf32>
    %136 = arith.addf %130, %135 : vector<16x256xf32>
    %c0_127 = arith.constant 0 : index
    %c9 = arith.constant 9 : index
    %c0_128 = arith.constant 0 : index
    %137 = vector.load %arg18[%c0_127, %c9, %c0_128] : memref<1x28x256xf32, #tpu.memory_space<vmem>>, vector<1x16x256xf32>
    %138 = vector.shape_cast %137 : vector<1x16x256xf32> to vector<16x256xf32>
    %c3_129 = arith.constant 3 : index
    %c0_130 = arith.constant 0 : index
    %c0_131 = arith.constant 0 : index
    %139 = vector.load %arg8[%c3_129, %c0_130, %c0_131] : memref<5x256x256xf32, #tpu.memory_space<vmem>>, vector<1x256x256xf32>
    %140 = vector.shape_cast %139 : vector<1x256x256xf32> to vector<256x256xf32>
    %cst_132 = arith.constant dense<0.000000e+00> : vector<16x256xf32>
    %141 = tpu.matmul %138, %140, %cst_132 {dimension_numbers = #tpu.dot_dimension_numbers<[1], [0], [0], [1], [0, 0, 1, 1], [], []>} : vector<16x256xf32>, vector<256x256xf32>, vector<16x256xf32> -> vector<16x256xf32>
    %142 = arith.addf %136, %141 : vector<16x256xf32>
    %c0_133 = arith.constant 0 : index
    %c12 = arith.constant 12 : index
    %c0_134 = arith.constant 0 : index
    %143 = vector.load %arg18[%c0_133, %c12, %c0_134] : memref<1x28x256xf32, #tpu.memory_space<vmem>>, vector<1x16x256xf32>
    %144 = vector.shape_cast %143 : vector<1x16x256xf32> to vector<16x256xf32>
    %c4_135 = arith.constant 4 : index
    %c0_136 = arith.constant 0 : index
    %c0_137 = arith.constant 0 : index
    %145 = vector.load %arg8[%c4_135, %c0_136, %c0_137] : memref<5x256x256xf32, #tpu.memory_space<vmem>>, vector<1x256x256xf32>
    %146 = vector.shape_cast %145 : vector<1x256x256xf32> to vector<256x256xf32>
    %cst_138 = arith.constant dense<0.000000e+00> : vector<16x256xf32>
    %147 = tpu.matmul %144, %146, %cst_138 {dimension_numbers = #tpu.dot_dimension_numbers<[1], [0], [0], [1], [0, 0, 1, 1], [], []>} : vector<16x256xf32>, vector<256x256xf32>, vector<16x256xf32> -> vector<16x256xf32>
    %148 = arith.addf %142, %147 : vector<16x256xf32>
    %c0_139 = arith.constant 0 : index
    %c0_140 = arith.constant 0 : index
    %149 = vector.load %arg9[%c0_139, %c0_140] : memref<1x256xf32, #tpu.memory_space<vmem>>, vector<1x256xf32>
    %150 = vector.broadcast %149 : vector<1x256xf32> to vector<16x256xf32>
    %151 = arith.addf %148, %150 : vector<16x256xf32>
    %152 = arith.mulf %67, %151 : vector<16x256xf32>
    %153 = arith.truncf %152 : vector<16x256xf32> to vector<16x256xbf16>
    %c0_141 = arith.constant 0 : index
    %c0_142 = arith.constant 0 : index
    %154 = vector.load %arg10[%c0_141, %c0_142] : memref<256x128xbf16, #tpu.memory_space<vmem>>, vector<256x128xbf16>
    %cst_143 = arith.constant dense<0.000000e+00> : vector<16x128xf32>
    %155 = tpu.matmul %153, %154, %cst_143 {dimension_numbers = #tpu.dot_dimension_numbers<[1], [0], [0], [1], [0, 0, 1, 1], [], []>} : vector<16x256xbf16>, vector<256x128xbf16>, vector<16x128xf32> -> vector<16x128xf32>
    %c0_144 = arith.constant 0 : index
    %c0_145 = arith.constant 0 : index
    %156 = vector.load %arg11[%c0_144, %c0_145] : memref<1x128xf32, #tpu.memory_space<vmem>>, vector<1x128xf32>
    %157 = vector.broadcast %156 : vector<1x128xf32> to vector<16x128xf32>
    %158 = arith.addf %155, %157 : vector<16x128xf32>
    %159 = vector.shape_cast %0 : vector<1x16x128xf32> to vector<16x128xf32>
    %160 = arith.addf %158, %159 : vector<16x128xf32>
    %c0_146 = arith.constant 0 : index
    %c0_147 = arith.constant 0 : index
    %161 = vector.load %arg12[%c0_146, %c0_147] : memref<128x128xf32, #tpu.memory_space<vmem>>, vector<128x128xf32>
    %cst_148 = arith.constant dense<0.000000e+00> : vector<16x128xf32>
    %162 = tpu.matmul %160, %161, %cst_148 {dimension_numbers = #tpu.dot_dimension_numbers<[1], [0], [0], [1], [0, 0, 1, 1], [], []>} : vector<16x128xf32>, vector<128x128xf32>, vector<16x128xf32> -> vector<16x128xf32>
    %163 = arith.subf %160, %162 : vector<16x128xf32>
    %164 = arith.mulf %163, %163 : vector<16x128xf32>
    %cst_149 = arith.constant dense<0.000000e+00> : vector<16x128xf32>
    %165 = tpu.matmul %164, %161, %cst_149 {dimension_numbers = #tpu.dot_dimension_numbers<[1], [0], [0], [1], [0, 0, 1, 1], [], []>} : vector<16x128xf32>, vector<128x128xf32>, vector<16x128xf32> -> vector<16x128xf32>
    %cst_150 = arith.constant 0.000000e+00 : f32
    %166 = vector.broadcast %cst_150 : f32 to vector<16x128xf32>
    %167 = arith.maximumf %165, %166 : vector<16x128xf32>
    %cst_151 = arith.constant 9.99999974E-6 : f32
    %168 = vector.broadcast %cst_151 : f32 to vector<16x128xf32>
    %169 = arith.addf %167, %168 : vector<16x128xf32>
    %170 = math.rsqrt %169 : vector<16x128xf32>
    %171 = arith.mulf %163, %170 : vector<16x128xf32>
    %c0_152 = arith.constant 0 : index
    %c0_153 = arith.constant 0 : index
    %172 = vector.load %arg13[%c0_152, %c0_153] : memref<1x128xf32, #tpu.memory_space<vmem>>, vector<1x128xf32>
    %173 = vector.broadcast %172 : vector<1x128xf32> to vector<16x128xf32>
    %174 = arith.mulf %171, %173 : vector<16x128xf32>
    %c0_154 = arith.constant 0 : index
    %c0_155 = arith.constant 0 : index
    %175 = vector.load %arg14[%c0_154, %c0_155] : memref<1x128xf32, #tpu.memory_space<vmem>>, vector<1x128xf32>
    %176 = vector.broadcast %175 : vector<1x128xf32> to vector<16x128xf32>
    %177 = arith.addf %174, %176 : vector<16x128xf32>
    %178 = vector.shape_cast %177 : vector<16x128xf32> to vector<1x16x128xf32>
    %c0_156 = arith.constant 0 : index
    %c0_157 = arith.constant 0 : index
    %c0_158 = arith.constant 0 : index
    %179 = vector.load %arg15[%c0_156, %c0_157, %c0_158] : memref<1x16x128xf32, #tpu.memory_space<vmem>>, vector<1x16x128xf32>
    tpu.vector_store %arg15[%c0_156, %c0_157, %c0_158], %178 {strides = array<i32>} : memref<1x16x128xf32, #tpu.memory_space<vmem>>, vector<1x16x128xf32>,
    return
  }
  func.func @transform_0(%arg0: i32) -> (i32, i32, i32) {
    %c0_i32 = arith.constant 0 : i32
    %c0_i32_0 = arith.constant 0 : i32
    %c0_i32_1 = arith.constant 0 : i32
    return %arg0, %c0_i32, %c0_i32_0 : i32, i32, i32
  }
  func.func @transform_1(%arg0: i32) -> (i32, i32, i32) {
    %c0_i32 = arith.constant 0 : i32
    %c0_i32_0 = arith.constant 0 : i32
    %c0_i32_1 = arith.constant 0 : i32
    %c0_i32_2 = arith.constant 0 : i32
    return %c0_i32, %c0_i32_0, %c0_i32_1 : i32, i32, i32
  }
  func.func @transform_2(%arg0: i32) -> (i32, i32) {
    %c0_i32 = arith.constant 0 : i32
    %c0_i32_0 = arith.constant 0 : i32
    %c0_i32_1 = arith.constant 0 : i32
    return %c0_i32, %c0_i32_0 : i32, i32
  }
  func.func @transform_3(%arg0: i32) -> (i32, i32) {
    %c0_i32 = arith.constant 0 : i32
    %c0_i32_0 = arith.constant 0 : i32
    %c0_i32_1 = arith.constant 0 : i32
    return %c0_i32, %c0_i32_0 : i32, i32
  }
  func.func @transform_4(%arg0: i32) -> (i32, i32) {
    %c0_i32 = arith.constant 0 : i32
    %c0_i32_0 = arith.constant 0 : i32
    %c0_i32_1 = arith.constant 0 : i32
    return %c0_i32, %c0_i32_0 : i32, i32
  }
  func.func @transform_5(%arg0: i32) -> (i32, i32, i32) {
    %c0_i32 = arith.constant 0 : i32
    %c0_i32_0 = arith.constant 0 : i32
    %c0_i32_1 = arith.constant 0 : i32
    %c0_i32_2 = arith.constant 0 : i32
    return %c0_i32, %c0_i32_0, %c0_i32_1 : i32, i32, i32
  }
  func.func @transform_6(%arg0: i32) -> (i32, i32) {
    %c0_i32 = arith.constant 0 : i32
    %c0_i32_0 = arith.constant 0 : i32
    %c0_i32_1 = arith.constant 0 : i32
    return %c0_i32, %c0_i32_0 : i32, i32
  }
  func.func @transform_7(%arg0: i32) -> (i32, i32, i32) {
    %c0_i32 = arith.constant 0 : i32
    %c0_i32_0 = arith.constant 0 : i32
    %c0_i32_1 = arith.constant 0 : i32
    %c0_i32_2 = arith.constant 0 : i32
    return %c0_i32, %c0_i32_0, %c0_i32_1 : i32, i32, i32
  }
  func.func @transform_8(%arg0: i32) -> (i32, i32) {
    %c0_i32 = arith.constant 0 : i32
    %c0_i32_0 = arith.constant 0 : i32
    %c0_i32_1 = arith.constant 0 : i32
    return %c0_i32, %c0_i32_0 : i32, i32
  }
  func.func @transform_9(%arg0: i32) -> (i32, i32) {
    %c0_i32 = arith.constant 0 : i32
    %c0_i32_0 = arith.constant 0 : i32
    %c0_i32_1 = arith.constant 0 : i32
    return %c0_i32, %c0_i32_0 : i32, i32
  }
  func.func @transform_10(%arg0: i32) -> (i32, i32) {
    %c0_i32 = arith.constant 0 : i32
    %c0_i32_0 = arith.constant 0 : i32
    %c0_i32_1 = arith.constant 0 : i32
    return %c0_i32, %c0_i32_0 : i32, i32
  }
  func.func @transform_11(%arg0: i32) -> (i32, i32) {
    %c0_i32 = arith.constant 0 : i32
    %c0_i32_0 = arith.constant 0 : i32
    %c0_i32_1 = arith.constant 0 : i32
    return %c0_i32, %c0_i32_0 : i32, i32
  }
  func.func @transform_12(%arg0: i32) -> (i32, i32) {
    %c0_i32 = arith.constant 0 : i32
    %c0_i32_0 = arith.constant 0 : i32
    %c0_i32_1 = arith.constant 0 : i32
    return %c0_i32, %c0_i32_0 : i32, i32
  }
  func.func @transform_13(%arg0: i32) -> (i32, i32) {
    %c0_i32 = arith.constant 0 : i32
    %c0_i32_0 = arith.constant 0 : i32
    %c0_i32_1 = arith.constant 0 : i32
    return %c0_i32, %c0_i32_0 : i32, i32
  }
  func.func @transform_14(%arg0: i32) -> (i32, i32, i32) {
    %c0_i32 = arith.constant 0 : i32
    %c0_i32_0 = arith.constant 0 : i32
    %c0_i32_1 = arith.constant 0 : i32
    return %arg0, %c0_i32, %c0_i32_0 : i32, i32, i32
  }
}

</mosaic_0001>

<bundles_post_ra>
// kernel: tpu_custom_call.1
= control target key start
LH: loop header
LB: loop body
LE: loop exit
PB: predicated region body
PF: predicated region fallthrough
CT: control target
= control target key end

     0   :  { %s6492_s0 = inlined_call_operand.hbm [shape: f32[2,16,128], index: 0, kind: input, shape index: {}]   ;;  %s6493_s1 = inlined_call_operand.hbm [shape: bf16[3,128,256], index: 1, kind: input, shape index: {}]   ;;  %s6494_s2 = inlined_call_operand.hbm [shape: f32[1,256], index: 2, kind: input, shape index: {}]   ;;  %s6495_s3 = inlined_call_operand.hbm [shape: bf16[256,256], index: 3, kind: input, shape index: {}]   ;;  %s6496_s4 = inlined_call_operand.hbm [shape: f32[1,256], index: 4, kind: input, shape index: {}]   ;;  %s6497_s5 = inlined_call_operand.hbm [shape: f32[5,256,256], index: 5, kind: input, shape index: {}]   ;;  %s6498_s6 = inlined_call_operand.hbm [shape: f32[1,256], index: 6, kind: input, shape index: {}]   ;;  %s6499_s7 = inlined_call_operand.hbm [shape: f32[5,256,256], index: 7, kind: input, shape index: {}]   ;;  %s6500_s8 = inlined_call_operand.hbm [shape: f32[1,256], index: 8, kind: input, shape index: {}]   ;;  %s6501_s9 = inlined_call_operand.hbm [shape: bf16[256,128], index: 9, kind: input, shape index: {}]   ;;  %s6502_s10 = inlined_call_operand.hbm [shape: f32[1,128], index: 10, kind: input, shape index: {}]   ;;  %s6503_s11 = inlined_call_operand.hbm [shape: f32[128,128], index: 11, kind: input, shape index: {}]   ;;  %s6504_s12 = inlined_call_operand.hbm [shape: f32[1,128], index: 12, kind: input, shape index: {}]   ;;  %s6505_s13 = inlined_call_operand.hbm [shape: f32[1,128], index: 13, kind: input, shape index: {}]   ;;  %s6506_s14 = inlined_call_operand.hbm [shape: f32[2,16,128], index: 14, kind: output, shape index: {}]  }
   0x1   :  { %6521 = sst [smem:[#allocation42_spill]] %s6492_s0 }
   0x2   :  { %6522 = sst [smem:[#allocation43_spill]] %s6493_s1 }
   0x3   :  { %6523 = sst [smem:[#allocation44_spill]] %s6494_s2 }
   0x4   :  { %6524 = sst [smem:[#allocation45_spill]] %s6495_s3 }
   0x5   :  { %6525 = sst [smem:[#allocation46_spill]] %s6506_s14 }
   0x6   :  { %19 = vsyncpa [#allocation6], 0 }
   0x7   :  { %21 = vsyncpa [#allocation6 + $0x1], 0 }
   0x8   :  { %22 = vsyncpa [#allocation9], 0 }
   0x9   :  { %23 = vsyncpa [#allocation12], 0 }
   0xa   :  { %24 = vsyncpa [#allocation15], 0 }
   0xb   :  { %25 = vsyncpa [#allocation18], 0 }
   0xc   :  { %26 = vsyncpa [#allocation21], 0 }
   0xd   :  { %27 = vsyncpa [#allocation24], 0 }
   0xe   :  { %28 = vsyncpa [#allocation27], 0 }
   0xf   :  { %29 = vsyncpa [#allocation7], 0 }
  0x10   :  { %31 = vsyncpa [#allocation7 + $0x1], 0  ;;  %s5819_s29 = smov 0   ;;  %s5821_s30 = smov 0  }
  0x11   :  { %s5823_s15 = smov 0   ;;  %s5825_s16 = smov 0  }
  0x12 LB: > { %6526 = sst [smem:[#allocation38_spill]] %s5704_s29  ;;  %s5718_s17 = smov [#allocation8]   ;;  %s5716_s16 = sphi %s5825_s16, %s6579_s16   ;;  %s5712_s15 = sphi %s5823_s15, %s6578_s15   ;;  %s5708_s30 = sphi %s5821_s30, %s6577_s30   ;;  %s5704_s29 = sphi %s5819_s29, %s6576_s29  }
  0x13   : > { %6527 = sst [smem:[#allocation39_spill]] %s5708_s30  ;;  %s379_s18 = sshll.u32 %s5718_s17, 4  ;;  %s5845_s18 = int_to_ptr.vmem [resolvable:$true] %s379_s18 }
  0x14   : > { %s5840_s19 = sadd.s32 4294967295, %s5716_s16   ;;  %p3858_p0 = scmp.ge.s32.totalorder %s5716_s16, 1 }
  0x15   : > { %6528 = sst [smem:[#allocation40_spill]] %s5840_s19  ;;  %p6518_p1 = scmp.eq.s32.totalorder %s5840_s19, 0 }
  0x16   : > { %p367_p2 = scmp.lt.s32.totalorder %s5716_s16, 3  ;;  %s5719_s21 = smov [#allocation11]  }
  0x17   : > { %s403_s22 = sshll.u32 %s5719_s21, 4  ;;  %s5720_s24 = smov [#allocation14]   ;;  %s5860_s22 = int_to_ptr.vmem [resolvable:$true] %s403_s22 }
  0x18   : > { %p5847_p3 = pnand %p3858_p0, %p367_p2  ;;  %s427_s25 = sshll.u32 %s5720_s24, 4  ;;  %s5862_s25 = int_to_ptr.vmem [resolvable:$true] %s427_s25 }
  0x19   : > { %s6532_s1 = sld [smem:[#allocation43_spill]] }
  0x1a   : > { %s6529_s20 = scalar_select %p5847_p3, 1, 0 }
  0x1b   : > { %p4933_p5 = pneg %p5847_p3 }
  0x1c   : > { %6530 = sst [smem:[#allocation41_spill]] %s6529_s20 }
  0x1d   : > { %p5856_p6 = pnand %p4933_p5, %p6518_p1 }
  0x1f   : > { %s5228_s28 = scalar_lea.hbm %s6532_s1, 6144  ;;  %p5872_p8 = pneg %p5856_p6 }
  0x20   : > { %p5229_p7 = scmp.ne.s32.totalorder %s6532_s1, %s5228_s28  ;;  %p5235_p11 = scmp.lt.u32.totalorder %s5228_s28, %s6532_s1 }
  0x22   : > { %p5231_p9 = pnand %p5872_p8, %p5229_p7 }
  0x24   : > { %p5232_p10 = pneg %p5231_p9 }
  0x26   : > { %p5237_p12 = pnand %p5235_p11, %p5232_p10 }
  0x28   : > { %5240 = shalt.err (!%p5237_p12)
}
  0x29   : > { %s5241_s14 = scalar_lea.vmem %s5845_s18, 6144  ;;  %p5249_p5 = scmp.lt.s32.totalorder %s5845_s18, %s5845_s18 }
  0x2a   : > { %p5242_p13 = scmp.ne.s32.totalorder %s5845_s18, %s5241_s14  ;;  %p5250_p4 = scmp.lt.s32.totalorder %s5241_s14, %s5241_s14 }
  0x2c   : > { %p5244_p0 = pnand %p5242_p13, %p5872_p8  ;;  %p5251_p7 = por %p5250_p4, %p5249_p5 }
  0x2e   : > { %p5245_p2 = pneg %p5244_p0 }
  0x30   : > { %p5252_p9 = pnand %p5251_p7, %p5245_p2 }
  0x32   : > { %5255 = shalt.err (!%p5252_p9)
}
  0x33   : > { %s6514_s26 = smov 128   ;;  %s6516_s20 = smov 8  }
  0x34   : > { %4936 = dma.hbm_to_vmem [thread:$0]  (!%p5856_p6), %s6532_s1, 6144, %s5845_s18, [#allocation9], %s6514_s26, %s6514_s26, %s6516_s20  }
  0x35   : > { %s6534_s3 = sld [smem:[#allocation45_spill]] }
  0x3b   : > { %s5256_s14 = scalar_lea.hbm %s6534_s3, 4096 }
  0x3c   : > { %p5257_p4 = scmp.ne.s32.totalorder %s6534_s3, %s5256_s14  ;;  %p5263_p12 = scmp.lt.u32.totalorder %s5256_s14, %s6534_s3 }
  0x3e   : > { %p5259_p10 = pnand %p5257_p4, %p5872_p8 }
  0x40   : > { %p5260_p11 = pneg %p5259_p10 }
  0x42   : > { %p5265_p13 = pnand %p5263_p12, %p5260_p11 }
  0x44   : > { %5268 = shalt.err (!%p5265_p13)
}
  0x45   : > { %s5269_s18 = scalar_lea.vmem %s5860_s22, 4096  ;;  %p5277_p7 = scmp.lt.s32.totalorder %s5860_s22, %s5860_s22 }
  0x46   : > { %p5270_p0 = scmp.ne.s32.totalorder %s5860_s22, %s5269_s18  ;;  %p5278_p9 = scmp.lt.s32.totalorder %s5269_s18, %s5269_s18 }
  0x48   : > { %p5272_p2 = pnand %p5270_p0, %p5872_p8  ;;  %p5279_p4 = por %p5278_p9, %p5277_p7 }
  0x4a   : > { %p5273_p5 = pneg %p5272_p2 }
  0x4c   : > { %p5280_p10 = pnand %p5279_p4, %p5273_p5 }
  0x4e   : > { %5283 = shalt.err (!%p5280_p10)
}
  0x4f   : > { %4942 = dma.hbm_to_vmem [thread:$0]  (!%p5856_p6), %s6534_s3, 4096, %s5860_s22, [#allocation12], %s6514_s26, %s6514_s26, %s6516_s20  }
  0x50   : > { %s5284_s27 = scalar_lea.hbm %s6497_s5, 40960 }
  0x51   : > { %p5285_p11 = scmp.ne.s32.totalorder %s6497_s5, %s5284_s27  ;;  %p5291_p0 = scmp.lt.u32.totalorder %s5284_s27, %s6497_s5 }
  0x53   : > { %p5287_p12 = pnand %p5285_p11, %p5872_p8 }
  0x55   : > { %p5288_p13 = pneg %p5287_p12 }
  0x57   : > { %p5293_p2 = pnand %p5291_p0, %p5288_p13 }
  0x59   : > { %5296 = shalt.err (!%p5293_p2)
}
  0x5a   : > { %s5297_s22 = scalar_lea.vmem %s5862_s25, 40960  ;;  %p5305_p4 = scmp.lt.s32.totalorder %s5862_s25, %s5862_s25 }
  0x5b   : > { %p5298_p5 = scmp.ne.s32.totalorder %s5862_s25, %s5297_s22  ;;  %p5306_p10 = scmp.lt.s32.totalorder %s5297_s22, %s5297_s22 }
  0x5d   : > { %p5300_p7 = pnand %p5298_p5, %p5872_p8  ;;  %p5307_p11 = por %p5306_p10, %p5305_p4 }
  0x5f   : > { %p5301_p9 = pneg %p5300_p7 }
  0x61   : > { %p5308_p12 = pnand %p5307_p11, %p5301_p9 }
  0x63   : > { %5311 = shalt.err (!%p5308_p12)
}
  0x64   : > { %s5723_s18 = smov 256   ;;  %s5724_s0 = smov 16  }
  0x65   : > { %4948 = dma.hbm_to_vmem [thread:$0]  (!%p5856_p6), %s6497_s5, 40960, %s5862_s25, [#allocation15], %s5723_s18, %s5723_s18, %s5724_s0  }
  0x66   : > { %s5725_s19 = smov [#allocation17]   ;;  %s5726_s28 = smov [#allocation20]  }
  0x67   : > { %s451_s27 = sshll.u32 %s5725_s19, 4  ;;  %s475_s17 = sshll.u32 %s5726_s28, 4  ;;  %s452_s27 = int_to_ptr.vmem [resolvable:$true] %s451_s27  ;;  %s476_s17 = int_to_ptr.vmem [resolvable:$true] %s475_s17 }
  0x68   : > { %s5312_s22 = scalar_lea.hbm %s6499_s7, 40960 }
  0x69   : > { %p5313_p13 = scmp.ne.s32.totalorder %s6499_s7, %s5312_s22  ;;  %p5319_p5 = scmp.lt.u32.totalorder %s5312_s22, %s6499_s7 }
  0x6b   : > { %p5315_p0 = pnand %p5313_p13, %p5872_p8 }
  0x6d   : > { %p5316_p2 = pneg %p5315_p0 }
  0x6f   : > { %p5321_p7 = pnand %p5319_p5, %p5316_p2 }
  0x71   : > { %5324 = shalt.err (!%p5321_p7)
}
  0x72   : > { %s5325_s25 = scalar_lea.vmem %s452_s27, 40960  ;;  %p5333_p11 = scmp.lt.s32.totalorder %s452_s27, %s452_s27 }
  0x73   : > { %p5326_p9 = scmp.ne.s32.totalorder %s452_s27, %s5325_s25  ;;  %p5334_p12 = scmp.lt.s32.totalorder %s5325_s25, %s5325_s25 }
  0x75   : > { %p5328_p4 = pnand %p5326_p9, %p5872_p8  ;;  %p5335_p1 = por %p5334_p12, %p5333_p11 }
  0x77   : > { %p5329_p10 = pneg %p5328_p4 }
  0x79   : > { %p5336_p3 = pnand %p5335_p1, %p5329_p10 }
  0x7b   : > { %5339 = shalt.err (!%p5336_p3)
}
  0x7c   : > { %4954 = dma.hbm_to_vmem [thread:$0]  (!%p5856_p6), %s6499_s7, 40960, %s452_s27, [#allocation18], %s5723_s18, %s5723_s18, %s5724_s0  }
  0x7d   : > { %s5340_s29 = scalar_lea.hbm %s6501_s9, 2048 }
  0x7e   : > { %p5341_p13 = scmp.ne.s32.totalorder %s6501_s9, %s5340_s29  ;;  %p5347_p3 = scmp.lt.u32.totalorder %s5340_s29, %s6501_s9 }
  0x80   : > { %p5343_p0 = pnand %p5341_p13, %p5872_p8 }
  0x82   : > { %p5344_p1 = pneg %p5343_p0 }
  0x84   : > { %p5349_p2 = pnand %p5347_p3, %p5344_p1 }
  0x86   : > { %5352 = shalt.err (!%p5349_p2)
}
  0x87   : > { %s5353_s14 = scalar_lea.vmem %s476_s17, 2048  ;;  %p5361_p4 = scmp.lt.s32.totalorder %s476_s17, %s476_s17 }
  0x88   : > { %p5354_p5 = scmp.ne.s32.totalorder %s476_s17, %s5353_s14  ;;  %p5362_p10 = scmp.lt.s32.totalorder %s5353_s14, %s5353_s14 }
  0x8a   : > { %p5356_p7 = pnand %p5354_p5, %p5872_p8  ;;  %p5363_p11 = por %p5362_p10, %p5361_p4 }
  0x8c   : > { %p5357_p9 = pneg %p5356_p7 }
  0x8e   : > { %p5364_p12 = pnand %p5363_p11, %p5357_p9 }
  0x90   : > { %5367 = shalt.err (!%p5364_p12)
}
  0x91   : > { %s5727_s18 = smov 64   ;;  %s5728_s0 = smov 4  }
  0x92   : > { %4960 = dma.hbm_to_vmem [thread:$0]  (!%p5856_p6), %s6501_s9, 2048, %s476_s17, [#allocation21], %s5727_s18, %s5727_s18, %s5728_s0  }
  0x93   : > { %s5729_s25 = smov [#allocation23]   ;;  %s5730_s20 = smov [#allocation10]  }
  0x94   : > { %s499_s26 = sshll.u32 %s5729_s25, 4  ;;  %s393_s1 = sshll.u32 %s5730_s20, 4  ;;  %s500_s26 = int_to_ptr.vmem [resolvable:$true] %s499_s26  ;;  %s394_s1 = int_to_ptr.vmem [resolvable:$true] %s393_s1 }
  0x95   : > { %s5368_s30 = scalar_lea.hbm %s6503_s11, 2048 }
  0x96   : > { %p5369_p13 = scmp.ne.s32.totalorder %s6503_s11, %s5368_s30  ;;  %p5375_p3 = scmp.lt.u32.totalorder %s5368_s30, %s6503_s11 }
  0x98   : > { %p5371_p0 = pnand %p5369_p13, %p5872_p8 }
  0x9a   : > { %p5372_p1 = pneg %p5371_p0 }
  0x9c   : > { %p5377_p2 = pnand %p5375_p3, %p5372_p1 }
  0x9e   : > { %5380 = shalt.err (!%p5377_p2)
}
  0x9f   : > { %s5381_s17 = scalar_lea.vmem %s500_s26, 2048  ;;  %p5389_p4 = scmp.lt.s32.totalorder %s500_s26, %s500_s26 }
  0xa0   : > { %p5382_p5 = scmp.ne.s32.totalorder %s500_s26, %s5381_s17  ;;  %p5390_p10 = scmp.lt.s32.totalorder %s5381_s17, %s5381_s17 }
  0xa2   : > { %p5384_p7 = pnand %p5382_p5, %p5872_p8  ;;  %p5391_p11 = por %p5390_p10, %p5389_p4 }
  0xa4   : > { %p5385_p9 = pneg %p5384_p7 }
  0xa6   : > { %p5392_p12 = pnand %p5391_p11, %p5385_p9 }
  0xa8   : > { %5395 = shalt.err (!%p5392_p12)
}
  0xa9   : > { %s6535_s18 = smov 8   ;;  %s6536_s0 = smov 128  }
  0xaa   : > { %4966 = dma.hbm_to_vmem [thread:$0]  (!%p5856_p6), %s6503_s11, 2048, %s500_s26, [#allocation24], %s6536_s0, %s6536_s0, %s6535_s18  }
  0xab   : > { %s6537_s2 = sld [smem:[#allocation44_spill]] }
  0xb1   : > { %s5396_s3 = scalar_lea.hbm %s6537_s2, 32 }
  0xb2   : > { %p5397_p13 = scmp.ne.s32.totalorder %s6537_s2, %s5396_s3  ;;  %p5403_p3 = scmp.lt.u32.totalorder %s5396_s3, %s6537_s2 }
  0xb4   : > { %p5399_p0 = pnand %p5397_p13, %p5872_p8 }
  0xb6   : > { %p5400_p1 = pneg %p5399_p0 }
  0xb8   : > { %p5405_p2 = pnand %p5403_p3, %p5400_p1 }
  0xba   : > { %5408 = shalt.err (!%p5405_p2)
}
  0xbb   : > { %s5409_s24 = scalar_lea.vmem %s394_s1, 32  ;;  %p5417_p4 = scmp.lt.s32.totalorder %s394_s1, %s394_s1 }
  0xbc   : > { %p5410_p5 = scmp.ne.s32.totalorder %s394_s1, %s5409_s24  ;;  %p5418_p10 = scmp.lt.s32.totalorder %s5409_s24, %s5409_s24 }
  0xbe   : > { %p5412_p7 = pnand %p5410_p5, %p5872_p8  ;;  %p5419_p11 = por %p5418_p10, %p5417_p4 }
  0xc0   : > { %p5413_p9 = pneg %p5412_p7 }
  0xc2   : > { %p5420_p12 = pnand %p5419_p11, %p5413_p9 }
  0xc4   : > { %5423 = shalt.err (!%p5420_p12)
}
  0xc5   : > { %4939 = dma.hbm_to_vmem [thread:$0]  (!%p5856_p6), %s6537_s2, 32, %s394_s1, [#allocation9]  }
  0xc6   : > { %s5731_s17 = smov [#allocation13]   ;;  %s5732_s22 = smov [#allocation16]  }
  0xc7   : > { %s417_s27 = sshll.u32 %s5731_s17, 4  ;;  %s441_s25 = sshll.u32 %s5732_s22, 4  ;;  %s418_s27 = int_to_ptr.vmem [resolvable:$true] %s417_s27  ;;  %s442_s25 = int_to_ptr.vmem [resolvable:$true] %s441_s25 }
  0xc8   : > { %s5424_s29 = scalar_lea.hbm %s6496_s4, 32 }
  0xc9   : > { %p5425_p13 = scmp.ne.s32.totalorder %s6496_s4, %s5424_s29  ;;  %p5431_p3 = scmp.lt.u32.totalorder %s5424_s29, %s6496_s4 }
  0xcb   : > { %p5427_p0 = pnand %p5425_p13, %p5872_p8 }
  0xcd   : > { %p5428_p1 = pneg %p5427_p0 }
  0xcf   : > { %p5433_p2 = pnand %p5431_p3, %p5428_p1 }
  0xd1   : > { %5436 = shalt.err (!%p5433_p2)
}
  0xd2   : > { %s5437_s1 = scalar_lea.vmem %s418_s27, 32  ;;  %p5445_p4 = scmp.lt.s32.totalorder %s418_s27, %s418_s27 }
  0xd3   : > { %p5438_p5 = scmp.ne.s32.totalorder %s418_s27, %s5437_s1  ;;  %p5446_p10 = scmp.lt.s32.totalorder %s5437_s1, %s5437_s1 }
  0xd5   : > { %p5440_p7 = pnand %p5438_p5, %p5872_p8  ;;  %p5447_p11 = por %p5446_p10, %p5445_p4 }
  0xd7   : > { %p5441_p9 = pneg %p5440_p7 }
  0xd9   : > { %p5448_p12 = pnand %p5447_p11, %p5441_p9 }
  0xdb   : > { %5451 = shalt.err (!%p5448_p12)
}
  0xdc   : > { %4945 = dma.hbm_to_vmem [thread:$0]  (!%p5856_p6), %s6496_s4, 32, %s418_s27, [#allocation12]  }
  0xdd   : > { %s5452_s20 = scalar_lea.hbm %s6498_s6, 32 }
  0xde   : > { %p5453_p13 = scmp.ne.s32.totalorder %s6498_s6, %s5452_s20  ;;  %p5459_p3 = scmp.lt.u32.totalorder %s5452_s20, %s6498_s6 }
  0xe0   : > { %p5455_p0 = pnand %p5453_p13, %p5872_p8 }
  0xe2   : > { %p5456_p1 = pneg %p5455_p0 }
  0xe4   : > { %p5461_p2 = pnand %p5459_p3, %p5456_p1 }
  0xe6   : > { %5464 = shalt.err (!%p5461_p2)
}
  0xe7   : > { %s5465_s28 = scalar_lea.vmem %s442_s25, 32  ;;  %p5473_p4 = scmp.lt.s32.totalorder %s442_s25, %s442_s25 }
  0xe8   : > { %p5466_p5 = scmp.ne.s32.totalorder %s442_s25, %s5465_s28  ;;  %p5474_p10 = scmp.lt.s32.totalorder %s5465_s28, %s5465_s28 }
  0xea   : > { %p5468_p7 = pnand %p5466_p5, %p5872_p8  ;;  %p5475_p11 = por %p5474_p10, %p5473_p4 }
  0xec   : > { %p5469_p9 = pneg %p5468_p7 }
  0xee   : > { %p5476_p12 = pnand %p5475_p11, %p5469_p9 }
  0xf0   : > { %5479 = shalt.err (!%p5476_p12)
}
  0xf1   : > { %4951 = dma.hbm_to_vmem [thread:$0]  (!%p5856_p6), %s6498_s6, 32, %s442_s25, [#allocation15]  }
  0xf2   : > { %s5733_s1 = smov [#allocation19]   ;;  %s5734_s14 = smov [#allocation22]  }
  0xf3   : > { %s465_s26 = sshll.u32 %s5733_s1, 4  ;;  %s489_s17 = sshll.u32 %s5734_s14, 4  ;;  %s466_s26 = int_to_ptr.vmem [resolvable:$true] %s465_s26  ;;  %s490_s17 = int_to_ptr.vmem [resolvable:$true] %s489_s17 }
  0xf4   : > { %s5480_s3 = scalar_lea.hbm %s6500_s8, 32 }
  0xf5   : > { %p5481_p13 = scmp.ne.s32.totalorder %s6500_s8, %s5480_s3  ;;  %p5487_p3 = scmp.lt.u32.totalorder %s5480_s3, %s6500_s8 }
  0xf7   : > { %p5483_p0 = pnand %p5481_p13, %p5872_p8 }
  0xf9   : > { %p5484_p1 = pneg %p5483_p0 }
  0xfb   : > { %p5489_p2 = pnand %p5487_p3, %p5484_p1 }
  0xfd   : > { %5492 = shalt.err (!%p5489_p2)
}
  0xfe   : > { %s5493_s25 = scalar_lea.vmem %s466_s26, 32  ;;  %p5501_p4 = scmp.lt.s32.totalorder %s466_s26, %s466_s26 }
  0xff   : > { %p5494_p5 = scmp.ne.s32.totalorder %s466_s26, %s5493_s25  ;;  %p5502_p10 = scmp.lt.s32.totalorder %s5493_s25, %s5493_s25 }
 0x101   : > { %p5496_p7 = pnand %p5494_p5, %p5872_p8  ;;  %p5503_p11 = por %p5502_p10, %p5501_p4 }
 0x103   : > { %p5497_p9 = pneg %p5496_p7 }
 0x105   : > { %p5504_p12 = pnand %p5503_p11, %p5497_p9 }
 0x107   : > { %5507 = shalt.err (!%p5504_p12)
}
 0x108   : > { %4957 = dma.hbm_to_vmem [thread:$0]  (!%p5856_p6), %s6500_s8, 32, %s466_s26, [#allocation18]  }
 0x109   : > { %s5508_s22 = scalar_lea.hbm %s6502_s10, 16 }
 0x10a   : > { %p5509_p13 = scmp.ne.s32.totalorder %s6502_s10, %s5508_s22  ;;  %p5515_p3 = scmp.lt.u32.totalorder %s5508_s22, %s6502_s10 }
 0x10c   : > { %p5511_p0 = pnand %p5509_p13, %p5872_p8 }
 0x10e   : > { %p5512_p1 = pneg %p5511_p0 }
 0x110   : > { %p5517_p2 = pnand %p5515_p3, %p5512_p1 }
 0x112   : > { %5520 = shalt.err (!%p5517_p2)
}
 0x113   : > { %s5521_s19 = scalar_lea.vmem %s490_s17, 16  ;;  %s5528_s26 = scalar_lea.vmem %s490_s17, 32 }
 0x114   : > { %p5522_p5 = scmp.ne.s32.totalorder %s490_s17, %s5521_s19  ;;  %p5529_p4 = scmp.lt.s32.totalorder %s490_s17, %s490_s17 }
 0x115   : > { %p5530_p10 = scmp.lt.s32.totalorder %s5528_s26, %s5521_s19 }
 0x116   : > { %p5524_p7 = pnand %p5522_p5, %p5872_p8 }
 0x117   : > { %p5531_p11 = por %p5530_p10, %p5529_p4 }
 0x118   : > { %p5525_p9 = pneg %p5524_p7 }
 0x11a   : > { %p5532_p12 = pnand %p5531_p11, %p5525_p9 }
 0x11c   : > { %5535 = shalt.err (!%p5532_p12)
}
 0x11d   : > { %4963 = dma.hbm_to_vmem [thread:$0]  (!%p5856_p6), %s6502_s10, 16, %s490_s17, [#allocation21]  }
 0x11e   : > { %s5735_s27 = smov [#allocation25]   ;;  %s5736_s1 = smov [#allocation26]  }
 0x11f   : > { %s513_s24 = sshll.u32 %s5735_s27, 4  ;;  %s524_s14 = sshll.u32 %s5736_s1, 4  ;;  %s514_s24 = int_to_ptr.vmem [resolvable:$true] %s513_s24  ;;  %s525_s14 = int_to_ptr.vmem [resolvable:$true] %s524_s14 }
 0x120   : > { %s5536_s3 = scalar_lea.hbm %s6504_s12, 16 }
 0x121   : > { %p5537_p13 = scmp.ne.s32.totalorder %s6504_s12, %s5536_s3  ;;  %p5543_p3 = scmp.lt.u32.totalorder %s5536_s3, %s6504_s12 }
 0x123   : > { %p5539_p0 = pnand %p5537_p13, %p5872_p8 }
 0x125   : > { %p5540_p1 = pneg %p5539_p0 }
 0x127   : > { %p5545_p2 = pnand %p5543_p3, %p5540_p1 }
 0x129   : > { %5548 = shalt.err (!%p5545_p2)
}
 0x12a   : > { %s5549_s17 = scalar_lea.vmem %s514_s24, 16  ;;  %s5556_s28 = scalar_lea.vmem %s514_s24, 32 }
 0x12b   : > { %p5550_p5 = scmp.ne.s32.totalorder %s514_s24, %s5549_s17  ;;  %p5557_p4 = scmp.lt.s32.totalorder %s514_s24, %s514_s24 }
 0x12c   : > { %p5558_p10 = scmp.lt.s32.totalorder %s5556_s28, %s5549_s17 }
 0x12d   : > { %p5552_p7 = pnand %p5550_p5, %p5872_p8 }
 0x12e   : > { %p5559_p11 = por %p5558_p10, %p5557_p4 }
 0x12f   : > { %p5553_p9 = pneg %p5552_p7 }
 0x131   : > { %p5560_p12 = pnand %p5559_p11, %p5553_p9 }
 0x133   : > { %5563 = shalt.err (!%p5560_p12)
}
 0x134   : > { %4969 = dma.hbm_to_vmem [thread:$0]  (!%p5856_p6), %s6504_s12, 16, %s514_s24, [#allocation24]  }
 0x135   : > { %s5564_s20 = scalar_lea.hbm %s6505_s13, 16 }
 0x136   : > { %p5565_p13 = scmp.ne.s32.totalorder %s6505_s13, %s5564_s20  ;;  %p5571_p3 = scmp.lt.u32.totalorder %s5564_s20, %s6505_s13 }
 0x138   : > { %p5567_p0 = pnand %p5565_p13, %p5872_p8 }
 0x13a   : > { %p5568_p1 = pneg %p5567_p0 }
 0x13c   : > { %p5573_p2 = pnand %p5571_p3, %p5568_p1 }
 0x13e   : > { %5576 = shalt.err (!%p5573_p2)
}
 0x13f   : > { %s5577_s26 = scalar_lea.vmem %s525_s14, 16  ;;  %s5584_s24 = scalar_lea.vmem %s525_s14, 32 }
 0x140   : > { %p5578_p5 = scmp.ne.s32.totalorder %s525_s14, %s5577_s26  ;;  %p5585_p4 = scmp.lt.s32.totalorder %s525_s14, %s525_s14 }
 0x141   : > { %p5586_p10 = scmp.lt.s32.totalorder %s5584_s24, %s5577_s26 }
 0x142   : > { %p5580_p7 = pnand %p5578_p5, %p5872_p8 }
 0x143   : > { %p5587_p11 = por %p5586_p10, %p5585_p4 }
 0x144   : > { %p5581_p9 = pneg %p5580_p7 }
 0x146   : > { %p5588_p12 = pnand %p5587_p11, %p5581_p9 }
 0x148   : > { %5591 = shalt.err (!%p5588_p12)
}
 0x149   : > { %s6538_s25 = sld [smem:[#allocation39_spill]]  ;;  %s6539_s21 = sld [smem:[#allocation38_spill]] }
 0x14a   : > { %s6540_s27 = sld [smem:[#allocation40_spill]]  ;;  %s3857_s1 = sadd.s32 4294967294, %s5716_s16  }
 0x14b   : > { %4972 = dma.hbm_to_vmem [thread:$0]  (!%p5856_p6), %s6505_s13, 16, %s525_s14, [#allocation27]  }
 0x14c   : > { %s6130_s23 = sadd.s32 1, %s5716_s16   ;;  %s44_s22 = sadd.s32 1, %s5712_s15 }
 0x14d   : > { %s41_s20 = ssub.s32 %s5716_s16, %s6130_s23  ;;  %p52_p0 = scmp.eq.s32.totalorder %s5716_s16, 0 }
 0x14e   : > { %p42_p13 = scmp.eq.s32.totalorder %s41_s20, 0  ;;  %p360_p9 = scmp.eq.s32.totalorder %s3857_s1, 1 }
 0x14f   : > { %p51_p8 = scmp.ne.s32.totalorder %s5712_s15, %s6538_s25  ;;  %p57_p1 = scmp.ne.s32.totalorder %s6538_s25, %s6539_s21 }
 0x150   : > { %p354_p3 = scmp.eq.s32.totalorder %s6540_s27, 1  ;;  %p6541_p5 = scmp.eq.s32.totalorder %s6540_s27, 0 }
 0x151   : > { %s6142_s3 = scalar_select %p42_p13, %s5712_s15, %s44_s22  }
 0x152   : > { %p53_p2 = por %p52_p0, %p51_p8  ;;  %p6146_p7 = por %p6541_p5, %p57_p1 }
 0x153   : > { %p6150_p6 = por %p354_p3, %p51_p8  ;;  %p4994_p4 = scmp.lt.s32.totalorder %s5716_s16, 2 }
 0x154   : > { %s535_s30 = sand.u32 1, %s5712_s15   ;;  %p6156_p10 = por %p360_p9, %p57_p1 }
 0x155   : > { %s6543_s14 = scalar_select %p6150_p6, 1, 0 }
 0x156   : > { %s6544_s19 = scalar_select %p6156_p10, 1, 0 }
 0x157   : > { %s3873_s26 = sshll.u32 %s535_s30, 4  ;;  %s4001_s24 = sshll.u32 %s5716_s16, 8 }
 0x158   : > { %s6545_s25 = sld [smem:[#allocation42_spill]]  ;;  %s539_s27 = scalar_lea.vmem [#allocation5], %s3873_s26 }
 0x159   : > { %s546_s22 = sshll.u32 %s539_s27, 4  ;;  %p6166_p11 = pnand %p4994_p4, %p53_p2  ;;  %s6170_s22 = int_to_ptr.vmem [resolvable:$true] %s546_s22 }
 0x15a   : > { %s6172_s20 = scalar_lea.sflag [#allocation6], %s535_s30 }
 0x15b   : > { %p5594_p8 = pneg %p6166_p11 }
 0x15e   : > { %s6164_s21 = scalar_lea.hbm %s6545_s25, %s4001_s24  ;;  %s5597_s17 = scalar_lea.hbm %s6545_s25, 512 }
 0x15f   : > { %s5592_s2 = scalar_lea.hbm %s6164_s21, 256  ;;  %p5598_p1 = scmp.lt.u32.totalorder %s6164_s21, %s6545_s25 }
 0x160   : > { %p5593_p12 = scmp.ne.s32.totalorder %s6164_s21, %s5592_s2  ;;  %p5599_p3 = scmp.lt.u32.totalorder %s5597_s17, %s5592_s2 }
 0x161   : > { %p5601_p5 = scmp.lt.u32.totalorder %s5592_s2, %s6164_s21 }
 0x162   : > { %p5595_p13 = pnand %p5594_p8, %p5593_p12  ;;  %p5600_p2 = por %p5599_p3, %p5598_p1 }
 0x164   : > { %p5596_p0 = pneg %p5595_p13  ;;  %p5602_p9 = por %p5601_p5, %p5600_p2 }
 0x166   : > { %p5603_p4 = pnand %p5602_p9, %p5596_p0 }
 0x168   : > { %5606 = shalt.err (!%p5603_p4)
}
 0x169   : > { %s5607_s30 = scalar_lea.vmem %s6170_s22, 256  ;;  %s5737_s26 = smov [#allocation5]  }
 0x16a   : > { %p5608_p12 = scmp.ne.s32.totalorder %s6170_s22, %s5607_s30  ;;  %s5612_s24 = sshll.u32 %s5737_s26, 4  ;;  %s5613_s24 = int_to_ptr.vmem [resolvable:$false] %s5612_s24 }
 0x16b   : > { %s5614_s28 = scalar_lea.vmem %s5613_s24, 512  ;;  %p5615_p6 = scmp.lt.s32.totalorder %s6170_s22, %s5613_s24 }
 0x16c   : > { %p5610_p13 = pnand %p5608_p12, %p5594_p8  ;;  %p5616_p1 = scmp.lt.s32.totalorder %s5614_s28, %s5607_s30 }
 0x16e   : > { %p5611_p10 = pneg %p5610_p13  ;;  %p5617_p3 = por %p5616_p1, %p5615_p6 }
 0x170   : > { %p5618_p2 = pnand %p5617_p3, %p5611_p10 }
 0x172   : > { %5621 = shalt.err (!%p5618_p2)
}
 0x173   : > { %4976 = dma.hbm_to_vmem [thread:$0]  (!%p6166_p11), %s6164_s21, 256, %s6170_s22, %s6172_s20, %s6536_s0, %s6536_s0, %s6535_s18  }
 0x174   : > { %s6547_s2 = sld [smem:[#allocation41_spill]] }
 0x17a   : > { %p6548_p8 = scmp.ne.s32.totalorder %s6547_s2, 0 }
 0x17b   : > { %s6549_s17 = sld [smem:[#allocation39_spill]] (!%p6548_p8) }
 0x17c   : > { %558 = sbr.rel (%p6548_p8) target bundleno = 2664 (0xa68), region = 76 }
 0x181   : > { %s6206_s27 = sand.u32 (!%p6548_p8), 1, %s6549_s17  }
 0x182   : > { %s3877_s30 = sshll.u32 (!%p6548_p8), %s6206_s27, 4  ;;  %s561_s26 = scalar_lea.sflag (!%p6548_p8), [#allocation6], %s6206_s27 }
 0x183   : > { %s6212_s1 = scalar_lea.vmem [#allocation5], %s3877_s30 }
 0x184   : > { %5667 = dma.done.wait (%p6146_p7), %s561_s26, 256  }
 0x185   : > { %5669 = vsyncadd (%p6146_p7), %s561_s26, 4294967040  ;;  %s6550_s18 = sld [smem:[#allocation40_spill]] }
 0x18b   : > { %p6551_p6 = scmp.eq.s32.totalorder %s6550_s18, 0 }
 0x18d   : > { %5671 = dma.done.wait (%p6551_p6), [#allocation9], 6176   ;;  %p6552_p10 = pmov %p6551_p6 }
 0x18e   : > { %p6553_p11 = pmov %p6551_p6 }
 0x18f   : > { %5673 = vsyncadd (%p6552_p10), [#allocation9], 4294961120 }
 0x190   : > { %5675 = dma.done.wait (%p6553_p11), [#allocation12], 4128   ;;  %p6554_p0 = pmov %p6551_p6 }
 0x192   : > { %5677 = vsyncadd (%p6554_p0), [#allocation12], 4294963168  ;;  %p6555_p5 = pmov %p6554_p0 }
 0x193   : > { %p6556_p9 = pmov %p6554_p0 }
 0x194   : > { %5679 = dma.done.wait (%p6555_p5), [#allocation15], 40992  }
 0x195   : > { %5681 = vsyncadd (%p6556_p9), [#allocation15], 4294926304  ;;  %p6557_p7 = pmov %p6554_p0 }
 0x196   : > { %p6558_p4 = pmov %p6554_p0 }
 0x197   : > { %5683 = dma.done.wait (%p6557_p7), [#allocation18], 40992  }
 0x198   : > { %5685 = vsyncadd (%p6558_p4), [#allocation18], 4294926304  ;;  %p6559_p12 = pmov %p6554_p0 }
 0x199   : > { %p6560_p13 = pmov %p6554_p0 }
 0x19a   : > { %5687 = dma.done.wait (%p6559_p12), [#allocation21], 2064  }
 0x19b   : > { %5689 = vsyncadd (%p6560_p13), [#allocation21], 4294965232  ;;  %p6561_p1 = pmov %p6554_p0 }
 0x19c   : > { %p6562_p3 = pmov %p6554_p0 }
 0x19d   : > { %5691 = dma.done.wait (%p6561_p1), [#allocation24], 2064  }
 0x19e   : > { %5693 = vsyncadd (%p6562_p3), [#allocation24], 4294965232  ;;  %p6563_p2 = pmov %p6554_p0 }
 0x19f   : > { %p6564_p8 = pmov %p6554_p0 }
 0x1a0   : > { %5695 = dma.done.wait (%p6563_p2), [#allocation27], 16  }
 0x1a1   : > { %5697 = vsyncadd (%p6564_p8), [#allocation27], 4294967280  ;;  %v5738_v0 = vmov 0   ;;  %v5065_v1 = vld [vmem:[#allocation8 + $0x84] ss:$8 sps:$4 sm:$0xff]   ;;  %vm664_vm0 = vcmask 1040384  }
 0x1a2   : > { %882 = vmatprep.mubr.bf16.mxu0 %v5738_v0  ;;  %v5067_v2 = vld [vmem:[#allocation8 + $0x80] ss:$8 sps:$4 sm:$0xff]   ;;  %850 = vmatprep.subr.bf16.mxu0 %v5065_v1  ;;  %v5068_v3 = vld [vmem:[#allocation8 + $0x94] ss:$8 sps:$4 sm:$0xff]   ;;  %v5070_v4 = vld [vmem:[#allocation8 + $0x90] ss:$8 sps:$4 sm:$0xff]  }
 0x1a3   : > { %851 = vmatpush1.bf16.msra.mxu0 %v5067_v2  ;;  %v5071_v5 = vld [vmem:[#allocation8 + $0xa4] ss:$8 sps:$4 sm:$0xff]   ;;  %vm665_vm1 = vsmask.f32 256  ;;  %v5073_v6 = vld [vmem:[#allocation8 + $0xa0] ss:$8 sps:$4 sm:$0xff]  }
 0x1a4   : > { %852 = vmatprep.subr.bf16.mxu0 %v5068_v3  ;;  %vm670_vm2 = vsmask.f32 7938  ;;  %v5074_v7 = vld [vmem:[#allocation8 + $0xb4] ss:$8 sps:$4 sm:$0xff]   ;;  %vm6248_vm3 = vmand %vm664_vm0, %vm665_vm1  ;;  %v5076_v10 = vld [vmem:[#allocation8 + $0xb0] ss:$8 sps:$4 sm:$0xff]  }
 0x1a5   : > { %vm6253_vm4 = vmand %vm664_vm0, %vm670_vm2  ;;  %v5077_v11 = vld [vmem:[#allocation8 + $0xc4] ss:$8 sps:$4 sm:$0xff]   ;;  %vm681_vm5 = vsmask.f32 4368  ;;  %v5079_v19 = vld [vmem:[#allocation8 + $0xc0] ss:$8 sps:$4 sm:$0xff]  }
 0x1a6   : > { %v662_v12 = vld [vmem:[%s6212_s1] sm:$0xff]  ;;  %v663_v13 = vld [vmem:[%s6212_s1 + $0x8] sm:$0xff]  ;;  %vm703_vm6 = vcmask 1043456   ;;  %vm682_vm7 = vmor %vm665_vm1, %vm681_vm5  ;;  %vm756_vm9 = vsmask.f32 7424  ;;  %vm1038_vm10 = vcmask 1046528  }
 0x1a7   : > { %853 = vmatpush1.bf16.msra.mxu0 %v5070_v4  ;;  %v667_v14 = vld [vmem:[#allocation2] sm:$0x1]  ;;  %v672_v16 = vld [vmem:[#allocation2 + $0x8] sm:$0x1]  ;;  %v4002_v17 = vpack.c.bf16 %v662_v12, %v662_v12  ;;  %v4003_v18 = vpack.c.bf16 %v663_v13, %v663_v13  ;;  %v5080_v25 = vld [vmem:[#allocation8 + $0xd4] ss:$8 sps:$4 sm:$0xff]  }
 0x1a8   : > { %854 = vmatprep.subr.bf16.mxu0 %v5071_v5  ;;  %v668_v15 = vsel %vm6248_vm3, 0, %v667_v14  ;;  %v673_v20 = vsel %vm6253_vm4, 0, %v672_v16  ;;  %vm6267_vm8 = vmand %vm703_vm6, %vm670_vm2  ;;  %v5082_v29 = vld [vmem:[#allocation8 + $0xd0] ss:$8 sps:$4 sm:$0xff]   ;;  %v5083_v34 = vld [vmem:[#allocation8 + $0xe4] ss:$8 sps:$4 sm:$0xff]  }
 0x1a9   : > { %669 = vst [vmem:[#allocation2] sm:$0x1] %v668_v15  ;;  %674 = vst [vmem:[#allocation2 + $0x8] sm:$0x1] %v673_v20  ;;  %v684_v21 = vshrl.u32 %v4002_v17, 16  ;;  %v687_v22 = vshll.u32 %v4002_v17, 16 }
 0x1aa   : > { %v692_v23 = vshrl.u32 %v4003_v18, 16  ;;  %v695_v24 = vshll.u32 %v4003_v18, 16  ;;  %v5085_v39 = vld [vmem:[#allocation8 + $0xe0] ss:$8 sps:$4 sm:$0xff]   ;;  %v5086_v41 = vld [vmem:[#allocation8 + $0xf4] ss:$8 sps:$4 sm:$0xff]  }
 0x1ab   : > { %855 = vmatpush1.bf16.msra.mxu0 %v5073_v6  ;;  %v686_v26 = vrot.slane %v684_v21, 7  ;;  %v5088_v42 = vld [vmem:[#allocation8 + $0xf0] ss:$8 sps:$4 sm:$0xff]   ;;  %v5091_v43 = vld [vmem:[#allocation8 + $0x4] ss:$8 sps:$4 sm:$0xff]   ;;  %vm1547_vm15 = vcmask 1041408  }
 0x1ac   : > { %856 = vmatprep.subr.bf16.mxu0 %v5074_v7  ;;  %v694_v27 = vrot.slane %v692_v23, 7  ;;  %v5089_v51 = vld [vmem:[#allocation8] ss:$8 sps:$4 sm:$0xff]   ;;  %v5096_v54 = vld [vmem:[#allocation8 + $0x14] ss:$8 sps:$4 sm:$0xff]   ;;  %vm1951_vm0 = vcmask 1045504  }
 0x1ad   : > { %v689_v30 = vor.u32 %v687_v22, %v686_v26  ;;  %v690_v31 = vrot.slane %v686_v26, 4  ;;  %v5140_v59 = vld [vmem:[#allocation11 + $0x4] ss:$8 sps:$4 sm:$0xff]   ;;  %v5142_v60 = vld [vmem:[#allocation11] ss:$8 sps:$4 sm:$0xff]   ;;  %vm2120_vm1 = vcmask 1044480  }
 0x1ae   : > { %v697_v32 = vor.u32 %v695_v24, %v694_v27  ;;  %v699_v33 = vrot.slane %v694_v27, 4  ;;  %v5143_v61 = vld [vmem:[#allocation11 + $0x14] ss:$8 sps:$4 sm:$0xff]   ;;  %1496 = vmatprep.subr.bf16.mxu1 %v5140_v59  ;;  %v5145_v2 = vld [vmem:[#allocation11 + $0x10] ss:$8 sps:$4 sm:$0xff]   ;;  %s4004_s0 = sshll.u32 %s6550_s18, 8 }
 0x1af   : > { %857 = vmatpush1.bf16.msra.mxu0 %v5076_v10  ;;  %v5094_v63 = vld [vmem:[#allocation8 + $0x10] ss:$8 sps:$4 sm:$0xff]   ;;  %v5099_v3 = vld [vmem:[#allocation8 + $0x24] ss:$8 sps:$4 sm:$0xff]   ;;  %1497 = vmatpush1.bf16.msra.mxu1 %v5142_v60  ;;  %v5097_v5 = vld [vmem:[#allocation8 + $0x20] ss:$8 sps:$4 sm:$0xff]  }
 0x1b0   : > { %858 = vmatprep.subr.bf16.mxu0 %v5077_v11  ;;  %v698_v35 = vsel %vm682_vm7, %v690_v31, %v697_v32  ;;  %v705_v36 = vld [vmem:[#allocation2] sm:$0xf]  ;;  %v709_v38 = vld [vmem:[#allocation2 + $0x8] sm:$0x1]  ;;  %1498 = vmatprep.subr.bf16.mxu1 %v5143_v61  ;;  %v5102_v6 = vld [vmem:[#allocation8 + $0x34] ss:$8 sps:$4 sm:$0xff]  }
 0x1b1   : > { %v706_v37 = vsel %vm6267_vm8, %v689_v30, %v705_v36  ;;  %708 = vst [vmem:[#allocation2 + $0x4] sm:$0xf] %v698_v35  ;;  %v710_v40 = vsel %vm6248_vm3, %v699_v33, %v709_v38  ;;  %v5100_v7 = vld [vmem:[#allocation8 + $0x30] ss:$8 sps:$4 sm:$0xff]   ;;  %v5105_v8 = vld [vmem:[#allocation8 + $0x44] ss:$8 sps:$4 sm:$0xff]  }
 0x1b2   : > { %707 = vst [vmem:[#allocation2] sm:$0xf] %v706_v37  ;;  %711 = vst [vmem:[#allocation2 + $0x8] sm:$0x1] %v710_v40  ;;  %v5103_v9 = vld [vmem:[#allocation8 + $0x40] ss:$8 sps:$4 sm:$0xff]  }
 0x1b3   : > { %859 = vmatpush1.bf16.msra.mxu0 %v5079_v19  ;;  %1499 = vmatpush1.bf16.msra.mxu1 %v5145_v2  ;;  %v5108_v10 = vld [vmem:[#allocation8 + $0x54] ss:$8 sps:$4 sm:$0xff]   ;;  %v5106_v11 = vld [vmem:[#allocation8 + $0x50] ss:$8 sps:$4 sm:$0xff]   ;;  %v5111_v12 = vld [vmem:[#allocation8 + $0x64] ss:$8 sps:$4 sm:$0xff]  }
 0x1b4   : > { %860 = vmatprep.subr.bf16.mxu0 %v5080_v25  ;;  %v5109_v13 = vld [vmem:[#allocation8 + $0x60] ss:$8 sps:$4 sm:$0xff]   ;;  %v5114_v14 = vld [vmem:[#allocation8 + $0x74] ss:$8 sps:$4 sm:$0xff]   ;;  %v5112_v15 = vld [vmem:[#allocation8 + $0x70] ss:$8 sps:$4 sm:$0xff]  }
 0x1b5   : > { %v5117_v16 = vld [vmem:[#allocation8 + $0x104] ss:$8 sps:$4 sm:$0xff]   ;;  %v5115_v17 = vld [vmem:[#allocation8 + $0x100] ss:$8 sps:$4 sm:$0xff]   ;;  %v5120_v18 = vld [vmem:[#allocation8 + $0x114] ss:$8 sps:$4 sm:$0xff]  }
 0x1b6   : > { %v5118_v19 = vld [vmem:[#allocation8 + $0x110] ss:$8 sps:$4 sm:$0xff]   ;;  %v5123_v20 = vld [vmem:[#allocation8 + $0x124] ss:$8 sps:$4 sm:$0xff]   ;;  %v5121_v21 = vld [vmem:[#allocation8 + $0x120] ss:$8 sps:$4 sm:$0xff]  }
 0x1b7   : > { %861 = vmatpush1.bf16.msra.mxu0 %v5082_v29  ;;  %v5126_v22 = vld [vmem:[#allocation8 + $0x134] ss:$8 sps:$4 sm:$0xff]   ;;  %v5124_v23 = vld [vmem:[#allocation8 + $0x130] ss:$8 sps:$4 sm:$0xff]   ;;  %v5129_v24 = vld [vmem:[#allocation8 + $0x144] ss:$8 sps:$4 sm:$0xff]  }
 0x1b8   : > { %862 = vmatprep.subr.bf16.mxu0 %v5083_v34  ;;  %v713_v44 = vld [vmem:[#allocation2 + $0x4] sm:$0xf]  ;;  %v5132_v26 = vld [vmem:[#allocation8 + $0x154] ss:$8 sps:$4 sm:$0xff]   ;;  %v5130_v27 = vld [vmem:[#allocation8 + $0x150] ss:$8 sps:$4 sm:$0xff]  }
 0x1b9   : > { %v712_v45 = vld [vmem:[#allocation2] sm:$0xf]  ;;  %v5093_v47 = vld [vmem:[#allocation2 + $0x8] ss:$0 sps:$4 sm:$0x11]   ;;  %v1642_v60 = vld [vmem:[#allocation14 + $0x218] sm:$0xff] }
 0x1ba   : > { %v3894_v46 = vcombine.low %v712_v45, %v713_v44  ;;  %v765_v50 = vshll.u32 %v5093_v47, 16  ;;  %v1017_v55 = vld [vmem:[#allocation2] sm:$0xe]  ;;  %v1040_v58 = vrot.slane %v5093_v47, 1  ;;  %v5127_v25 = vld [vmem:[#allocation8 + $0x140] ss:$8 sps:$4 sm:$0xff]  }
 0x1bb   : > { %863 = vmatpush1.bf16.msra.mxu0 %v5085_v39  ;;  %v3928_v57 = vcombine.low %v1017_v55, %v713_v44  ;;  %v5135_v28 = vld [vmem:[#allocation8 + $0x164] ss:$8 sps:$4 sm:$0xff]   ;;  %v5138_v29 = vld [vmem:[#allocation8 + $0x174] ss:$8 sps:$4 sm:$0xff]   ;;  %v5136_v30 = vld [vmem:[#allocation8 + $0x170] ss:$8 sps:$4 sm:$0xff]  }
 0x1bc   : > { %864 = vmatprep.subr.bf16.mxu0 %v5086_v41  ;;  %v758_v48 = vshrl.u32 %v3894_v46, 16  ;;  %v760_v49 = vshll.u32 %v3894_v46, 16  ;;  %v767_v53 = vrot.slane %v765_v50, 1  ;;  %v5146_v31 = vld [vmem:[#allocation11 + $0x24] ss:$8 sps:$4 sm:$0xff]   ;;  %s660_s29 = scalar_lea.vmem [#allocation28], %s3877_s30 }
 0x1bd   : > { %v1039_v1 = vrot.slane %v3928_v57, 1  ;;  %v5148_v32 = vld [vmem:[#allocation11 + $0x20] ss:$8 sps:$4 sm:$0xff]   ;;  %1500 = vmatprep.subr.bf16.mxu1 %v5146_v31  ;;  %v5149_v33 = vld [vmem:[#allocation11 + $0x34] ss:$8 sps:$4 sm:$0xff]   ;;  %s3660_s21 = sshll.u32 %s660_s29, 4  ;;  %s6448_s21 = int_to_ptr.vmem [resolvable:$true] %s3660_s21 }
 0x1be   : > { %v762_v52 = vrot.slane %v760_v49, 1  ;;  %1501 = vmatpush1.bf16.msra.mxu1 %v5148_v32  ;;  %v5151_v34 = vld [vmem:[#allocation11 + $0x30] ss:$8 sps:$4 sm:$0xff]   ;;  %v5152_v35 = vld [vmem:[#allocation11 + $0x44] ss:$8 sps:$4 sm:$0xff]   ;;  %s6571_s24 = sld [smem:[#allocation46_spill]] }
 0x1bf   : > { %865 = vmatpush1.bf16.msra.mxu0 %v5088_v42  ;;  %v1041_v4 = vsel %vm1038_vm10, %v1039_v1, %v1040_v58  ;;  %1502 = vmatprep.subr.bf16.mxu1 %v5149_v33  ;;  %v5154_v36 = vld [vmem:[#allocation11 + $0x40] ss:$8 sps:$4 sm:$0xff]   ;;  %v5155_v37 = vld [vmem:[#allocation11 + $0x54] ss:$8 sps:$4 sm:$0xff]   ;;  %v5157_v38 = vld [vmem:[#allocation11 + $0x50] ss:$8 sps:$4 sm:$0xff]  }
 0x1c0   : > { %974 = vmatprep.subr.bf16.mxu0 %v5091_v43  ;;  %v763_v56 = vor.u32 %v762_v52, %v758_v48  ;;  %v5158_v39 = vld [vmem:[#allocation11 + $0x64] ss:$8 sps:$4 sm:$0xff]   ;;  %v5160_v40 = vld [vmem:[#allocation11 + $0x60] ss:$8 sps:$4 sm:$0xff]   ;;  %v5161_v41 = vld [vmem:[#allocation11 + $0x74] ss:$8 sps:$4 sm:$0xff]  }
 0x1c1   : > { %v5163_v42 = vld [vmem:[#allocation11 + $0x70] ss:$8 sps:$4 sm:$0xff]   ;;  %v5164_v43 = vld [vmem:[#allocation11 + $0x84] ss:$8 sps:$4 sm:$0xff]   ;;  %v5166_v44 = vld [vmem:[#allocation11 + $0x80] ss:$8 sps:$4 sm:$0xff]  }
 0x1c2   : > { %v768_v62 = vsel %vm756_vm9, %v763_v56, %v767_v53  ;;  %1503 = vmatpush1.bf16.msra.mxu1 %v5151_v34  ;;  %v5167_v45 = vld [vmem:[#allocation11 + $0x94] ss:$8 sps:$4 sm:$0xff]   ;;  %v5170_v47 = vld [vmem:[#allocation11 + $0xa4] ss:$8 sps:$4 sm:$0xff]   ;;  %v5172_v48 = vld [vmem:[#allocation11 + $0xa0] ss:$8 sps:$4 sm:$0xff]  }
 0x1c3   : > { %883 = vmatmul.mubr.bf16.vlgmr.msra.gmra.mrb[0].mxu0 %v768_v62  ;;  %1504 = vmatprep.subr.bf16.mxu1 %v5152_v35  ;;  %v5173_v49 = vld [vmem:[#allocation11 + $0xb4] ss:$8 sps:$4 sm:$0xff]   ;;  %v5175_v50 = vld [vmem:[#allocation11 + $0xb0] ss:$8 sps:$4 sm:$0xff]   ;;  %v5178_v52 = vld [vmem:[#allocation11 + $0xc0] ss:$8 sps:$4 sm:$0xff]   ;;  %v1172_v62 = vlaneseq }
 0x1c4   : > { %975 = vmatpush1.bf16.msra.mxu0 %v5089_v51  ;;  %1006 = vmatprep.mubr.bf16.mxu0 %v5738_v0  ;;  %v5176_v51 = vld [vmem:[#allocation11 + $0xc4] ss:$8 sps:$4 sm:$0xff]   ;;  %v5179_v53 = vld [vmem:[#allocation11 + $0xd4] ss:$8 sps:$4 sm:$0xff]   ;;  %v5184_v56 = vld [vmem:[#allocation11 + $0xe0] ss:$8 sps:$4 sm:$0xff]   ;;  %s6446_s28 = scalar_lea.hbm %s6571_s24, %s4004_s0 }
 0x1c5   : > { %976 = vmatprep.subr.bf16.mxu0 %v5096_v54  ;;  %v5181_v54 = vld [vmem:[#allocation11 + $0xd0] ss:$8 sps:$4 sm:$0xff]   ;;  %v5182_v55 = vld [vmem:[#allocation11 + $0xe4] ss:$8 sps:$4 sm:$0xff]   ;;  %v5185_v57 = vld [vmem:[#allocation11 + $0xf4] ss:$8 sps:$4 sm:$0xff]  }
 0x1c6   : > { %1505 = vmatpush1.bf16.msra.mxu1 %v5154_v36  ;;  %v5187_v58 = vld [vmem:[#allocation11 + $0xf0] ss:$8 sps:$4 sm:$0xff]   ;;  %v1170_v2 = vld [vmem:[#allocation10] sm:$0x3]  ;;  %s3647_s2 = scalar_lea.sflag [#allocation7], %s6206_s27  ;;  %s5622_s17 = scalar_lea.vmem %s6448_s21, 256 }
 0x1c7   : > { %1506 = vmatprep.subr.bf16.mxu1 %v5155_v37  ;;  %v1640_v59 = vld [vmem:[#allocation14 + $0x208] sm:$0xff]  ;;  %p5623_p6 = scmp.ne.s32.totalorder %s6448_s21, %s5622_s17  ;;  %p6572_p10 = scmp.ne.s32.totalorder %s6543_s14, 0 }
 0x1c8   : > { %977 = vmatpush1.bf16.msra.mxu0 %v5094_v63  ;;  %v4133_v61 = vpack.c.bf16 %v1642_v60, %v1640_v59  ;;  %v1173_v63 = vshrl.u32 %v1172_v62, 7  ;;  %s5741_s30 = smov [#allocation28]  }
 0x1c9   : > { %978 = vmatprep.subr.bf16.mxu0 %v5099_v3  ;;  %p5624_p11 = pnand %p5623_p6, %p6572_p10  ;;  %s5626_s26 = sshll.u32 %s5741_s30, 4  ;;  %s5627_s26 = int_to_ptr.vmem [resolvable:$false] %s5626_s26 }
 0x1ca   : > { %1507 = vmatpush1.bf16.msra.mxu1 %v5157_v38  ;;  %v6278_v1 = vsub.s32 0, %v1173_v63  ;;  %v6280_v3 = vsub.s32 1, %v1173_v63  ;;  %p5629_p5 = scmp.lt.s32.totalorder %s6448_s21, %s5627_s26 }
 0x1cb   : > { %1508 = vmatprep.subr.bf16.mxu1 %v5158_v39  ;;  %p5625_p0 = pneg %p5624_p11 }
 0x1cc   : > { %979 = vmatpush1.bf16.msra.mxu0 %v5097_v5  ;;  %v1179_v5 = vrot.slane %v1170_v2, %v6280_v3 }
 0x1cd   : > { %980 = vmatprep.subr.bf16.mxu0 %v5102_v6 }
 0x1ce   : > { %1509 = vmatpush1.bf16.msra.mxu1 %v5160_v40 }
 0x1cf   : > { %1510 = vmatprep.subr.bf16.mxu1 %v5161_v41 }
 0x1d0   : > { %981 = vmatpush1.bf16.msra.mxu0 %v5100_v7 }
 0x1d1   : > { %982 = vmatprep.subr.bf16.mxu0 %v5105_v8 }
 0x1d2   : > { %1511 = vmatpush1.bf16.msra.mxu1 %v5163_v42 }
 0x1d3   : > { %1512 = vmatprep.subr.bf16.mxu1 %v5164_v43 }
 0x1d4   : > { %983 = vmatpush1.bf16.msra.mxu0 %v5103_v9 }
 0x1d5   : > { %984 = vmatprep.subr.bf16.mxu0 %v5108_v10 }
 0x1d6   : > { %1513 = vmatpush1.bf16.msra.mxu1 %v5166_v44 }
 0x1d7   : > { %1514 = vmatprep.subr.bf16.mxu1 %v5167_v45 }
 0x1d8   : > { %985 = vmatpush1.bf16.msra.mxu0 %v5106_v11 }
 0x1d9   : > { %986 = vmatprep.subr.bf16.mxu0 %v5111_v12 }
 0x1dc   : > { %987 = vmatpush1.bf16.msra.mxu0 %v5109_v13 }
 0x1dd   : > { %988 = vmatprep.subr.bf16.mxu0 %v5114_v14 }
 0x1e0   : > { %989 = vmatpush1.bf16.msra.mxu0 %v5112_v15 }
 0x1e1   : > { %1123 = vmatprep.subr.bf16.mxu0 %v5117_v16 }
 0x1e3   : > { %1007 = vmatmul.mubr.bf16.vlgmr.msra.gmra.mrb[0].mxu0 %v3894_v46  ;;  %v5169_v46 = vld [vmem:[#allocation11 + $0x90] ss:$8 sps:$4 sm:$0xff]  }
 0x1e4   : > { %1124 = vmatpush1.bf16.msra.mxu0 %v5115_v17  ;;  %1155 = vmatprep.mubr.bf16.mxu0 %v5738_v0  ;;  %v5133_v0 = vld [vmem:[#allocation8 + $0x160] ss:$8 sps:$4 sm:$0xff]  }
 0x1e5   : > { %1125 = vmatprep.subr.bf16.mxu0 %v5120_v18  ;;  %1515 = vmatpush1.bf16.msra.mxu1 %v5169_v46 }
 0x1e6   : > { %1516 = vmatprep.subr.bf16.mxu1 %v5170_v47 }
 0x1e8   : > { %1126 = vmatpush1.bf16.msra.mxu0 %v5118_v19 }
 0x1e9   : > { %1127 = vmatprep.subr.bf16.mxu0 %v5123_v20  ;;  %1517 = vmatpush1.bf16.msra.mxu1 %v5172_v48 }
 0x1ea   : > { %1518 = vmatprep.subr.bf16.mxu1 %v5173_v49 }
 0x1ec   : > { %1128 = vmatpush1.bf16.msra.mxu0 %v5121_v21 }
 0x1ed   : > { %1129 = vmatprep.subr.bf16.mxu0 %v5126_v22  ;;  %1519 = vmatpush1.bf16.msra.mxu1 %v5175_v50 }
 0x1ee   : > { %1520 = vmatprep.subr.bf16.mxu1 %v5176_v51 }
 0x1f0   : > { %1130 = vmatpush1.bf16.msra.mxu0 %v5124_v23 }
 0x1f1   : > { %1131 = vmatprep.subr.bf16.mxu0 %v5129_v24  ;;  %1521 = vmatpush1.bf16.msra.mxu1 %v5178_v52 }
 0x1f2   : > { %1522 = vmatprep.subr.bf16.mxu1 %v5179_v53 }
 0x1f4   : > { %1132 = vmatpush1.bf16.msra.mxu0 %v5127_v25 }
 0x1f5   : > { %1133 = vmatprep.subr.bf16.mxu0 %v5132_v26  ;;  %1523 = vmatpush1.bf16.msra.mxu1 %v5181_v54 }
 0x1f6   : > { %1524 = vmatprep.subr.bf16.mxu1 %v5182_v55 }
 0x1f8   : > { %1134 = vmatpush1.bf16.msra.mxu0 %v5130_v27 }
 0x1f9   : > { %1135 = vmatprep.subr.bf16.mxu0 %v5135_v28  ;;  %1525 = vmatpush1.bf16.msra.mxu1 %v5184_v56 }
 0x1fa   : > { %1526 = vmatprep.subr.bf16.mxu1 %v5185_v57 }
 0x1fc   : > { %1136 = vmatpush1.bf16.msra.mxu0 %v5133_v0 }
 0x1fd   : > { %1137 = vmatprep.subr.bf16.mxu0 %v5138_v29  ;;  %1527 = vmatpush1.bf16.msra.mxu1 %v5187_v58 }
 0x1fe   : > { %4134 = vmatprep.subr.bf16.mxu1 %v4133_v61 }
 0x200   : > { %1138 = vmatpush1.bf16.msra.mxu0 %v5136_v30 }
 0x203   : > { %1156 = vmatmul.mubr.bf16.vlgmr.msra.gmra.mrb[0].mxu0 %v1041_v4  ;;  %v1175_v4 = vrot.slane %v1170_v2, %v6278_v1 }
 0x2d6   : > { %v1157_v6 = vpop.f32.mrb[0].mxu0 }
 0x2d7   : > { %v6284_v7 = vadd.f32 %v1175_v4, %v1157_v6  ;;  %v1159_v8 = vpop.f32.mrb[1].mxu0 }
 0x2d8   : > { %v6286_v9 = vadd.f32 %v1179_v5, %v1159_v8  ;;  %v1161_v10 = vpop.f32.mrb[2].mxu0 }
 0x2d9   : > { %v6289_v11 = vmul.f32 0.70710677, %v6284_v7  ;;  %v6291_v12 = vadd.f32 %v1175_v4, %v1161_v10  ;;  %v1163_v13 = vpop.f32.mrb[3].mxu0 }
 0x2da   : > { %v6294_v14 = vmul.f32 0.70710677, %v6286_v9  ;;  %v6296_v15 = vadd.f32 %v1179_v5, %v1163_v13 }
 0x2db   : > { %v1198_v16 = vand.u32 2147483647, %v6289_v11  ;;  %v6300_v17 = vmul.f32 0.70710677, %v6291_v12  ;;  %vm1190_vm11 = vcmp.ge.f32.partialorder %v6289_v11, 0.0 }
 0x2dc   : > { %v1199_v18 = vand.u32 2147483647, %v6294_v14  ;;  %v6304_v19 = vmul.f32 0.70710677, %v6296_v15  ;;  %vm1191_vm12 = vcmp.ge.f32.partialorder %v6294_v14, 0.0 }
 0x2dd   : > { %v1202_v20 = vmul.f32 0.3275911, %v1198_v16  ;;  %v1200_v21 = vand.u32 2147483647, %v6300_v17  ;;  %v1250_v29 = vsub.f32 0.0, %v1198_v16  ;;  %vm1192_vm13 = vcmp.ge.f32.partialorder %v6300_v17, 0.0 }
 0x2de   : > { %v1203_v22 = vmul.f32 0.3275911, %v1199_v18  ;;  %v1201_v26 = vand.u32 2147483647, %v6304_v19  ;;  %v1251_v30 = vsub.f32 0.0, %v1199_v18  ;;  %vm1193_vm14 = vcmp.ge.f32.partialorder %v6304_v19, 0.0 }
 0x2df   : > { %v1206_v23 = vadd.f32 1.0, %v1202_v20  ;;  %v1204_v24 = vmul.f32 0.3275911, %v1200_v21  ;;  %v1254_v32 = vmul.f32 %v1250_v29, %v1198_v16  ;;  %v1252_v33 = vsub.f32 0.0, %v1200_v21 }
 0x2e0   : > { %v1207_v25 = vadd.f32 1.0, %v1203_v22  ;;  %v1205_v28 = vmul.f32 0.3275911, %v1201_v26  ;;  %v1255_v36 = vmul.f32 %v1251_v30, %v1199_v18  ;;  %v1253_v37 = vsub.f32 0.0, %v1201_v26 }
 0x2e1   : > { %5204 = vrcp.f32 %v1206_v23  ;;  %v1208_v27 = vadd.f32 1.0, %v1204_v24  ;;  %v1258_v41 = vmul.f32 1.442695, %v1254_v32  ;;  %v1256_v42 = vmul.f32 %v1252_v33, %v1200_v21 }
 0x2e2   : > { %5206 = vrcp.f32 %v1207_v25  ;;  %v1209_v0 = vadd.f32 1.0, %v1205_v28  ;;  %v1260_v45 = vmul.f32 1.442695, %v1255_v36  ;;  %v1257_v48 = vmul.f32 %v1253_v37, %v1201_v26 }
 0x2e3   : > { %5208 = vrcp.f32 %v1208_v27  ;;  %v1262_v53 = vmul.f32 1.442695, %v1256_v42  ;;  %v1278_v19 = vmul.f32 0.5, %v6284_v7 }
 0x2e4   : > { %5210 = vrcp.f32 %v1209_v0  ;;  %v1264_v58 = vmul.f32 1.442695, %v1257_v48 }
 0x2e5   : > { %5212 = vpow2.f32 %v1258_v41 }
 0x2e6   : > { %5214 = vpow2.f32 %v1260_v45 }
 0x2e7   : > { %5216 = vpow2.f32 %v1262_v53  ;;  %v1639_v53 = vld [vmem:[#allocation14 + $0x200] sm:$0xff] }
 0x2e8   : > { %5218 = vpow2.f32 %v1264_v58  ;;  %v1646_v58 = vld [vmem:[#allocation14 + $0x238] sm:$0xff] }
 0x2eb   : > { %v5205_v31 = vpop.eup %5204 }
 0x2ec   : > { %v5207_v34 = vpop.eup %5206  ;;  %v1214_v35 = vmul.f32 1.0614054, %v5205_v31 }
 0x2ed   : > { %v1215_v38 = vmul.f32 1.0614054, %v5207_v34  ;;  %v5209_v40 = vpop.eup %5208 }
 0x2ee   : > { %v1218_v39 = vadd.f32 -1.4531521, %v1214_v35  ;;  %v1216_v46 = vmul.f32 1.0614054, %v5209_v40  ;;  %v5211_v47 = vpop.eup %5210 }
 0x2ef   : > { %v1219_v43 = vadd.f32 -1.4531521, %v1215_v38  ;;  %v1217_v52 = vmul.f32 1.0614054, %v5211_v47  ;;  %v5213_v22 = vpop.eup %5212 }
 0x2f0   : > { %v1222_v44 = vmul.f32 %v5205_v31, %v1218_v39  ;;  %v1220_v51 = vadd.f32 -1.4531521, %v1216_v46  ;;  %v5215_v24 = vpop.eup %5214 }
 0x2f1   : > { %v1223_v49 = vmul.f32 %v5207_v34, %v1219_v43  ;;  %v1221_v57 = vadd.f32 -1.4531521, %v1217_v52  ;;  %v5217_v30 = vpop.eup %5216 }
 0x2f2   : > { %v1226_v50 = vadd.f32 1.4214138, %v1222_v44  ;;  %v1224_v56 = vmul.f32 %v5209_v40, %v1220_v51  ;;  %v5219_v36 = vpop.eup %5218 }
 0x2f3   : > { %v1227_v54 = vadd.f32 1.4214138, %v1223_v49  ;;  %v1225_v62 = vmul.f32 %v5211_v47, %v1221_v57  ;;  %v1279_v49 = vmul.f32 0.5, %v6286_v9  ;;  %v1644_v57 = vld [vmem:[#allocation14 + $0x228] sm:$0xff] }
 0x2f4   : > { %v1230_v55 = vmul.f32 %v5205_v31, %v1226_v50  ;;  %v1228_v61 = vadd.f32 1.4214138, %v1224_v56  ;;  %v1281_v50 = vmul.f32 0.5, %v6296_v15  ;;  %v4137_v7 = vpack.c.bf16 %v1646_v58, %v1644_v57 }
 0x2f5   : > { %v1231_v59 = vmul.f32 %v5207_v34, %v1227_v54  ;;  %v1229_v5 = vadd.f32 1.4214138, %v1225_v62  ;;  %v1641_v54 = vld [vmem:[#allocation14 + $0x210] sm:$0xff]  ;;  %v1648_v62 = vld [vmem:[#allocation14 + $0x248] sm:$0xff] }
 0x2f6   : > { %v1234_v60 = vadd.f32 -0.28449672, %v1230_v55  ;;  %v1232_v4 = vmul.f32 %v5209_v40, %v1228_v61  ;;  %v1645_v61 = vld [vmem:[#allocation14 + $0x230] sm:$0xff] }
 0x2f7   : > { %v1235_v63 = vadd.f32 -0.28449672, %v1231_v59  ;;  %v1233_v13 = vmul.f32 %v5211_v47, %v1229_v5  ;;  %v1647_v5 = vld [vmem:[#allocation14 + $0x240] sm:$0xff] }
 0x2f8   : > { %v1238_v2 = vmul.f32 %v5205_v31, %v1234_v60  ;;  %v1236_v10 = vadd.f32 -0.28449672, %v1232_v4  ;;  %v1643_v60 = vld [vmem:[#allocation14 + $0x220] sm:$0xff] }
 0x2f9   : > { %v1239_v6 = vmul.f32 %v5207_v34, %v1235_v63  ;;  %v1237_v21 = vadd.f32 -0.28449672, %v1233_v13  ;;  %v1650_v63 = vld [vmem:[#allocation14 + $0x258] sm:$0xff] }
 0x2fa   : > { %v1242_v8 = vadd.f32 0.2548296, %v1238_v2  ;;  %v1240_v20 = vmul.f32 %v5209_v40, %v1236_v10  ;;  %v4139_v2 = vpack.c.bf16 %v1645_v61, %v1643_v60  ;;  %v4141_v4 = vpack.c.bf16 %v1650_v63, %v1648_v62  ;;  %v1654_v10 = vld [vmem:[#allocation14 + $0x278] sm:$0xff]  ;;  %v1683_v62 = vld [vmem:[#allocation14 + $0x360] sm:$0xff]  ;;  %v1685_v63 = vld [vmem:[#allocation14 + $0x370] sm:$0xff] }
 0x2fb   : > { %v1243_v16 = vadd.f32 0.2548296, %v1239_v6  ;;  %v1241_v27 = vmul.f32 %v5211_v47, %v1237_v21  ;;  %v1649_v6 = vld [vmem:[#allocation14 + $0x250] sm:$0xff]  ;;  %v1656_v21 = vld [vmem:[#allocation14 + $0x288] sm:$0xff]  ;;  %v1686_v60 = vld [vmem:[#allocation14 + $0x378] sm:$0xff] }
 0x2fc   : > { %v1246_v18 = vmul.f32 %v5205_v31, %v1242_v8  ;;  %v1244_v26 = vadd.f32 0.2548296, %v1240_v20  ;;  %v1652_v8 = vld [vmem:[#allocation14 + $0x268] sm:$0xff]  ;;  %v4143_v13 = vpack.c.bf16 %v1649_v6, %v1647_v5  ;;  %v1653_v20 = vld [vmem:[#allocation14 + $0x270] sm:$0xff]  ;;  %v1690_v5 = vld [vmem:[#allocation14 + $0x398] sm:$0xff] }
 0x2fd   : > { %v1247_v23 = vmul.f32 %v5207_v34, %v1243_v16  ;;  %v1245_v29 = vadd.f32 0.2548296, %v1241_v27  ;;  %v5739_v34 = vmov -1.0   ;;  %v4145_v16 = vpack.c.bf16 %v1654_v10, %v1652_v8  ;;  %v1660_v27 = vld [vmem:[#allocation14 + $0x2a8] sm:$0xff]  ;;  %v1687_v8 = vld [vmem:[#allocation14 + $0x380] sm:$0xff]  ;;  %v1689_v10 = vld [vmem:[#allocation14 + $0x390] sm:$0xff] }
 0x2fe   : > { %v1266_v25 = vmul.f32 %v5213_v22, %v1246_v18  ;;  %v1248_v0 = vmul.f32 %v5209_v40, %v1244_v26  ;;  %v1194_v37 = vsel %vm1190_vm11, 1.0, %v5739_v34  ;;  %v1195_v38 = vsel %vm1191_vm12, 1.0, %v5739_v34  ;;  %v1651_v18 = vld [vmem:[#allocation14 + $0x260] sm:$0xff]  ;;  %v1658_v22 = vld [vmem:[#allocation14 + $0x298] sm:$0xff]  ;;  %v1657_v26 = vld [vmem:[#allocation14 + $0x290] sm:$0xff] }
 0x2ff   : > { %v1267_v28 = vmul.f32 %v5215_v24, %v1247_v23  ;;  %v1249_v35 = vmul.f32 %v5211_v47, %v1245_v29  ;;  %v1196_v14 = vsel %vm1192_vm13, 1.0, %v5739_v34  ;;  %v1197_v44 = vsel %vm1193_vm14, 1.0, %v5739_v34  ;;  %v1663_v34 = vld [vmem:[#allocation14 + $0x2c0] sm:$0xff] }
 0x300   : > { %v1270_v32 = vsub.f32 1.0, %v1266_v25  ;;  %v1268_v31 = vmul.f32 %v5217_v30, %v1248_v0  ;;  %v1280_v47 = vmul.f32 0.5, %v6291_v12  ;;  %v4135_v12 = vpack.c.bf16 %v1641_v54, %v1639_v53  ;;  %v1655_v25 = vld [vmem:[#allocation14 + $0x280] sm:$0xff]  ;;  %v1680_v53 = vld [vmem:[#allocation14 + $0x348] sm:$0xff]  ;;  %v1682_v54 = vld [vmem:[#allocation14 + $0x358] sm:$0xff] }
 0x301   : > { %v1271_v33 = vsub.f32 1.0, %v1267_v28  ;;  %v1269_v41 = vmul.f32 %v5219_v36, %v1249_v35  ;;  %v4147_v23 = vpack.c.bf16 %v1653_v20, %v1651_v18  ;;  %v4149_v24 = vpack.c.bf16 %v1658_v22, %v1656_v21  ;;  %v1662_v28 = vld [vmem:[#allocation14 + $0x2b8] sm:$0xff]  ;;  %v1659_v30 = vld [vmem:[#allocation14 + $0x2a0] sm:$0xff]  ;;  %v1693_v22 = vld [vmem:[#allocation14 + $0x3b0] sm:$0xff] }
 0x302   : > { %v1272_v39 = vsub.f32 1.0, %v1268_v31  ;;  %v1274_v42 = vmul.f32 %v1270_v32, %v1194_v37  ;;  %v4151_v0 = vpack.c.bf16 %v1657_v26, %v1655_v25  ;;  %v4153_v29 = vpack.c.bf16 %v1662_v28, %v1660_v27  ;;  %v1661_v32 = vld [vmem:[#allocation14 + $0x2b0] sm:$0xff]  ;;  %v1666_v31 = vld [vmem:[#allocation14 + $0x2d8] sm:$0xff]  ;;  %v1691_v21 = vld [vmem:[#allocation14 + $0x3a0] sm:$0xff] }
 0x303   : > { %v1275_v11 = vmul.f32 %v1271_v33, %v1195_v38  ;;  %v1273_v43 = vsub.f32 1.0, %v1269_v41  ;;  %v1664_v33 = vld [vmem:[#allocation14 + $0x2c8] sm:$0xff]  ;;  %v4155_v35 = vpack.c.bf16 %v1661_v32, %v1659_v30  ;;  %v1665_v37 = vld [vmem:[#allocation14 + $0x2d0] sm:$0xff]  ;;  %v4173_v58 = vpack.c.bf16 %v1682_v54, %v1680_v53  ;;  %v1694_v18 = vld [vmem:[#allocation14 + $0x3b8] sm:$0xff] }
 0x304   : > { %v1276_v40 = vmul.f32 %v1272_v39, %v1196_v14  ;;  %v1282_v17 = vadd.f32 1.0, %v1274_v42  ;;  %v4157_v36 = vpack.c.bf16 %v1666_v31, %v1664_v33  ;;  %v1668_v38 = vld [vmem:[#allocation14 + $0x2e8] sm:$0xff]  ;;  %v1670_v39 = vld [vmem:[#allocation14 + $0x2f8] sm:$0xff]  ;;  %v4159_v41 = vpack.c.bf16 %v1665_v37, %v1663_v34  ;;  %v1667_v42 = vld [vmem:[#allocation14 + $0x2e0] sm:$0xff] }
 0x305   : > { %v1277_v46 = vmul.f32 %v1273_v43, %v1197_v44  ;;  %v1283_v48 = vadd.f32 1.0, %v1275_v11  ;;  %v4161_v11 = vpack.c.bf16 %v1670_v39, %v1668_v38  ;;  %v1669_v14 = vld [vmem:[#allocation14 + $0x2f0] sm:$0xff]  ;;  %v1674_v43 = vld [vmem:[#allocation14 + $0x318] sm:$0xff]  ;;  %v1696_v25 = vld [vmem:[#allocation14 + $0x3c8] sm:$0xff] }
 0x306   : > { %v1284_v45 = vadd.f32 1.0, %v1276_v40  ;;  %v6322_v59 = vmul.f32 %v1282_v17, %v1278_v19  ;;  %v1672_v40 = vld [vmem:[#allocation14 + $0x308] sm:$0xff]  ;;  %v4163_v44 = vpack.c.bf16 %v1669_v14, %v1667_v42  ;;  %v1677_v19 = vld [vmem:[#allocation14 + $0x330] sm:$0xff]  ;;  %v1698_v26 = vld [vmem:[#allocation14 + $0x3d8] sm:$0xff] }
 0x307   : > { %v1285_v51 = vadd.f32 1.0, %v1277_v46  ;;  %v6318_v55 = vmul.f32 %v1283_v48, %v1279_v49  ;;  %v1671_v46 = vld [vmem:[#allocation14 + $0x300] sm:$0xff]  ;;  %v1673_v48 = vld [vmem:[#allocation14 + $0x310] sm:$0xff]  ;;  %v1676_v17 = vld [vmem:[#allocation14 + $0x328] sm:$0xff]  ;;  %v4189_v28 = vpack.c.bf16 %v1698_v26, %v1696_v25 }
 0x308   : > { %v6316_v52 = vmul.f32 %v1284_v45, %v1280_v47  ;;  %v4165_v45 = vpack.c.bf16 %v1674_v43, %v1672_v40  ;;  %v1678_v47 = vld [vmem:[#allocation14 + $0x338] sm:$0xff]  ;;  %v4167_v49 = vpack.c.bf16 %v1673_v48, %v1671_v46  ;;  %v1695_v27 = vld [vmem:[#allocation14 + $0x3c0] sm:$0xff]  ;;  %v1571_v34 = vld [vmem:[#allocation14 + $0x8] sm:$0xff] }
 0x309   : > { %v6320_v56 = vmul.f32 %v1285_v51, %v1281_v50  ;;  %v4169_v50 = vpack.c.bf16 %v1678_v47, %v1676_v17  ;;  %v1675_v51 = vld [vmem:[#allocation14 + $0x320] sm:$0xff]  ;;  %v1702_v30 = vld [vmem:[#allocation14 + $0x3f8] sm:$0xff]  ;;  %v1580_v25 = vld [vmem:[#allocation14 + $0x50] sm:$0xff] }
 0x30a   : > { %v1290_v15 = vpack.c.bf16 %v6316_v52, %v6322_v59  ;;  %v4171_v57 = vpack.c.bf16 %v1677_v19, %v1675_v51  ;;  %v1699_v31 = vld [vmem:[#allocation14 + $0x3e0] sm:$0xff]  ;;  %v1573_v37 = vld [vmem:[#allocation14 + $0x18] sm:$0xff] }
 0x30b   : > { %v1291_v9 = vpack.c.bf16 %v6320_v56, %v6318_v55  ;;  %v4197_v38 = vpack.c.bf16 %v1573_v37, %v1571_v34  ;;  %v1324_v39 = vld [vmem:[#allocation13] sm:$0x3]  ;;  %v1570_v54 = vld [vmem:[#allocation14] sm:$0xff] }
 0x30c   : > { %v1586_v37 = vld [vmem:[#allocation14 + $0x80] sm:$0xff] }
 0x30d   : > { %1528 = vmatprep.mubr.bf16.mxu1 %v1291_v9  ;;  %v1679_v9 = vld [vmem:[#allocation14 + $0x340] sm:$0xff] }
 0x30e   : > { %1529 = vmatmul.mubr.bf16.vlgmr.msra.gmra.mrb[0].mxu1 %v1290_v15 }
 0x30f   : > { %4136 = vmatpush1.bf16.msra.mxu1 %v4135_v12  ;;  %v1681_v12 = vld [vmem:[#allocation14 + $0x350] sm:$0xff] }
 0x310   : > { %4138 = vmatprep.subr.bf16.mxu1 %v4137_v7  ;;  %v4175_v15 = vpack.c.bf16 %v1681_v12, %v1679_v9  ;;  %v1684_v7 = vld [vmem:[#allocation14 + $0x368] sm:$0xff] }
 0x311   : > { %v4177_v61 = vpack.c.bf16 %v1686_v60, %v1684_v7  ;;  %v1575_v12 = vld [vmem:[#allocation14 + $0x28] sm:$0xff] }
 0x313   : > { %4140 = vmatpush1.bf16.msra.mxu1 %v4139_v2  ;;  %v4179_v2 = vpack.c.bf16 %v1685_v63, %v1683_v62 }
 0x314   : > { %4142 = vmatprep.subr.bf16.mxu1 %v4141_v4  ;;  %v1688_v4 = vld [vmem:[#allocation14 + $0x388] sm:$0xff] }
 0x315   : > { %v4181_v6 = vpack.c.bf16 %v1690_v5, %v1688_v4 }
 0x317   : > { %4144 = vmatpush1.bf16.msra.mxu1 %v4143_v13  ;;  %v4183_v13 = vpack.c.bf16 %v1689_v10, %v1687_v8  ;;  %v1574_v8 = vld [vmem:[#allocation14 + $0x20] sm:$0xff]  ;;  %v1576_v10 = vld [vmem:[#allocation14 + $0x30] sm:$0xff] }
 0x318   : > { %4146 = vmatprep.subr.bf16.mxu1 %v4145_v16  ;;  %v1692_v16 = vld [vmem:[#allocation14 + $0x3a8] sm:$0xff] }
 0x319   : > { %v4185_v20 = vpack.c.bf16 %v1694_v18, %v1692_v16  ;;  %v1579_v18 = vld [vmem:[#allocation14 + $0x48] sm:$0xff] }
 0x31b   : > { %4148 = vmatpush1.bf16.msra.mxu1 %v4147_v23  ;;  %v4187_v23 = vpack.c.bf16 %v1693_v22, %v1691_v21  ;;  %v4203_v22 = vpack.c.bf16 %v1576_v10, %v1574_v8  ;;  %v1613_v8 = vld [vmem:[#allocation14 + $0x158] sm:$0xff] }
 0x31c   : > { %4150 = vmatprep.subr.bf16.mxu1 %v4149_v24  ;;  %v5740_v24 = vmov 0.0  }
 0x31d   : > { %1540 = vst [vmem:[#allocation3 + $0x8] sm:$0x3] %v5740_v24  ;;  %1539 = vst [vmem:[#allocation3] sm:$0x3] %v5740_v24 }
 0x31e   : > { %1541 = vst [vmem:[#allocation3 + $0x20] sm:$0xc] %v5740_v24  ;;  %1542 = vst [vmem:[#allocation3 + $0x28] sm:$0xc] %v5740_v24 }
 0x31f   : > { %4152 = vmatpush1.bf16.msra.mxu1 %v4151_v0  ;;  %2401 = vst [vmem:[#allocation4] sm:$0x3f] %v5740_v24  ;;  %2402 = vst [vmem:[#allocation4 + $0x8] sm:$0x3f] %v5740_v24  ;;  %v1697_v0 = vld [vmem:[#allocation14 + $0x3d0] sm:$0xff] }
 0x320   : > { %4154 = vmatprep.subr.bf16.mxu1 %v4153_v29  ;;  %2403 = vst [vmem:[#allocation4 + $0x20] sm:$0xc0] %v5740_v24  ;;  %2404 = vst [vmem:[#allocation4 + $0x28] sm:$0xc0] %v5740_v24  ;;  %v1700_v29 = vld [vmem:[#allocation14 + $0x3e8] sm:$0xff]  ;;  %v4191_v32 = vpack.c.bf16 %v1697_v0, %v1695_v27 }
 0x321   : > { %2405 = vst [vmem:[#allocation4 + $0x30] sm:$0xf] %v5740_v24  ;;  %2406 = vst [vmem:[#allocation4 + $0x38] sm:$0xf] %v5740_v24  ;;  %v4193_v33 = vpack.c.bf16 %v1702_v30, %v1700_v29  ;;  %v1578_v24 = vld [vmem:[#allocation14 + $0x40] sm:$0xff]  ;;  %v1583_v27 = vld [vmem:[#allocation14 + $0x68] sm:$0xff] }
 0x322   : > { %v4207_v29 = vpack.c.bf16 %v1580_v25, %v1578_v24  ;;  %v1614_v24 = vld [vmem:[#allocation14 + $0x160] sm:$0xff]  ;;  %v1616_v25 = vld [vmem:[#allocation14 + $0x170] sm:$0xff] }
 0x323   : > { %4156 = vmatpush1.bf16.msra.mxu1 %v4155_v35  ;;  %v1701_v35 = vld [vmem:[#allocation14 + $0x3f0] sm:$0xff] }
 0x324   : > { %4158 = vmatprep.subr.bf16.mxu1 %v4157_v36  ;;  %v4195_v36 = vpack.c.bf16 %v1701_v35, %v1699_v31  ;;  %v1587_v31 = vld [vmem:[#allocation14 + $0x88] sm:$0xff]  ;;  %v1589_v35 = vld [vmem:[#allocation14 + $0x98] sm:$0xff] }
 0x325   : > { %v4213_v34 = vpack.c.bf16 %v1589_v35, %v1587_v31 }
 0x327   : > { %4160 = vmatpush1.bf16.msra.mxu1 %v4159_v41  ;;  %v1329_v41 = vrot.slane %v1324_v39, %v6278_v1 }
 0x328   : > { %4162 = vmatprep.subr.bf16.mxu1 %v4161_v11  ;;  %v1333_v11 = vrot.slane %v1324_v39, %v6280_v3  ;;  %v1591_v39 = vld [vmem:[#allocation14 + $0xa8] sm:$0xff] }
 0x32b   : > { %4164 = vmatpush1.bf16.msra.mxu1 %v4163_v44 }
 0x32c   : > { %4166 = vmatprep.subr.bf16.mxu1 %v4165_v45 }
 0x32f   : > { %4168 = vmatpush1.bf16.msra.mxu1 %v4167_v49 }
 0x330   : > { %4170 = vmatprep.subr.bf16.mxu1 %v4169_v50 }
 0x333   : > { %4172 = vmatpush1.bf16.msra.mxu1 %v4171_v57  ;;  %v1572_v57 = vld [vmem:[#allocation14 + $0x10] sm:$0xff] }
 0x334   : > { %4174 = vmatprep.subr.bf16.mxu1 %v4173_v58  ;;  %v4199_v63 = vpack.c.bf16 %v1572_v57, %v1570_v54  ;;  %v1598_v54 = vld [vmem:[#allocation14 + $0xe0] sm:$0xff]  ;;  %v1600_v57 = vld [vmem:[#allocation14 + $0xf0] sm:$0xff] }
 0x337   : > { %4176 = vmatpush1.bf16.msra.mxu1 %v4175_v15  ;;  %v1577_v15 = vld [vmem:[#allocation14 + $0x38] sm:$0xff] }
 0x338   : > { %4178 = vmatprep.subr.bf16.mxu1 %v4177_v61 }
 0x33b   : > { %4180 = vmatpush1.bf16.msra.mxu1 %v4179_v2 }
 0x33c   : > { %4182 = vmatprep.subr.bf16.mxu1 %v4181_v6  ;;  %v4201_v6 = vpack.c.bf16 %v1577_v15, %v1575_v12  ;;  %v4227_v12 = vpack.c.bf16 %v1600_v57, %v1598_v54  ;;  %v1888_v54 = vld [vmem:[#allocation14 + $0x428] sm:$0xff]  ;;  %v1890_v57 = vld [vmem:[#allocation14 + $0x438] sm:$0xff] }
 0x33f   : > { %4184 = vmatpush1.bf16.msra.mxu1 %v4183_v13 }
 0x340   : > { %4186 = vmatprep.subr.bf16.mxu1 %v4185_v20  ;;  %v1581_v20 = vld [vmem:[#allocation14 + $0x58] sm:$0xff] }
 0x343   : > { %4188 = vmatpush1.bf16.msra.mxu1 %v4187_v23  ;;  %v4205_v23 = vpack.c.bf16 %v1581_v20, %v1579_v18  ;;  %v1612_v18 = vld [vmem:[#allocation14 + $0x150] sm:$0xff]  ;;  %v1615_v20 = vld [vmem:[#allocation14 + $0x168] sm:$0xff] }
 0x344   : > { %4190 = vmatprep.subr.bf16.mxu1 %v4189_v28  ;;  %v1585_v28 = vld [vmem:[#allocation14 + $0x78] sm:$0xff] }
 0x345   : > { %v4209_v30 = vpack.c.bf16 %v1585_v28, %v1583_v27  ;;  %v1621_v27 = vld [vmem:[#allocation14 + $0x198] sm:$0xff]  ;;  %v4243_v28 = vpack.c.bf16 %v1616_v25, %v1614_v24 }
 0x346   : > { %v1902_v24 = vld [vmem:[#allocation14 + $0x498] sm:$0xff] }
 0x347   : > { %4192 = vmatpush1.bf16.msra.mxu1 %v4191_v32  ;;  %v1582_v32 = vld [vmem:[#allocation14 + $0x60] sm:$0xff] }
 0x348   : > { %4194 = vmatprep.subr.bf16.mxu1 %v4193_v33  ;;  %v1584_v33 = vld [vmem:[#allocation14 + $0x70] sm:$0xff] }
 0x34b   : > { %4196 = vmatpush1.bf16.msra.mxu1 %v4195_v36  ;;  %v4211_v36 = vpack.c.bf16 %v1584_v33, %v1582_v32  ;;  %v1623_v32 = vld [vmem:[#allocation14 + $0x1a8] sm:$0xff]  ;;  %v1625_v33 = vld [vmem:[#allocation14 + $0x1b8] sm:$0xff] }
 0x34c   : > { %4198 = vmatprep.subr.bf16.mxu1 %v4197_v38  ;;  %v1588_v38 = vld [vmem:[#allocation14 + $0x90] sm:$0xff]  ;;  %v4249_v35 = vpack.c.bf16 %v1625_v33, %v1623_v32  ;;  %v1903_v33 = vld [vmem:[#allocation14 + $0x4a0] sm:$0xff] }
 0x3e1   : > { %v1530_v42 = vpop.f32.mrb[0].mxu1 }
 0x3e2   : > { %v1531_v14 = vadd.f32 %v1530_v42, %v1329_v41  ;;  %v1532_v40 = vpop.f32.mrb[1].mxu1 }
 0x3e3   : > { %v1533_v43 = vadd.f32 %v1532_v40, %v1333_v11  ;;  %v1534_v44 = vpop.f32.mrb[2].mxu1  ;;  %v1592_v40 = vld [vmem:[#allocation14 + $0xb0] sm:$0xff] }
 0x3e4   : > { %v1548_v45 = vrot.slane %v1531_v14, 6  ;;  %v1535_v46 = vadd.f32 %v1534_v44, %v1329_v41  ;;  %v1536_v48 = vpop.f32.mrb[3].mxu1  ;;  %v1593_v41 = vld [vmem:[#allocation14 + $0xb8] sm:$0xff]  ;;  %v1590_v14 = vld [vmem:[#allocation14 + $0xa0] sm:$0xff] }
 0x3e5   : > { %v1549_v17 = vrot.slane %v1533_v43, 6  ;;  %v1537_v47 = vadd.f32 %v1536_v48, %v1333_v11  ;;  %v4215_v11 = vpack.c.bf16 %v1588_v38, %v1586_v37  ;;  %v4217_v42 = vpack.c.bf16 %v1593_v41, %v1591_v39  ;;  %v1595_v43 = vld [vmem:[#allocation14 + $0xc8] sm:$0xff]  ;;  %v1597_v44 = vld [vmem:[#allocation14 + $0xd8] sm:$0xff]  ;;  %v1594_v48 = vld [vmem:[#allocation14 + $0xc0] sm:$0xff] }
 0x3e6   : > { %1560 = vst [vmem:[#allocation3] sm:$0xfc] %v1548_v45  ;;  %v1550_v49 = vrot.slane %v1535_v46, 6  ;;  %v4221_v46 = vpack.c.bf16 %v1597_v44, %v1595_v43  ;;  %v1627_v37 = vld [vmem:[#allocation14 + $0x1c8] sm:$0xff]  ;;  %v1629_v38 = vld [vmem:[#allocation14 + $0x1d8] sm:$0xff] }
 0x3e7   : > { %1561 = vst [vmem:[#allocation3 + $0x8] sm:$0xfc] %v1549_v17  ;;  %v1552_v50 = vrot.slane %v1537_v47, 6  ;;  %v1599_v47 = vld [vmem:[#allocation14 + $0xe8] sm:$0xff]  ;;  %v4253_v41 = vpack.c.bf16 %v1629_v38, %v1627_v37  ;;  %v1907_v38 = vld [vmem:[#allocation14 + $0x4c0] sm:$0xff] }
 0x3e8   : > { %v6331_v51 = vsel %vm1547_vm15, %v1548_v45, %v1550_v49  ;;  %1564 = vst [vmem:[#allocation3 + $0x20] sm:$0x3] %v1550_v49  ;;  %v4219_v45 = vpack.c.bf16 %v1592_v40, %v1590_v14  ;;  %v1601_v49 = vld [vmem:[#allocation14 + $0xf8] sm:$0xff]  ;;  %v1631_v14 = vld [vmem:[#allocation14 + $0x1e8] sm:$0xff] }
 0x3e9   : > { %1562 = vst [vmem:[#allocation3 + $0x10] sm:$0xff] %v6331_v51  ;;  %v6335_v19 = vsel %vm1547_vm15, %v1549_v17, %v1552_v50  ;;  %1565 = vst [vmem:[#allocation3 + $0x28] sm:$0x3] %v1552_v50  ;;  %v1711_v62 = vrot.slane %v6331_v51, 1  ;;  %v1596_v17 = vld [vmem:[#allocation14 + $0xd0] sm:$0xff]  ;;  %v1633_v40 = vld [vmem:[#allocation14 + $0x1f8] sm:$0xff] }
 0x3ea   : > { %1563 = vst [vmem:[#allocation3 + $0x18] sm:$0xff] %v6335_v19  ;;  %v1714_v60 = vrot.slane %v6335_v19, 1  ;;  %v4223_v50 = vpack.c.bf16 %v1596_v17, %v1594_v48  ;;  %v4257_v44 = vpack.c.bf16 %v1633_v40, %v1631_v14  ;;  %v1884_v48 = vld [vmem:[#allocation14 + $0x408] sm:$0xff]  ;;  %v1886_v17 = vld [vmem:[#allocation14 + $0x418] sm:$0xff]  ;;  %v1911_v40 = vld [vmem:[#allocation14 + $0x4e0] sm:$0xff] }
 0x3ed   : > { %v1634_v53 = vld [vmem:[#allocation3] sm:$0xfe] }
 0x3ee   : > { %v1635_v58 = vld [vmem:[#allocation3 + $0x8] sm:$0xfe]  ;;  %v1710_v9 = vrot.slane %v1634_v53, 1  ;;  %v4225_v53 = vpack.c.bf16 %v1601_v49, %v1599_v47  ;;  %v4261_v49 = vpack.c.bf16 %v1886_v17, %v1884_v48  ;;  %v1915_v17 = vld [vmem:[#allocation14 + $0x500] sm:$0xff] }
 0x3ef   : > { %v1713_v7 = vrot.slane %v1635_v58, 1  ;;  %v1636_v61 = vld [vmem:[#allocation3 + $0x20] sm:$0x1]  ;;  %v1567_v0 = vld [vmem:[#allocation3 + $0x8] sm:$0xff] }
 0x3f0   : > { %v1637_v2 = vld [vmem:[#allocation3 + $0x28] sm:$0x1]  ;;  %v1712_v13 = vsel %vm1038_vm10, %v1710_v9, %v1711_v62  ;;  %v1716_v16 = vrot.slane %v1636_v61, 1  ;;  %v1603_v58 = vld [vmem:[#allocation14 + $0x108] sm:$0xff]  ;;  %v1605_v9 = vld [vmem:[#allocation14 + $0x118] sm:$0xff] }
 0x3f1   : > { %v1715_v4 = vsel %vm1038_vm10, %v1713_v7, %v1714_v60  ;;  %v1718_v5 = vrot.slane %v1637_v2, 1  ;;  %v4229_v15 = vpack.c.bf16 %v1605_v9, %v1603_v58  ;;  %v1602_v7 = vld [vmem:[#allocation14 + $0x100] sm:$0xff]  ;;  %v1607_v61 = vld [vmem:[#allocation14 + $0x128] sm:$0xff]  ;;  %v1879_v9 = vld [vmem:[#allocation3 + $0x8] sm:$0xfc] }
 0x3f2   : > { %1788 = vmatprep.mubr.f32.mxu1 %v1715_v4  ;;  %v1717_v26 = vsel %vm1038_vm10, %v1711_v62, %v1716_v16  ;;  %v1609_v62 = vld [vmem:[#allocation14 + $0x138] sm:$0xff]  ;;  %v1606_v4 = vld [vmem:[#allocation14 + $0x120] sm:$0xff] }
 0x3f3   : > { %1789 = vmatmul.mubr.f32.vlgmr.msra.gmra.mrb[4].mxu1 %v1712_v13  ;;  %v1719_v21 = vsel %vm1038_vm10, %v1714_v60, %v1718_v5  ;;  %v1604_v60 = vld [vmem:[#allocation14 + $0x110] sm:$0xff]  ;;  %v4233_v2 = vpack.c.bf16 %v1609_v62, %v1607_v61  ;;  %v1610_v16 = vld [vmem:[#allocation14 + $0x140] sm:$0xff]  ;;  %v1892_v61 = vld [vmem:[#allocation14 + $0x448] sm:$0xff] }
 0x3f4   : > { %4200 = vmatpush1.bf16.msra.mxu1 %v4199_v63  ;;  %1794 = vmatprep.mubr.f32.mxu1 %v1719_v21  ;;  %v4231_v63 = vpack.c.bf16 %v1604_v60, %v1602_v7  ;;  %v1608_v5 = vld [vmem:[#allocation14 + $0x130] sm:$0xff]  ;;  %v1617_v21 = vld [vmem:[#allocation14 + $0x178] sm:$0xff] }
 0x3f5   : > { %4202 = vmatprep.subr.bf16.mxu1 %v4201_v6  ;;  %v1611_v6 = vld [vmem:[#allocation14 + $0x148] sm:$0xff]  ;;  %v4235_v10 = vpack.c.bf16 %v1608_v5, %v1606_v4  ;;  %v1889_v7 = vld [vmem:[#allocation14 + $0x430] sm:$0xff]  ;;  %v1894_v62 = vld [vmem:[#allocation14 + $0x458] sm:$0xff]  ;;  %v1956_v4 = vrot.slane %v6335_v19, 2 }
 0x3f6   : > { %v4237_v13 = vpack.c.bf16 %v1613_v8, %v1611_v6  ;;  %v1566_v60 = vld [vmem:[#allocation3] sm:$0xff]  ;;  %v4269_v5 = vpack.c.bf16 %v1894_v62, %v1892_v61  ;;  %v1891_v6 = vld [vmem:[#allocation14 + $0x440] sm:$0xff] }
 0x3f7   : > { %1795 = vmatmul.mubr.f32.gmra.mrb[6].mxu1 %v1717_v26  ;;  %v1619_v26 = vld [vmem:[#allocation14 + $0x188] sm:$0xff]  ;;  %v1893_v8 = vld [vmem:[#allocation14 + $0x450] sm:$0xff] }
 0x3f8   : > { %4204 = vmatpush1.bf16.msra.mxu1 %v4203_v22  ;;  %1865 = vmatprep.mubr.f32.mxu1 %v1567_v0  ;;  %v4239_v22 = vpack.c.bf16 %v1612_v18, %v1610_v16  ;;  %v4245_v0 = vpack.c.bf16 %v1621_v27, %v1619_v26  ;;  %v4271_v18 = vpack.c.bf16 %v1893_v8, %v1891_v6  ;;  %v1899_v27 = vld [vmem:[#allocation14 + $0x480] sm:$0xff]  ;;  %v1925_v61 = vld [vmem:[#allocation14 + $0x550] sm:$0xff]  ;;  %v1928_v62 = vld [vmem:[#allocation14 + $0x568] sm:$0xff] }
 0x3f9   : > { %4206 = vmatprep.subr.bf16.mxu1 %v4205_v23  ;;  %v4241_v23 = vpack.c.bf16 %v1617_v21, %v1615_v20  ;;  %v1895_v21 = vld [vmem:[#allocation14 + $0x460] sm:$0xff]  ;;  %v1929_v8 = vld [vmem:[#allocation14 + $0x570] sm:$0xff] }
 0x3fa   : > { %v1927_v6 = vld [vmem:[#allocation14 + $0x560] sm:$0xff] }
 0x3fc   : > { %4208 = vmatpush1.bf16.msra.mxu1 %v4207_v29  ;;  %v1618_v29 = vld [vmem:[#allocation14 + $0x180] sm:$0xff] }
 0x3fd   : > { %4210 = vmatprep.subr.bf16.mxu1 %v4209_v30  ;;  %v1620_v30 = vld [vmem:[#allocation14 + $0x190] sm:$0xff] }
 0x3fe   : > { %v4247_v31 = vpack.c.bf16 %v1620_v30, %v1618_v29  ;;  %v1906_v29 = vld [vmem:[#allocation14 + $0x4b8] sm:$0xff] }
 0x400   : > { %4212 = vmatpush1.bf16.msra.mxu1 %v4211_v36  ;;  %v1622_v36 = vld [vmem:[#allocation14 + $0x1a0] sm:$0xff] }
 0x401   : > { %4214 = vmatprep.subr.bf16.mxu1 %v4213_v34  ;;  %v1624_v34 = vld [vmem:[#allocation14 + $0x1b0] sm:$0xff] }
 0x402   : > { %v4251_v39 = vpack.c.bf16 %v1624_v34, %v1622_v36  ;;  %v1910_v36 = vld [vmem:[#allocation14 + $0x4d8] sm:$0xff] }
 0x404   : > { %4216 = vmatpush1.bf16.msra.mxu1 %v4215_v11  ;;  %v1626_v11 = vld [vmem:[#allocation14 + $0x1c0] sm:$0xff] }
 0x405   : > { %4218 = vmatprep.subr.bf16.mxu1 %v4217_v42  ;;  %v1628_v42 = vld [vmem:[#allocation14 + $0x1d0] sm:$0xff] }
 0x406   : > { %v4255_v43 = vpack.c.bf16 %v1628_v42, %v1626_v11  ;;  %v1914_v11 = vld [vmem:[#allocation14 + $0x4f8] sm:$0xff] }
 0x408   : > { %4220 = vmatpush1.bf16.msra.mxu1 %v4219_v45  ;;  %v1630_v45 = vld [vmem:[#allocation14 + $0x1e0] sm:$0xff] }
 0x409   : > { %4222 = vmatprep.subr.bf16.mxu1 %v4221_v46  ;;  %v1632_v46 = vld [vmem:[#allocation14 + $0x1f0] sm:$0xff] }
 0x40a   : > { %v4259_v47 = vpack.c.bf16 %v1632_v46, %v1630_v45  ;;  %v1918_v45 = vld [vmem:[#allocation14 + $0x518] sm:$0xff] }
 0x40c   : > { %4224 = vmatpush1.bf16.msra.mxu1 %v4223_v50  ;;  %v1883_v50 = vld [vmem:[#allocation14 + $0x400] sm:$0xff] }
 0x40d   : > { %4226 = vmatprep.subr.bf16.mxu1 %v4225_v53  ;;  %v1885_v53 = vld [vmem:[#allocation14 + $0x410] sm:$0xff] }
 0x40e   : > { %v4263_v58 = vpack.c.bf16 %v1885_v53, %v1883_v50  ;;  %v1922_v50 = vld [vmem:[#allocation14 + $0x538] sm:$0xff] }
 0x410   : > { %4228 = vmatpush1.bf16.msra.mxu1 %v4227_v12  ;;  %v4265_v12 = vpack.c.bf16 %v1890_v57, %v1888_v54  ;;  %v1919_v57 = vld [vmem:[#allocation14 + $0x520] sm:$0xff] }
 0x411   : > { %4230 = vmatprep.subr.bf16.mxu1 %v4229_v15  ;;  %v1887_v15 = vld [vmem:[#allocation14 + $0x420] sm:$0xff] }
 0x414   : > { %4232 = vmatpush1.bf16.msra.mxu1 %v4231_v63  ;;  %v1955_v63 = vrot.slane %v1879_v9, 2  ;;  %v1924_v9 = vld [vmem:[#allocation14 + $0x548] sm:$0xff] }
 0x415   : > { %4234 = vmatprep.subr.bf16.mxu1 %v4233_v2  ;;  %v4267_v2 = vpack.c.bf16 %v1889_v7, %v1887_v15 }
 0x416   : > { %v1957_v16 = vsel %vm1951_vm0, %v1955_v63, %v1956_v4  ;;  %v1930_v63 = vld [vmem:[#allocation14 + $0x578] sm:$0xff] }
 0x418   : > { %4236 = vmatpush1.bf16.msra.mxu1 %v4235_v10  ;;  %v1896_v10 = vld [vmem:[#allocation14 + $0x468] sm:$0xff] }
 0x419   : > { %4238 = vmatprep.subr.bf16.mxu1 %v4237_v13  ;;  %v1898_v13 = vld [vmem:[#allocation14 + $0x478] sm:$0xff] }
 0x41a   : > { %v4273_v20 = vpack.c.bf16 %v1898_v13, %v1896_v10  ;;  %v1932_v10 = vld [vmem:[#allocation14 + $0x588] sm:$0xff]  ;;  %v1934_v13 = vld [vmem:[#allocation14 + $0x598] sm:$0xff] }
 0x41c   : > { %4240 = vmatpush1.bf16.msra.mxu1 %v4239_v22  ;;  %v1897_v22 = vld [vmem:[#allocation14 + $0x470] sm:$0xff] }
 0x41d   : > { %4242 = vmatprep.subr.bf16.mxu1 %v4241_v23  ;;  %v1900_v23 = vld [vmem:[#allocation14 + $0x488] sm:$0xff]  ;;  %v4275_v25 = vpack.c.bf16 %v1897_v22, %v1895_v21  ;;  %v1933_v21 = vld [vmem:[#allocation14 + $0x590] sm:$0xff] }
 0x41e   : > { %v4277_v26 = vpack.c.bf16 %v1902_v24, %v1900_v23  ;;  %v1936_v22 = vld [vmem:[#allocation14 + $0x5a8] sm:$0xff]  ;;  %v1938_v23 = vld [vmem:[#allocation14 + $0x5b8] sm:$0xff] }
 0x420   : > { %4244 = vmatpush1.bf16.msra.mxu1 %v4243_v28  ;;  %v1901_v28 = vld [vmem:[#allocation14 + $0x490] sm:$0xff] }
 0x421   : > { %4246 = vmatprep.subr.bf16.mxu1 %v4245_v0  ;;  %v1904_v0 = vld [vmem:[#allocation14 + $0x4a8] sm:$0xff]  ;;  %v4279_v30 = vpack.c.bf16 %v1901_v28, %v1899_v27  ;;  %v1937_v27 = vld [vmem:[#allocation14 + $0x5b0] sm:$0xff] }
 0x422   : > { %v4281_v32 = vpack.c.bf16 %v1906_v29, %v1904_v0  ;;  %v1940_v28 = vld [vmem:[#allocation14 + $0x5c8] sm:$0xff]  ;;  %v1942_v0 = vld [vmem:[#allocation14 + $0x5d8] sm:$0xff] }
 0x424   : > { %4248 = vmatpush1.bf16.msra.mxu1 %v4247_v31  ;;  %v1905_v31 = vld [vmem:[#allocation14 + $0x4b0] sm:$0xff] }
 0x425   : > { %4250 = vmatprep.subr.bf16.mxu1 %v4249_v35  ;;  %v1908_v35 = vld [vmem:[#allocation14 + $0x4c8] sm:$0xff]  ;;  %v4283_v34 = vpack.c.bf16 %v1905_v31, %v1903_v33  ;;  %v1941_v33 = vld [vmem:[#allocation14 + $0x5d0] sm:$0xff] }
 0x426   : > { %v4285_v37 = vpack.c.bf16 %v1910_v36, %v1908_v35  ;;  %v1944_v31 = vld [vmem:[#allocation14 + $0x5e8] sm:$0xff]  ;;  %v1946_v35 = vld [vmem:[#allocation14 + $0x5f8] sm:$0xff] }
 0x428   : > { %4252 = vmatpush1.bf16.msra.mxu1 %v4251_v39  ;;  %v1909_v39 = vld [vmem:[#allocation14 + $0x4d0] sm:$0xff] }
 0x429   : > { %4254 = vmatprep.subr.bf16.mxu1 %v4253_v41  ;;  %v1912_v41 = vld [vmem:[#allocation14 + $0x4e8] sm:$0xff]  ;;  %v4287_v42 = vpack.c.bf16 %v1909_v39, %v1907_v38  ;;  %v1945_v38 = vld [vmem:[#allocation14 + $0x5f0] sm:$0xff] }
 0x42a   : > { %v4289_v14 = vpack.c.bf16 %v1914_v11, %v1912_v41  ;;  %v2053_v39 = vld [vmem:[#allocation14 + $0x608] sm:$0xff]  ;;  %v2055_v41 = vld [vmem:[#allocation14 + $0x618] sm:$0xff] }
 0x42b   : > { %v1878_v11 = vld [vmem:[#allocation3] sm:$0xfc] }
 0x42c   : > { %4256 = vmatpush1.bf16.msra.mxu1 %v4255_v43  ;;  %v1913_v43 = vld [vmem:[#allocation14 + $0x4f0] sm:$0xff] }
 0x42d   : > { %4258 = vmatprep.subr.bf16.mxu1 %v4257_v44  ;;  %v1916_v44 = vld [vmem:[#allocation14 + $0x508] sm:$0xff]  ;;  %v4291_v46 = vpack.c.bf16 %v1913_v43, %v1911_v40  ;;  %v4325_v40 = vpack.c.bf16 %v2055_v41, %v2053_v39  ;;  %v2052_v43 = vld [vmem:[#allocation14 + $0x600] sm:$0xff]  ;;  %v2512_v41 = vld [vmem:[#allocation17 + $0x250] sm:$0xff] }
 0x42e   : > { %v4293_v48 = vpack.c.bf16 %v1918_v45, %v1916_v44  ;;  %v2054_v44 = vld [vmem:[#allocation14 + $0x610] sm:$0xff]  ;;  %v1952_v45 = vrot.slane %v1878_v11, 2  ;;  %v2510_v39 = vld [vmem:[#allocation17 + $0x240] sm:$0xff] }
 0x430   : > { %4260 = vmatpush1.bf16.msra.mxu1 %v4259_v47  ;;  %v1917_v47 = vld [vmem:[#allocation14 + $0x510] sm:$0xff] }
 0x431   : > { %4262 = vmatprep.subr.bf16.mxu1 %v4261_v49  ;;  %v1920_v49 = vld [vmem:[#allocation14 + $0x528] sm:$0xff]  ;;  %v4295_v53 = vpack.c.bf16 %v1917_v47, %v1915_v17 }
 0x432   : > { %v4297_v54 = vpack.c.bf16 %v1922_v50, %v1920_v49  ;;  %v1880_v47 = vld [vmem:[#allocation3 + $0x20] sm:$0x3]  ;;  %v1953_v49 = vrot.slane %v6331_v51, 2  ;;  %v4327_v50 = vpack.c.bf16 %v2054_v44, %v2052_v43  ;;  %v2075_v44 = vld [vmem:[#allocation14 + $0x6b8] sm:$0xff] }
 0x433   : > { %1866 = vmatmul.mubr.f32.vlgmr.msra.gmra.mrb[4].mxu1 %v1566_v60  ;;  %v1923_v60 = vld [vmem:[#allocation14 + $0x540] sm:$0xff]  ;;  %v2073_v43 = vld [vmem:[#allocation14 + $0x6a8] sm:$0xff] }
 0x434   : > { %1871 = vmatprep.mubr.f32.mxu1 %v6335_v19  ;;  %4264 = vmatpush1.bf16.msra.mxu1 %v4263_v58  ;;  %v1921_v58 = vld [vmem:[#allocation14 + $0x530] sm:$0xff] }
 0x435   : > { %4266 = vmatprep.subr.bf16.mxu1 %v4265_v12  ;;  %v1926_v12 = vld [vmem:[#allocation14 + $0x558] sm:$0xff]  ;;  %v4299_v15 = vpack.c.bf16 %v1921_v58, %v1919_v57  ;;  %v2056_v57 = vld [vmem:[#allocation14 + $0x620] sm:$0xff]  ;;  %v2058_v58 = vld [vmem:[#allocation14 + $0x630] sm:$0xff] }
 0x436   : > { %v4301_v7 = vpack.c.bf16 %v1926_v12, %v1924_v9  ;;  %v1954_v9 = vsel %vm1951_vm0, %v1952_v45, %v1953_v49  ;;  %v1958_v12 = vrot.slane %v1880_v47, 2  ;;  %v4463_v45 = vpack.c.bf16 %v2512_v41, %v2510_v39  ;;  %v2514_v47 = vld [vmem:[#allocation17 + $0x260] sm:$0xff] }
 0x437   : > { %1872 = vmatmul.mubr.f32.gmra.mrb[6].mxu1 %v6331_v51  ;;  %v4331_v51 = vpack.c.bf16 %v2058_v58, %v2056_v57  ;;  %v2521_v57 = vld [vmem:[#allocation17 + $0x298] sm:$0xff]  ;;  %v2077_v58 = vld [vmem:[#allocation14 + $0x6c8] sm:$0xff] }
 0x438   : > { %4268 = vmatpush1.bf16.msra.mxu1 %v4267_v2  ;;  %2030 = vmatprep.mubr.f32.mxu1 %v1957_v16  ;;  %v4303_v2 = vpack.c.bf16 %v1925_v61, %v1923_v60  ;;  %v4307_v16 = vpack.c.bf16 %v1929_v8, %v1927_v6  ;;  %v1959_v6 = vsel %vm1951_vm0, %v1953_v49, %v1958_v12  ;;  %v2065_v8 = vld [vmem:[#allocation14 + $0x668] sm:$0xff]  ;;  %v2516_v49 = vld [vmem:[#allocation17 + $0x270] sm:$0xff] }
 0x439   : > { %4270 = vmatprep.subr.bf16.mxu1 %v4269_v5  ;;  %v4305_v5 = vpack.c.bf16 %v1930_v63, %v1928_v62  ;;  %v2125_v62 = vrot.slane %v6335_v19, 3  ;;  %v4467_v12 = vpack.c.bf16 %v2516_v49, %v2514_v47 }
 0x43c   : > { %4272 = vmatpush1.bf16.msra.mxu1 %v4271_v18  ;;  %v4309_v18 = vpack.c.bf16 %v1934_v13, %v1932_v10  ;;  %v2067_v10 = vld [vmem:[#allocation14 + $0x678] sm:$0xff]  ;;  %v2064_v13 = vld [vmem:[#allocation14 + $0x660] sm:$0xff] }
 0x43d   : > { %4274 = vmatprep.subr.bf16.mxu1 %v4273_v20  ;;  %v1931_v20 = vld [vmem:[#allocation14 + $0x580] sm:$0xff] }
 0x43e   : > { %v4311_v24 = vpack.c.bf16 %v1933_v21, %v1931_v20  ;;  %v2505_v20 = vld [vmem:[#allocation17 + $0x218] sm:$0xff]  ;;  %v2502_v21 = vld [vmem:[#allocation17 + $0x200] sm:$0xff] }
 0x440   : > { %4276 = vmatpush1.bf16.msra.mxu1 %v4275_v25  ;;  %v4313_v25 = vpack.c.bf16 %v1938_v23, %v1936_v22 }
 0x441   : > { %4278 = vmatprep.subr.bf16.mxu1 %v4277_v26  ;;  %v1935_v26 = vld [vmem:[#allocation14 + $0x5a0] sm:$0xff] }
 0x442   : > { %v4315_v29 = vpack.c.bf16 %v1937_v27, %v1935_v26  ;;  %v2509_v26 = vld [vmem:[#allocation17 + $0x238] sm:$0xff]  ;;  %v4337_v27 = vpack.c.bf16 %v2067_v10, %v2065_v8  ;;  %v2081_v8 = vld [vmem:[#allocation14 + $0x6e8] sm:$0xff] }
 0x443   : > { %v2083_v10 = vld [vmem:[#allocation14 + $0x6f8] sm:$0xff] }
 0x444   : > { %4280 = vmatpush1.bf16.msra.mxu1 %v4279_v30  ;;  %v4317_v30 = vpack.c.bf16 %v1942_v0, %v1940_v28 }
 0x445   : > { %4282 = vmatprep.subr.bf16.mxu1 %v4281_v32  ;;  %v1939_v32 = vld [vmem:[#allocation14 + $0x5c0] sm:$0xff] }
 0x446   : > { %v4319_v36 = vpack.c.bf16 %v1941_v33, %v1939_v32  ;;  %v2511_v32 = vld [vmem:[#allocation17 + $0x248] sm:$0xff] }
 0x447   : > { %v2069_v33 = vld [vmem:[#allocation14 + $0x688] sm:$0xff] }
 0x448   : > { %4284 = vmatpush1.bf16.msra.mxu1 %v4283_v34  ;;  %v4321_v34 = vpack.c.bf16 %v1946_v35, %v1944_v31  ;;  %v2071_v31 = vld [vmem:[#allocation14 + $0x698] sm:$0xff] }
 0x449   : > { %4286 = vmatprep.subr.bf16.mxu1 %v4285_v37  ;;  %v1943_v37 = vld [vmem:[#allocation14 + $0x5e0] sm:$0xff]  ;;  %v4341_v11 = vpack.c.bf16 %v2071_v31, %v2069_v33  ;;  %v2528_v33 = vld [vmem:[#allocation17 + $0x2d0] sm:$0xff] }
 0x44a   : > { %v2513_v35 = vld [vmem:[#allocation17 + $0x258] sm:$0xff] }
 0x44c   : > { %4288 = vmatpush1.bf16.msra.mxu1 %v4287_v42  ;;  %v4323_v42 = vpack.c.bf16 %v1945_v38, %v1943_v37  ;;  %v2068_v37 = vld [vmem:[#allocation14 + $0x680] sm:$0xff]  ;;  %v4461_v38 = vpack.c.bf16 %v2513_v35, %v2511_v32  ;;  %v2086_v35 = vld [vmem:[#allocation14 + $0x710] sm:$0xff] }
 0x44d   : > { %4290 = vmatprep.subr.bf16.mxu1 %v4289_v14  ;;  %v1881_v14 = vld [vmem:[#allocation3 + $0x28] sm:$0x3]  ;;  %v2526_v32 = vld [vmem:[#allocation17 + $0x2c0] sm:$0xff] }
 0x44e   : > { %v1960_v17 = vrot.slane %v1881_v14, 2  ;;  %v2515_v14 = vld [vmem:[#allocation17 + $0x268] sm:$0xff]  ;;  %v4479_v39 = vpack.c.bf16 %v2528_v33, %v2526_v32  ;;  %v2104_v33 = vld [vmem:[#allocation14 + $0x7a0] sm:$0xff] }
 0x450   : > { %4292 = vmatpush1.bf16.msra.mxu1 %v4291_v46  ;;  %v2057_v46 = vld [vmem:[#allocation14 + $0x628] sm:$0xff]  ;;  %v1961_v60 = vsel %vm1951_vm0, %v1956_v4, %v1960_v17 }
 0x451   : > { %4294 = vmatprep.subr.bf16.mxu1 %v4293_v48  ;;  %v2059_v48 = vld [vmem:[#allocation14 + $0x638] sm:$0xff] }
 0x454   : > { %4296 = vmatpush1.bf16.msra.mxu1 %v4295_v53  ;;  %v2048_v53 = vld [vmem:[#allocation3 + $0x8] sm:$0xf8] }
 0x455   : > { %4298 = vmatprep.subr.bf16.mxu1 %v4297_v54  ;;  %v4329_v54 = vpack.c.bf16 %v2059_v48, %v2057_v46  ;;  %v2124_v61 = vrot.slane %v2048_v53, 3  ;;  %v2072_v48 = vld [vmem:[#allocation14 + $0x6a0] sm:$0xff]  ;;  %v2074_v53 = vld [vmem:[#allocation14 + $0x6b0] sm:$0xff] }
 0x457   : > { %v2126_v4 = vsel %vm2120_vm1, %v2124_v61, %v2125_v62  ;;  %v2518_v61 = vld [vmem:[#allocation17 + $0x280] sm:$0xff] }
 0x458   : > { %4300 = vmatpush1.bf16.msra.mxu1 %v4299_v15  ;;  %v2061_v15 = vld [vmem:[#allocation14 + $0x648] sm:$0xff] }
 0x459   : > { %4302 = vmatprep.subr.bf16.mxu1 %v4301_v7  ;;  %v2063_v7 = vld [vmem:[#allocation14 + $0x658] sm:$0xff] }
 0x45a   : > { %v4333_v63 = vpack.c.bf16 %v2063_v7, %v2061_v15  ;;  %v4347_v15 = vpack.c.bf16 %v2074_v53, %v2072_v48  ;;  %v2076_v7 = vld [vmem:[#allocation14 + $0x6c0] sm:$0xff]  ;;  %v2093_v48 = vld [vmem:[#allocation14 + $0x748] sm:$0xff] }
 0x45c   : > { %4304 = vmatpush1.bf16.msra.mxu1 %v4303_v2  ;;  %v2060_v2 = vld [vmem:[#allocation14 + $0x640] sm:$0xff] }
 0x45d   : > { %4306 = vmatprep.subr.bf16.mxu1 %v4305_v5  ;;  %v2062_v5 = vld [vmem:[#allocation14 + $0x650] sm:$0xff] }
 0x45e   : > { %v4335_v22 = vpack.c.bf16 %v2062_v5, %v2060_v2  ;;  %v2078_v2 = vld [vmem:[#allocation14 + $0x6d0] sm:$0xff] }
 0x45f   : > { %v2523_v5 = vld [vmem:[#allocation17 + $0x2a8] sm:$0xff] }
 0x460   : > { %4308 = vmatpush1.bf16.msra.mxu1 %v4307_v16  ;;  %v2066_v16 = vld [vmem:[#allocation14 + $0x670] sm:$0xff] }
 0x461   : > { %4310 = vmatprep.subr.bf16.mxu1 %v4309_v18  ;;  %v2503_v18 = vld [vmem:[#allocation17 + $0x208] sm:$0xff] }
 0x462   : > { %v4453_v23 = vpack.c.bf16 %v2505_v20, %v2503_v18  ;;  %v2522_v20 = vld [vmem:[#allocation17 + $0x2a0] sm:$0xff] }
 0x464   : > { %4312 = vmatpush1.bf16.msra.mxu1 %v4311_v24  ;;  %v2504_v24 = vld [vmem:[#allocation17 + $0x210] sm:$0xff]  ;;  %4454 = vmatprep.subr.bf16.mxu0 %v4453_v23 }
 0x465   : > { %4314 = vmatprep.subr.bf16.mxu1 %v4313_v25  ;;  %v2507_v25 = vld [vmem:[#allocation17 + $0x228] sm:$0xff]  ;;  %v4455_v28 = vpack.c.bf16 %v2504_v24, %v2502_v21  ;;  %v2524_v21 = vld [vmem:[#allocation17 + $0x2b0] sm:$0xff] }
 0x466   : > { %v4457_v0 = vpack.c.bf16 %v2509_v26, %v2507_v25  ;;  %v2082_v23 = vld [vmem:[#allocation14 + $0x6f0] sm:$0xff]  ;;  %v2529_v25 = vld [vmem:[#allocation17 + $0x2d8] sm:$0xff]  ;;  %v2085_v26 = vld [vmem:[#allocation14 + $0x708] sm:$0xff] }
 0x467   : > { %4456 = vmatpush1.bf16.msra.mxu0 %v4455_v28  ;;  %v2527_v24 = vld [vmem:[#allocation17 + $0x2c8] sm:$0xff]  ;;  %v4475_v28 = vpack.c.bf16 %v2524_v21, %v2522_v20 }
 0x468   : > { %4316 = vmatpush1.bf16.msra.mxu1 %v4315_v29  ;;  %v2506_v29 = vld [vmem:[#allocation17 + $0x220] sm:$0xff]  ;;  %4458 = vmatprep.subr.bf16.mxu0 %v4457_v0 }
 0x469   : > { %4318 = vmatprep.subr.bf16.mxu1 %v4317_v30  ;;  %v2508_v30 = vld [vmem:[#allocation17 + $0x230] sm:$0xff] }
 0x46c   : > { %4320 = vmatpush1.bf16.msra.mxu1 %v4319_v36  ;;  %v4459_v36 = vpack.c.bf16 %v2508_v30, %v2506_v29  ;;  %v2084_v29 = vld [vmem:[#allocation14 + $0x700] sm:$0xff]  ;;  %v4477_v30 = vpack.c.bf16 %v2529_v25, %v2527_v24  ;;  %v2544_v24 = vld [vmem:[#allocation17 + $0x350] sm:$0xff] }
 0x46d   : > { %4322 = vmatprep.subr.bf16.mxu1 %v4321_v34  ;;  %v4339_v34 = vpack.c.bf16 %v2066_v16, %v2064_v13  ;;  %v4351_v13 = vpack.c.bf16 %v2078_v2, %v2076_v7  ;;  %v2080_v16 = vld [vmem:[#allocation14 + $0x6e0] sm:$0xff]  ;;  %v4359_v41 = vpack.c.bf16 %v2086_v35, %v2084_v29  ;;  %v2097_v7 = vld [vmem:[#allocation14 + $0x768] sm:$0xff] }
 0x46e   : > { %4460 = vmatpush1.bf16.msra.mxu0 %v4459_v36  ;;  %v4355_v0 = vpack.c.bf16 %v2082_v23, %v2080_v16  ;;  %v2531_v36 = vld [vmem:[#allocation17 + $0x2e8] sm:$0xff]  ;;  %v2542_v23 = vld [vmem:[#allocation17 + $0x340] sm:$0xff] }
 0x46f   : > { %4462 = vmatprep.subr.bf16.mxu0 %v4461_v38  ;;  %v2091_v38 = vld [vmem:[#allocation14 + $0x738] sm:$0xff]  ;;  %v2101_v16 = vld [vmem:[#allocation14 + $0x788] sm:$0xff]  ;;  %v4495_v29 = vpack.c.bf16 %v2544_v24, %v2542_v23 }
 0x470   : > { %4324 = vmatpush1.bf16.msra.mxu1 %v4323_v42  ;;  %v2070_v42 = vld [vmem:[#allocation14 + $0x690] sm:$0xff]  ;;  %v2109_v35 = vld [vmem:[#allocation14 + $0x7c8] sm:$0xff] }
 0x471   : > { %4326 = vmatprep.subr.bf16.mxu1 %v4325_v40  ;;  %v2517_v40 = vld [vmem:[#allocation17 + $0x278] sm:$0xff]  ;;  %v4343_v46 = vpack.c.bf16 %v2070_v42, %v2068_v37  ;;  %v2089_v37 = vld [vmem:[#allocation14 + $0x728] sm:$0xff] }
 0x472   : > { %v4465_v17 = vpack.c.bf16 %v2517_v40, %v2515_v14  ;;  %4464 = vmatpush1.bf16.msra.mxu0 %v4463_v45  ;;  %v2530_v14 = vld [vmem:[#allocation17 + $0x2e0] sm:$0xff]  ;;  %v2532_v40 = vld [vmem:[#allocation17 + $0x2f0] sm:$0xff]  ;;  %v2535_v45 = vld [vmem:[#allocation17 + $0x308] sm:$0xff] }
 0x473   : > { %2031 = vmatmul.mubr.f32.vlgmr.msra.gmra.mrb[4].mxu1 %v1954_v9  ;;  %v2079_v9 = vld [vmem:[#allocation14 + $0x6d8] sm:$0xff]  ;;  %v4483_v47 = vpack.c.bf16 %v2532_v40, %v2530_v14  ;;  %v2112_v40 = vld [vmem:[#allocation14 + $0x7e0] sm:$0xff]  ;;  %v2234_v24 = vld [vmem:[#allocation14 + $0x868] sm:$0xff] }
 0x474   : > { %2036 = vmatprep.mubr.f32.mxu1 %v1961_v60  ;;  %4328 = vmatpush1.bf16.msra.mxu1 %v4327_v50  ;;  %v4345_v50 = vpack.c.bf16 %v2075_v44, %v2073_v43  ;;  %v4361_v43 = vpack.c.bf16 %v2091_v38, %v2089_v37  ;;  %v2090_v44 = vld [vmem:[#allocation14 + $0x730] sm:$0xff]  ;;  %v2108_v38 = vld [vmem:[#allocation14 + $0x7c0] sm:$0xff] }
 0x475   : > { %4330 = vmatprep.subr.bf16.mxu1 %v4329_v54  ;;  %v2519_v54 = vld [vmem:[#allocation17 + $0x288] sm:$0xff]  ;;  %4466 = vmatprep.subr.bf16.mxu0 %v4465_v17  ;;  %v2095_v17 = vld [vmem:[#allocation14 + $0x758] sm:$0xff] }
 0x476   : > { %v4469_v60 = vpack.c.bf16 %v2521_v57, %v2519_v54  ;;  %4468 = vmatpush1.bf16.msra.mxu0 %v4467_v12  ;;  %v2534_v54 = vld [vmem:[#allocation17 + $0x300] sm:$0xff]  ;;  %v2536_v57 = vld [vmem:[#allocation17 + $0x310] sm:$0xff]  ;;  %v2539_v12 = vld [vmem:[#allocation17 + $0x328] sm:$0xff] }
 0x477   : > { %2037 = vmatmul.mubr.f32.gmra.mrb[6].mxu1 %v1959_v6  ;;  %v2525_v6 = vld [vmem:[#allocation17 + $0x2b8] sm:$0xff] }
 0x478   : > { %4332 = vmatpush1.bf16.msra.mxu1 %v4331_v51  ;;  %2199 = vmatprep.mubr.f32.mxu1 %v2126_v4  ;;  %v2520_v51 = vld [vmem:[#allocation17 + $0x290] sm:$0xff]  ;;  %v4473_v18 = vpack.c.bf16 %v2525_v6, %v2523_v5  ;;  %v2538_v5 = vld [vmem:[#allocation17 + $0x320] sm:$0xff] }
 0x479   : > { %4334 = vmatprep.subr.bf16.mxu1 %v4333_v63  ;;  %v4349_v63 = vpack.c.bf16 %v2079_v9, %v2077_v58  ;;  %v4471_v4 = vpack.c.bf16 %v2520_v51, %v2518_v61  ;;  %4470 = vmatprep.subr.bf16.mxu0 %v4469_v60  ;;  %v4365_v58 = vpack.c.bf16 %v2095_v17, %v2093_v48  ;;  %v2094_v9 = vld [vmem:[#allocation14 + $0x750] sm:$0xff]  ;;  %v2099_v60 = vld [vmem:[#allocation14 + $0x778] sm:$0xff] }
 0x47a   : > { %v4487_v61 = vpack.c.bf16 %v2536_v57, %v2534_v54  ;;  %v2540_v6 = vld [vmem:[#allocation17 + $0x330] sm:$0xff]  ;;  %v2226_v54 = vld [vmem:[#allocation14 + $0x828] sm:$0xff] }
 0x47b   : > { %4472 = vmatpush1.bf16.msra.mxu0 %v4471_v4  ;;  %v2543_v4 = vld [vmem:[#allocation17 + $0x348] sm:$0xff]  ;;  %v4491_v20 = vpack.c.bf16 %v2540_v6, %v2538_v5  ;;  %v2050_v17 = vld [vmem:[#allocation3 + $0x28] sm:$0x7]  ;;  %v2228_v57 = vld [vmem:[#allocation14 + $0x838] sm:$0xff] }
 0x47c   : > { %4336 = vmatpush1.bf16.msra.mxu1 %v4335_v22  ;;  %v4353_v22 = vpack.c.bf16 %v2083_v10, %v2081_v8  ;;  %4474 = vmatprep.subr.bf16.mxu0 %v4473_v18  ;;  %v4369_v8 = vpack.c.bf16 %v2099_v60, %v2097_v7  ;;  %v2098_v10 = vld [vmem:[#allocation14 + $0x770] sm:$0xff]  ;;  %v2103_v18 = vld [vmem:[#allocation14 + $0x798] sm:$0xff]  ;;  %v2230_v6 = vld [vmem:[#allocation14 + $0x848] sm:$0xff] }
 0x47d   : > { %4338 = vmatprep.subr.bf16.mxu1 %v4337_v27  ;;  %v2087_v27 = vld [vmem:[#allocation14 + $0x718] sm:$0xff]  ;;  %v4373_v25 = vpack.c.bf16 %v2103_v18, %v2101_v16  ;;  %v6367_v16 = vld [vmem:[#allocation3 + $0x18] sm:$0xff] }
 0x47e   : > { %v4357_v31 = vpack.c.bf16 %v2087_v27, %v2085_v26  ;;  %v2100_v26 = vld [vmem:[#allocation14 + $0x780] sm:$0xff]  ;;  %v2102_v27 = vld [vmem:[#allocation14 + $0x790] sm:$0xff]  ;;  %v2217_v60 = vld [vmem:[#allocation3 + $0x8] sm:$0xf0]  ;;  %v2294_v18 = vrot.slane %v6367_v16, 4 }
 0x47f   : > { %4476 = vmatpush1.bf16.msra.mxu0 %v4475_v28  ;;  %v2105_v28 = vld [vmem:[#allocation14 + $0x7a8] sm:$0xff] }
 0x480   : > { %4340 = vmatpush1.bf16.msra.mxu1 %v4339_v34  ;;  %v2533_v34 = vld [vmem:[#allocation17 + $0x2f8] sm:$0xff]  ;;  %4478 = vmatprep.subr.bf16.mxu0 %v4477_v30  ;;  %v4375_v30 = vpack.c.bf16 %v2102_v27, %v2100_v26 }
 0x481   : > { %4342 = vmatprep.subr.bf16.mxu1 %v4341_v11  ;;  %v2088_v11 = vld [vmem:[#allocation14 + $0x720] sm:$0xff]  ;;  %v4481_v42 = vpack.c.bf16 %v2533_v34, %v2531_v36  ;;  %v2111_v36 = vld [vmem:[#allocation14 + $0x7d8] sm:$0xff] }
 0x482   : > { %v4363_v49 = vpack.c.bf16 %v2090_v44, %v2088_v11  ;;  %v4381_v37 = vpack.c.bf16 %v2111_v36, %v2109_v35  ;;  %v2115_v11 = vld [vmem:[#allocation14 + $0x7f8] sm:$0xff]  ;;  %v2222_v44 = vld [vmem:[#allocation14 + $0x808] sm:$0xff]  ;;  %v2233_v27 = vld [vmem:[#allocation14 + $0x860] sm:$0xff] }
 0x483   : > { %4480 = vmatpush1.bf16.msra.mxu0 %v4479_v39  ;;  %v2110_v39 = vld [vmem:[#allocation14 + $0x7d0] sm:$0xff]  ;;  %v2242_v35 = vld [vmem:[#allocation14 + $0x8a8] sm:$0xff]  ;;  %v2244_v36 = vld [vmem:[#allocation14 + $0x8b8] sm:$0xff] }
 0x484   : > { %4344 = vmatpush1.bf16.msra.mxu1 %v4343_v46  ;;  %v2537_v46 = vld [vmem:[#allocation17 + $0x318] sm:$0xff]  ;;  %4482 = vmatprep.subr.bf16.mxu0 %v4481_v42  ;;  %v4383_v42 = vpack.c.bf16 %v2110_v39, %v2108_v38  ;;  %v2243_v39 = vld [vmem:[#allocation14 + $0x8b0] sm:$0xff] }
 0x485   : > { %4346 = vmatprep.subr.bf16.mxu1 %v4345_v50  ;;  %v2092_v50 = vld [vmem:[#allocation14 + $0x740] sm:$0xff]  ;;  %v4485_v53 = vpack.c.bf16 %v2537_v46, %v2535_v45  ;;  %v2224_v45 = vld [vmem:[#allocation14 + $0x818] sm:$0xff]  ;;  %v2047_v46 = vld [vmem:[#allocation3] sm:$0xf8] }
 0x486   : > { %v4367_v51 = vpack.c.bf16 %v2094_v9, %v2092_v50  ;;  %v2223_v50 = vld [vmem:[#allocation14 + $0x810] sm:$0xff]  ;;  %v2049_v9 = vld [vmem:[#allocation3 + $0x20] sm:$0x7]  ;;  %v2241_v38 = vld [vmem:[#allocation14 + $0x8a0] sm:$0xff] }
 0x487   : > { %4484 = vmatpush1.bf16.msra.mxu0 %v4483_v47  ;;  %v4389_v47 = vpack.c.bf16 %v2224_v45, %v2222_v44  ;;  %v2127_v5 = vrot.slane %v2049_v9, 3  ;;  %v2250_v44 = vld [vmem:[#allocation14 + $0x8e8] sm:$0xff]  ;;  %v2252_v45 = vld [vmem:[#allocation14 + $0x8f8] sm:$0xff] }
 0x488   : > { %4348 = vmatpush1.bf16.msra.mxu1 %v4347_v15  ;;  %v2541_v15 = vld [vmem:[#allocation17 + $0x338] sm:$0xff]  ;;  %4486 = vmatprep.subr.bf16.mxu0 %v4485_v53  ;;  %v2121_v53 = vrot.slane %v2047_v46, 3  ;;  %v2258_v9 = vld [vmem:[#allocation14 + $0x928] sm:$0xff] }
 0x489   : > { %4350 = vmatprep.subr.bf16.mxu1 %v4349_v63  ;;  %v2096_v63 = vld [vmem:[#allocation14 + $0x760] sm:$0xff]  ;;  %v4489_v2 = vpack.c.bf16 %v2541_v15, %v2539_v12 }
 0x48a   : > { %v4371_v21 = vpack.c.bf16 %v2098_v10, %v2096_v63  ;;  %v6360_v12 = vld [vmem:[#allocation3 + $0x10] sm:$0xff]  ;;  %v2227_v63 = vld [vmem:[#allocation14 + $0x830] sm:$0xff] }
 0x48b   : > { %4488 = vmatpush1.bf16.msra.mxu0 %v4487_v61  ;;  %v2122_v15 = vrot.slane %v6360_v12, 3  ;;  %v4393_v61 = vpack.c.bf16 %v2228_v57, %v2226_v54  ;;  %v2253_v57 = vld [vmem:[#allocation14 + $0x900] sm:$0xff] }
 0x48c   : > { %4352 = vmatpush1.bf16.msra.mxu1 %v4351_v13  ;;  %v2545_v13 = vld [vmem:[#allocation17 + $0x358] sm:$0xff]  ;;  %4490 = vmatprep.subr.bf16.mxu0 %v4489_v2 }
 0x48d   : > { %4354 = vmatprep.subr.bf16.mxu1 %v4353_v22  ;;  %v4493_v22 = vpack.c.bf16 %v2545_v13, %v2543_v4  ;;  %v2123_v2 = vsel %vm2120_vm1, %v2121_v53, %v2122_v15  ;;  %v2293_v4 = vrot.slane %v2217_v60, 4  ;;  %v2128_v23 = vsel %vm2120_vm1, %v2122_v15, %v2127_v5  ;;  %v2260_v15 = vld [vmem:[#allocation14 + $0x938] sm:$0xff] }
 0x48e   : > { %v4425_v60 = vpack.c.bf16 %v2260_v15, %v2258_v9  ;;  %v2546_v15 = vld [vmem:[#allocation17 + $0x360] sm:$0xff] }
 0x48f   : > { %4492 = vmatpush1.bf16.msra.mxu0 %v4491_v20  ;;  %v2295_v19 = vsel %vm703_vm6, %v2293_v4, %v2294_v18  ;;  %v2266_v4 = vld [vmem:[#allocation14 + $0x968] sm:$0xff] }
 0x490   : > { %4356 = vmatpush1.bf16.msra.mxu1 %v4355_v0  ;;  %v2107_v0 = vld [vmem:[#allocation14 + $0x7b8] sm:$0xff]  ;;  %4494 = vmatprep.subr.bf16.mxu0 %v4493_v22  ;;  %v2231_v22 = vld [vmem:[#allocation14 + $0x850] sm:$0xff] }
 0x491   : > { %4358 = vmatprep.subr.bf16.mxu1 %v4357_v31  ;;  %v4377_v32 = vpack.c.bf16 %v2107_v0, %v2105_v28  ;;  %v2106_v31 = vld [vmem:[#allocation14 + $0x7b0] sm:$0xff]  ;;  %v2238_v0 = vld [vmem:[#allocation14 + $0x888] sm:$0xff] }
 0x492   : > { %v4379_v34 = vpack.c.bf16 %v2106_v31, %v2104_v33  ;;  %v2235_v28 = vld [vmem:[#allocation14 + $0x870] sm:$0xff]  ;;  %v2237_v33 = vld [vmem:[#allocation14 + $0x880] sm:$0xff] }
 0x493   : > { %4496 = vmatpush1.bf16.msra.mxu0 %v4495_v29  ;;  %v2240_v29 = vld [vmem:[#allocation14 + $0x898] sm:$0xff]  ;;  %v2239_v31 = vld [vmem:[#allocation14 + $0x890] sm:$0xff] }
 0x494   : > { %4360 = vmatpush1.bf16.msra.mxu1 %v4359_v41  ;;  %v2113_v41 = vld [vmem:[#allocation14 + $0x7e8] sm:$0xff] }
 0x495   : > { %4362 = vmatprep.subr.bf16.mxu1 %v4361_v43  ;;  %v4385_v14 = vpack.c.bf16 %v2115_v11, %v2113_v41  ;;  %v2114_v43 = vld [vmem:[#allocation14 + $0x7f0] sm:$0xff]  ;;  %v2246_v41 = vld [vmem:[#allocation14 + $0x8c8] sm:$0xff]  ;;  %v2248_v11 = vld [vmem:[#allocation14 + $0x8d8] sm:$0xff] }
 0x496   : > { %v4387_v48 = vpack.c.bf16 %v2114_v43, %v2112_v40  ;;  %v2245_v40 = vld [vmem:[#allocation14 + $0x8c0] sm:$0xff]  ;;  %v2247_v43 = vld [vmem:[#allocation14 + $0x8d0] sm:$0xff] }
 0x497   : > { %v4415_v46 = vpack.c.bf16 %v2247_v43, %v2245_v40  ;;  %v2283_v40 = vld [vmem:[#allocation14 + $0x9f0] sm:$0xff] }
 0x498   : > { %4364 = vmatpush1.bf16.msra.mxu1 %v4363_v49  ;;  %v2221_v49 = vld [vmem:[#allocation14 + $0x800] sm:$0xff]  ;;  %v2216_v43 = vld [vmem:[#allocation3] sm:$0xf0] }
 0x499   : > { %4366 = vmatprep.subr.bf16.mxu1 %v4365_v58  ;;  %v2129_v58 = vrot.slane %v2050_v17, 3  ;;  %v4391_v7 = vpack.c.bf16 %v2223_v50, %v2221_v49  ;;  %v2249_v17 = vld [vmem:[#allocation14 + $0x8e0] sm:$0xff]  ;;  %v2254_v49 = vld [vmem:[#allocation14 + $0x908] sm:$0xff]  ;;  %v2256_v50 = vld [vmem:[#allocation14 + $0x918] sm:$0xff] }
 0x49a   : > { %v4421_v54 = vpack.c.bf16 %v2256_v50, %v2254_v49 }
 0x49b   : > { %v2130_v10 = vsel %vm2120_vm1, %v2125_v62, %v2129_v58  ;;  %v2255_v58 = vld [vmem:[#allocation14 + $0x910] sm:$0xff] }
 0x49c   : > { %4368 = vmatpush1.bf16.msra.mxu1 %v4367_v51  ;;  %v2225_v51 = vld [vmem:[#allocation14 + $0x820] sm:$0xff] }
 0x49d   : > { %4370 = vmatprep.subr.bf16.mxu1 %v4369_v8  ;;  %v2232_v8 = vld [vmem:[#allocation14 + $0x858] sm:$0xff]  ;;  %v4395_v13 = vpack.c.bf16 %v2227_v63, %v2225_v51  ;;  %v2259_v51 = vld [vmem:[#allocation14 + $0x930] sm:$0xff]  ;;  %v2262_v63 = vld [vmem:[#allocation14 + $0x948] sm:$0xff] }
 0x49e   : > { %v4397_v20 = vpack.c.bf16 %v2232_v8, %v2230_v6  ;;  %v2261_v8 = vld [vmem:[#allocation14 + $0x940] sm:$0xff] }
 0x4a0   : > { %4372 = vmatpush1.bf16.msra.mxu1 %v4371_v21  ;;  %v2229_v21 = vld [vmem:[#allocation14 + $0x840] sm:$0xff] }
 0x4a1   : > { %4374 = vmatprep.subr.bf16.mxu1 %v4373_v25  ;;  %v2236_v25 = vld [vmem:[#allocation14 + $0x878] sm:$0xff]  ;;  %v4399_v62 = vpack.c.bf16 %v2231_v22, %v2229_v21  ;;  %v2265_v22 = vld [vmem:[#allocation14 + $0x960] sm:$0xff] }
 0x4a2   : > { %v4401_v26 = vpack.c.bf16 %v2236_v25, %v2234_v24  ;;  %v2270_v24 = vld [vmem:[#allocation14 + $0x988] sm:$0xff]  ;;  %v2272_v25 = vld [vmem:[#allocation14 + $0x998] sm:$0xff] }
 0x4a4   : > { %4376 = vmatpush1.bf16.msra.mxu1 %v4375_v30  ;;  %v4403_v30 = vpack.c.bf16 %v2235_v28, %v2233_v27  ;;  %v2271_v27 = vld [vmem:[#allocation14 + $0x990] sm:$0xff]  ;;  %v2274_v28 = vld [vmem:[#allocation14 + $0x9a8] sm:$0xff] }
 0x4a5   : > { %4378 = vmatprep.subr.bf16.mxu1 %v4377_v32  ;;  %v4405_v32 = vpack.c.bf16 %v2240_v29, %v2238_v0  ;;  %v2276_v0 = vld [vmem:[#allocation14 + $0x9b8] sm:$0xff] }
 0x4a8   : > { %4380 = vmatpush1.bf16.msra.mxu1 %v4379_v34  ;;  %v4407_v34 = vpack.c.bf16 %v2239_v31, %v2237_v33  ;;  %v2275_v33 = vld [vmem:[#allocation14 + $0x9b0] sm:$0xff]  ;;  %v2278_v31 = vld [vmem:[#allocation14 + $0x9c8] sm:$0xff] }
 0x4a9   : > { %4382 = vmatprep.subr.bf16.mxu1 %v4381_v37  ;;  %v4409_v37 = vpack.c.bf16 %v2244_v36, %v2242_v35  ;;  %v2280_v35 = vld [vmem:[#allocation14 + $0x9d8] sm:$0xff] }
 0x4ac   : > { %4384 = vmatpush1.bf16.msra.mxu1 %v4383_v42  ;;  %v4411_v42 = vpack.c.bf16 %v2243_v39, %v2241_v38  ;;  %v2279_v38 = vld [vmem:[#allocation14 + $0x9d0] sm:$0xff]  ;;  %v2282_v39 = vld [vmem:[#allocation14 + $0x9e8] sm:$0xff] }
 0x4ad   : > { %4386 = vmatprep.subr.bf16.mxu1 %v4385_v14  ;;  %v4413_v14 = vpack.c.bf16 %v2248_v11, %v2246_v41  ;;  %v2284_v41 = vld [vmem:[#allocation14 + $0x9f8] sm:$0xff] }
 0x4b0   : > { %4388 = vmatpush1.bf16.msra.mxu1 %v4387_v48  ;;  %v4417_v48 = vpack.c.bf16 %v2252_v45, %v2250_v44  ;;  %v2219_v45 = vld [vmem:[#allocation3 + $0x28] sm:$0xf] }
 0x4b1   : > { %4390 = vmatprep.subr.bf16.mxu1 %v4389_v47  ;;  %v2251_v47 = vld [vmem:[#allocation14 + $0x8f0] sm:$0xff] }
 0x4b2   : > { %v4419_v53 = vpack.c.bf16 %v2251_v47, %v2249_v17  ;;  %v2218_v17 = vld [vmem:[#allocation3 + $0x20] sm:$0xf]  ;;  %v2291_v47 = vrot.slane %v6360_v12, 4 }
 0x4b3   : > { %2200 = vmatmul.mubr.f32.vlgmr.msra.gmra.mrb[4].mxu1 %v2123_v2  ;;  %v2264_v2 = vld [vmem:[#allocation14 + $0x958] sm:$0xff]  ;;  %v2296_v50 = vrot.slane %v2218_v17, 4  ;;  %v2551_v12 = vld [vmem:[#allocation17 + $0x388] sm:$0xff] }
 0x4b4   : > { %2205 = vmatprep.mubr.f32.mxu1 %v2130_v10  ;;  %4392 = vmatpush1.bf16.msra.mxu1 %v4391_v7  ;;  %v4423_v7 = vpack.c.bf16 %v2255_v58, %v2253_v57  ;;  %v4429_v6 = vpack.c.bf16 %v2264_v2, %v2262_v63  ;;  %v2263_v10 = vld [vmem:[#allocation14 + $0x950] sm:$0xff]  ;;  %v2549_v58 = vld [vmem:[#allocation17 + $0x378] sm:$0xff]  ;;  %v2550_v63 = vld [vmem:[#allocation17 + $0x380] sm:$0xff] }
 0x4b5   : > { %4394 = vmatprep.subr.bf16.mxu1 %v4393_v61  ;;  %v2257_v61 = vld [vmem:[#allocation14 + $0x920] sm:$0xff]  ;;  %v2547_v57 = vld [vmem:[#allocation17 + $0x368] sm:$0xff]  ;;  %v2552_v2 = vld [vmem:[#allocation17 + $0x390] sm:$0xff] }
 0x4b6   : > { %v4427_v5 = vpack.c.bf16 %v2259_v51, %v2257_v61  ;;  %v4497_v9 = vpack.c.bf16 %v2549_v58, %v2547_v57  ;;  %v2553_v61 = vld [vmem:[#allocation17 + $0x398] sm:$0xff]  ;;  %v4503_v16 = vpack.c.bf16 %v2552_v2, %v2550_v63  ;;  %v2435_v17 = vld [vmem:[#allocation17 + $0x10] sm:$0xff] }
 0x4b7   : > { %2206 = vmatmul.mubr.f32.gmra.mrb[6].mxu1 %v2128_v23  ;;  %v2267_v23 = vld [vmem:[#allocation14 + $0x970] sm:$0xff]  ;;  %v4501_v51 = vpack.c.bf16 %v2553_v61, %v2551_v12  ;;  %v2437_v12 = vld [vmem:[#allocation17 + $0x20] sm:$0xff] }
 0x4b8   : > { %4396 = vmatpush1.bf16.msra.mxu1 %v4395_v13  ;;  %2368 = vmatprep.mubr.f32.mxu1 %v2295_v19  ;;  %v2268_v13 = vld [vmem:[#allocation14 + $0x978] sm:$0xff]  ;;  %v4435_v19 = vpack.c.bf16 %v2267_v23, %v2265_v22 }
 0x4b9   : > { %4398 = vmatprep.subr.bf16.mxu1 %v4397_v20  ;;  %v4431_v20 = vpack.c.bf16 %v2263_v10, %v2261_v8  ;;  %v4433_v21 = vpack.c.bf16 %v2268_v13, %v2266_v4  ;;  %4498 = vmatprep.subr.bf16.mxu0 %v4497_v9  ;;  %v2554_v8 = vld [vmem:[#allocation17 + $0x3a0] sm:$0xff]  ;;  %v2556_v10 = vld [vmem:[#allocation17 + $0x3b0] sm:$0xff]  ;;  %v2559_v13 = vld [vmem:[#allocation17 + $0x3c8] sm:$0xff] }
 0x4ba   : > { %v4507_v4 = vpack.c.bf16 %v2556_v10, %v2554_v8  ;;  %v2560_v23 = vld [vmem:[#allocation17 + $0x3d0] sm:$0xff] }
 0x4bb   : > { %v2439_v61 = vld [vmem:[#allocation17 + $0x30] sm:$0xff] }
 0x4bc   : > { %4400 = vmatpush1.bf16.msra.mxu1 %v4399_v62  ;;  %v4437_v62 = vpack.c.bf16 %v2272_v25, %v2270_v24  ;;  %v2563_v24 = vld [vmem:[#allocation17 + $0x3e8] sm:$0xff]  ;;  %v2565_v25 = vld [vmem:[#allocation17 + $0x3f8] sm:$0xff] }
 0x4bd   : > { %4402 = vmatprep.subr.bf16.mxu1 %v4401_v26  ;;  %v2269_v26 = vld [vmem:[#allocation14 + $0x980] sm:$0xff] }
 0x4be   : > { %v4439_v29 = vpack.c.bf16 %v2271_v27, %v2269_v26  ;;  %v2562_v26 = vld [vmem:[#allocation17 + $0x3e0] sm:$0xff]  ;;  %v2564_v27 = vld [vmem:[#allocation17 + $0x3f0] sm:$0xff] }
 0x4c0   : > { %4404 = vmatpush1.bf16.msra.mxu1 %v4403_v30  ;;  %v4441_v30 = vpack.c.bf16 %v2276_v0, %v2274_v28  ;;  %v4515_v28 = vpack.c.bf16 %v2564_v27, %v2562_v26  ;;  %v2434_v0 = vld [vmem:[#allocation17 + $0x8] sm:$0xff]  ;;  %v2452_v27 = vld [vmem:[#allocation17 + $0x98] sm:$0xff] }
 0x4c1   : > { %4406 = vmatprep.subr.bf16.mxu1 %v4405_v32  ;;  %v2273_v32 = vld [vmem:[#allocation14 + $0x9a0] sm:$0xff]  ;;  %v2450_v26 = vld [vmem:[#allocation17 + $0x88] sm:$0xff] }
 0x4c2   : > { %v4443_v36 = vpack.c.bf16 %v2275_v33, %v2273_v32  ;;  %v2385_v32 = vld [vmem:[#allocation16] sm:$0x3] }
 0x4c3   : > { %v2390_v33 = vrot.slane %v2385_v32, %v6278_v1 }
 0x4c4   : > { %4408 = vmatpush1.bf16.msra.mxu1 %v4407_v34  ;;  %v4445_v34 = vpack.c.bf16 %v2280_v35, %v2278_v31  ;;  %v2394_v31 = vrot.slane %v2385_v32, %v6280_v3  ;;  %v2454_v32 = vld [vmem:[#allocation17 + $0xa8] sm:$0xff] }
 0x4c5   : > { %4410 = vmatprep.subr.bf16.mxu1 %v4409_v37  ;;  %v2277_v37 = vld [vmem:[#allocation14 + $0x9c0] sm:$0xff] }
 0x4c6   : > { %v4447_v11 = vpack.c.bf16 %v2279_v38, %v2277_v37 }
 0x4c8   : > { %4412 = vmatpush1.bf16.msra.mxu1 %v4411_v42  ;;  %v4449_v42 = vpack.c.bf16 %v2284_v41, %v2282_v39 }
 0x4c9   : > { %4414 = vmatprep.subr.bf16.mxu1 %v4413_v14  ;;  %v2281_v14 = vld [vmem:[#allocation14 + $0x9e0] sm:$0xff] }
 0x4ca   : > { %v4451_v44 = vpack.c.bf16 %v2283_v40, %v2281_v14 }
 0x4cc   : > { %4416 = vmatpush1.bf16.msra.mxu1 %v4415_v46  ;;  %v2290_v46 = vrot.slane %v2216_v43, 4 }
 0x4cd   : > { %4418 = vmatprep.subr.bf16.mxu1 %v4417_v48  ;;  %v2298_v48 = vrot.slane %v2219_v45, 4 }
 0x4ce   : > { %v2292_v49 = vsel %vm703_vm6, %v2290_v46, %v2291_v47 }
 0x4d0   : > { %4420 = vmatpush1.bf16.msra.mxu1 %v4419_v53  ;;  %v2299_v53 = vsel %vm703_vm6, %v2294_v18, %v2298_v48  ;;  %v2555_v18 = vld [vmem:[#allocation17 + $0x3a8] sm:$0xff]  ;;  %v2433_v48 = vld [vmem:[#allocation17] sm:$0xff] }
 0x4d1   : > { %4422 = vmatprep.subr.bf16.mxu1 %v4421_v54  ;;  %v2297_v54 = vsel %vm703_vm6, %v2291_v47, %v2296_v50  ;;  %v2438_v50 = vld [vmem:[#allocation17 + $0x28] sm:$0xff]  ;;  %v4519_v9 = vpack.c.bf16 %v2435_v17, %v2433_v48  ;;  %v2461_v48 = vld [vmem:[#allocation17 + $0xe0] sm:$0xff]  ;;  %v2463_v17 = vld [vmem:[#allocation17 + $0xf0] sm:$0xff] }
 0x4d4   : > { %4424 = vmatpush1.bf16.msra.mxu1 %v4423_v7  ;;  %v2548_v7 = vld [vmem:[#allocation17 + $0x370] sm:$0xff] }
 0x4d5   : > { %4426 = vmatprep.subr.bf16.mxu1 %v4425_v60  ;;  %v4499_v60 = vpack.c.bf16 %v2548_v7, %v2546_v15 }
 0x4d7   : > { %4500 = vmatpush1.bf16.msra.mxu0 %v4499_v60 }
 0x4d8   : > { %4428 = vmatpush1.bf16.msra.mxu1 %v4427_v5  ;;  %4502 = vmatprep.subr.bf16.mxu0 %v4501_v51  ;;  %v2557_v5 = vld [vmem:[#allocation17 + $0x3b8] sm:$0xff] }
 0x4d9   : > { %4430 = vmatprep.subr.bf16.mxu1 %v4429_v6  ;;  %v4505_v6 = vpack.c.bf16 %v2557_v5, %v2555_v18  ;;  %v2444_v18 = vld [vmem:[#allocation17 + $0x58] sm:$0xff] }
 0x4db   : > { %4504 = vmatpush1.bf16.msra.mxu0 %v4503_v16  ;;  %v2442_v16 = vld [vmem:[#allocation17 + $0x48] sm:$0xff] }
 0x4dc   : > { %4432 = vmatpush1.bf16.msra.mxu1 %v4431_v20  ;;  %v2561_v20 = vld [vmem:[#allocation17 + $0x3d8] sm:$0xff]  ;;  %4506 = vmatprep.subr.bf16.mxu0 %v4505_v6  ;;  %v4523_v6 = vpack.c.bf16 %v2439_v61, %v2437_v12  ;;  %v4525_v10 = vpack.c.bf16 %v2444_v18, %v2442_v16  ;;  %v2471_v12 = vld [vmem:[#allocation17 + $0x130] sm:$0xff]  ;;  %v2474_v61 = vld [vmem:[#allocation17 + $0x148] sm:$0xff] }
 0x4dd   : > { %4434 = vmatprep.subr.bf16.mxu1 %v4433_v21  ;;  %v2558_v21 = vld [vmem:[#allocation17 + $0x3c0] sm:$0xff]  ;;  %v4509_v22 = vpack.c.bf16 %v2561_v20, %v2559_v13  ;;  %v2443_v13 = vld [vmem:[#allocation17 + $0x50] sm:$0xff] }
 0x4de   : > { %v2473_v16 = vld [vmem:[#allocation17 + $0x140] sm:$0xff]  ;;  %v2475_v18 = vld [vmem:[#allocation17 + $0x150] sm:$0xff] }
 0x4df   : > { %4508 = vmatpush1.bf16.msra.mxu0 %v4507_v4  ;;  %v2441_v4 = vld [vmem:[#allocation17 + $0x40] sm:$0xff] }
 0x4e0   : > { %4436 = vmatpush1.bf16.msra.mxu1 %v4435_v19  ;;  %v4511_v19 = vpack.c.bf16 %v2560_v23, %v2558_v21  ;;  %4510 = vmatprep.subr.bf16.mxu0 %v4509_v22  ;;  %v2446_v21 = vld [vmem:[#allocation17 + $0x68] sm:$0xff]  ;;  %v2448_v22 = vld [vmem:[#allocation17 + $0x78] sm:$0xff] }
 0x4e1   : > { %4438 = vmatprep.subr.bf16.mxu1 %v4437_v62  ;;  %v4513_v62 = vpack.c.bf16 %v2565_v25, %v2563_v24  ;;  %v4527_v24 = vpack.c.bf16 %v2443_v13, %v2441_v4  ;;  %v4529_v25 = vpack.c.bf16 %v2448_v22, %v2446_v21  ;;  %v2477_v4 = vld [vmem:[#allocation17 + $0x160] sm:$0xff]  ;;  %v2479_v13 = vld [vmem:[#allocation17 + $0x170] sm:$0xff]  ;;  %v2484_v21 = vld [vmem:[#allocation17 + $0x198] sm:$0xff] }
 0x4e2   : > { %v4563_v22 = vpack.c.bf16 %v2479_v13, %v2477_v4  ;;  %v2764_v4 = vld [vmem:[#allocation17 + $0x498] sm:$0xff] }
 0x4e3   : > { %4512 = vmatpush1.bf16.msra.mxu0 %v4511_v19  ;;  %v2445_v19 = vld [vmem:[#allocation17 + $0x60] sm:$0xff] }
 0x4e4   : > { %4440 = vmatpush1.bf16.msra.mxu1 %v4439_v29  ;;  %v2436_v29 = vld [vmem:[#allocation17 + $0x18] sm:$0xff]  ;;  %4514 = vmatprep.subr.bf16.mxu0 %v4513_v62  ;;  %v2447_v62 = vld [vmem:[#allocation17 + $0x70] sm:$0xff] }
 0x4e5   : > { %4442 = vmatprep.subr.bf16.mxu1 %v4441_v30  ;;  %v4517_v30 = vpack.c.bf16 %v2436_v29, %v2434_v0  ;;  %v4533_v0 = vpack.c.bf16 %v2452_v27, %v2450_v26  ;;  %v2449_v29 = vld [vmem:[#allocation17 + $0x80] sm:$0xff] }
 0x4e7   : > { %4516 = vmatpush1.bf16.msra.mxu0 %v4515_v28  ;;  %v4531_v28 = vpack.c.bf16 %v2447_v62, %v2445_v19  ;;  %v2486_v19 = vld [vmem:[#allocation17 + $0x1a8] sm:$0xff]  ;;  %v2488_v62 = vld [vmem:[#allocation17 + $0x1b8] sm:$0xff] }
 0x4e8   : > { %4444 = vmatpush1.bf16.msra.mxu1 %v4443_v36  ;;  %4518 = vmatprep.subr.bf16.mxu0 %v4517_v30  ;;  %v2451_v30 = vld [vmem:[#allocation17 + $0x90] sm:$0xff]  ;;  %v4569_v27 = vpack.c.bf16 %v2488_v62, %v2486_v19  ;;  %v2765_v62 = vld [vmem:[#allocation17 + $0x4a0] sm:$0xff] }
 0x4e9   : > { %4446 = vmatprep.subr.bf16.mxu1 %v4445_v34 }
 0x4ec   : > { %4448 = vmatpush1.bf16.msra.mxu1 %v4447_v11 }
 0x4ed   : > { %4450 = vmatprep.subr.bf16.mxu1 %v4449_v42 }
 0x4f0   : > { %4452 = vmatpush1.bf16.msra.mxu1 %v4451_v44 }
 0x4f3   : > { %2369 = vmatmul.mubr.f32.vlgmr.msra.gmra.mrb[4].mxu1 %v2292_v49 }
 0x4f4   : > { %2374 = vmatprep.mubr.f32.mxu1 %v2299_v53  ;;  %v2440_v53 = vld [vmem:[#allocation17 + $0x38] sm:$0xff] }
 0x4f5   : > { %v4521_v7 = vpack.c.bf16 %v2440_v53, %v2438_v50  ;;  %v4547_v50 = vpack.c.bf16 %v2463_v17, %v2461_v48  ;;  %v2750_v48 = vld [vmem:[#allocation17 + $0x428] sm:$0xff]  ;;  %v2752_v17 = vld [vmem:[#allocation17 + $0x438] sm:$0xff] }
 0x4f7   : > { %2375 = vmatmul.mubr.f32.gmra.mrb[6].mxu1 %v2297_v54 }
 0x5c6   : > { %v2370_v35 = vpop.f32.mrb[4].mxu1 }
 0x5c7   : > { %v2397_v36 = vadd.f32 %v2390_v33, %v2370_v35  ;;  %v2372_v34 = vpop.f32.mrb[5].mxu1 }
 0x5c8   : > { %v2398_v37 = vadd.f32 %v2394_v31, %v2372_v34  ;;  %v2455_v34 = vld [vmem:[#allocation17 + $0xb0] sm:$0xff] }
 0x5c9   : > { %v2411_v38 = vrot.slane %v2397_v36, 2  ;;  %v2453_v36 = vld [vmem:[#allocation17 + $0xa0] sm:$0xff] }
 0x5ca   : > { %v2412_v39 = vrot.slane %v2398_v37, 2  ;;  %v2376_v41 = vpop.f32.mrb[6].mxu1  ;;  %v2458_v37 = vld [vmem:[#allocation17 + $0xc8] sm:$0xff] }
 0x5cb   : > { %2423 = vst [vmem:[#allocation4] sm:$0xc0] %v2411_v38  ;;  %v2399_v11 = vadd.f32 %v2390_v33, %v2376_v41  ;;  %v2378_v42 = vpop.f32.mrb[7].mxu1  ;;  %v2456_v33 = vld [vmem:[#allocation17 + $0xb8] sm:$0xff] }
 0x5cc   : > { %2424 = vst [vmem:[#allocation4 + $0x8] sm:$0xc0] %v2412_v39  ;;  %v2400_v14 = vadd.f32 %v2394_v31, %v2378_v42  ;;  %v4535_v31 = vpack.c.bf16 %v2451_v30, %v2449_v29  ;;  %v4537_v35 = vpack.c.bf16 %v2456_v33, %v2454_v32  ;;  %v2459_v42 = vld [vmem:[#allocation17 + $0xd0] sm:$0xff]  ;;  %v2490_v29 = vld [vmem:[#allocation17 + $0x1c8] sm:$0xff]  ;;  %v2492_v30 = vld [vmem:[#allocation17 + $0x1d8] sm:$0xff] }
 0x5cd   : > { %v2413_v40 = vrot.slane %v2399_v11, 2  ;;  %v2457_v11 = vld [vmem:[#allocation17 + $0xc0] sm:$0xff]  ;;  %v4573_v33 = vpack.c.bf16 %v2492_v30, %v2490_v29 }
 0x5ce   : > { %v2415_v43 = vrot.slane %v2400_v14, 2  ;;  %v2462_v14 = vld [vmem:[#allocation17 + $0xe8] sm:$0xff]  ;;  %v2769_v30 = vld [vmem:[#allocation17 + $0x4c0] sm:$0xff] }
 0x5cf   : > { %v6383_v44 = vsel %vm1951_vm0, %v2411_v38, %v2413_v40  ;;  %2427 = vst [vmem:[#allocation4 + $0x20] sm:$0x3f] %v2413_v40  ;;  %v2460_v38 = vld [vmem:[#allocation17 + $0xd8] sm:$0xff] }
 0x5d0   : > { %2425 = vst [vmem:[#allocation4 + $0x10] sm:$0xff] %v6383_v44  ;;  %v6387_v45 = vsel %vm1951_vm0, %v2412_v39, %v2415_v43  ;;  %2428 = vst [vmem:[#allocation4 + $0x28] sm:$0x3f] %v2415_v43  ;;  %v2573_v58 = vrot.slane %v6383_v44, 3  ;;  %v4539_v39 = vpack.c.bf16 %v2455_v34, %v2453_v36  ;;  %v4541_v41 = vpack.c.bf16 %v2460_v38, %v2458_v37  ;;  %v2464_v40 = vld [vmem:[#allocation17 + $0xf8] sm:$0xff]  ;;  %v2494_v36 = vld [vmem:[#allocation17 + $0x1e8] sm:$0xff] }
 0x5d1   : > { %2426 = vst [vmem:[#allocation4 + $0x18] sm:$0xff] %v6387_v45  ;;  %v2576_v57 = vrot.slane %v6387_v45, 3  ;;  %v4543_v43 = vpack.c.bf16 %v2459_v42, %v2457_v11  ;;  %v2496_v34 = vld [vmem:[#allocation17 + $0x1f8] sm:$0xff]  ;;  %v2746_v11 = vld [vmem:[#allocation17 + $0x408] sm:$0xff] }
 0x5d2   : > { %v2497_v46 = vld [vmem:[#allocation4] sm:$0xf8]  ;;  %v4577_v38 = vpack.c.bf16 %v2496_v34, %v2494_v36 }
 0x5d3   : > { %v2498_v47 = vld [vmem:[#allocation4 + $0x8] sm:$0xf8]  ;;  %v2572_v49 = vrot.slane %v2497_v46, 3  ;;  %v4545_v46 = vpack.c.bf16 %v2464_v40, %v2462_v14  ;;  %v2748_v42 = vld [vmem:[#allocation17 + $0x418] sm:$0xff] }
 0x5d4   : > { %v2575_v54 = vrot.slane %v2498_v47, 3  ;;  %v2430_v23 = vld [vmem:[#allocation4 + $0x8] sm:$0xff]  ;;  %v4581_v40 = vpack.c.bf16 %v2748_v42, %v2746_v11 }
 0x5d5   : > { %v2574_v51 = vsel %vm2120_vm1, %v2572_v49, %v2573_v58  ;;  %v2466_v47 = vld [vmem:[#allocation17 + $0x108] sm:$0xff]  ;;  %v2468_v49 = vld [vmem:[#allocation17 + $0x118] sm:$0xff]  ;;  %v2773_v34 = vld [vmem:[#allocation17 + $0x4e0] sm:$0xff] }
 0x5d6   : > { %v2577_v15 = vsel %vm2120_vm1, %v2575_v54, %v2576_v57  ;;  %v2499_v60 = vld [vmem:[#allocation4 + $0x20] sm:$0x7]  ;;  %v4549_v53 = vpack.c.bf16 %v2468_v49, %v2466_v47  ;;  %v2465_v54 = vld [vmem:[#allocation17 + $0x100] sm:$0xff]  ;;  %v2741_v49 = vld [vmem:[#allocation4 + $0x8] sm:$0xc0] }
 0x5d7   : > { %2650 = vmatprep.mubr.f32.mxu0 %v2577_v15  ;;  %v2500_v63 = vld [vmem:[#allocation4 + $0x28] sm:$0x7]  ;;  %v2578_v2 = vrot.slane %v2499_v60, 3 }
 0x5d8   : > { %2651 = vmatmul.mubr.f32.vlgmr.msra.gmra.mrb[4].mxu0 %v2574_v51  ;;  %v2580_v5 = vrot.slane %v2500_v63, 3  ;;  %v2469_v60 = vld [vmem:[#allocation17 + $0x120] sm:$0xff]  ;;  %v2476_v51 = vld [vmem:[#allocation17 + $0x158] sm:$0xff] }
 0x5d9   : > { %4520 = vmatpush1.bf16.msra.mxu0 %v4519_v9  ;;  %v2579_v20 = vsel %vm2120_vm1, %v2573_v58, %v2578_v2  ;;  %v2470_v58 = vld [vmem:[#allocation17 + $0x128] sm:$0xff]  ;;  %v2472_v9 = vld [vmem:[#allocation17 + $0x138] sm:$0xff]  ;;  %v4555_v63 = vpack.c.bf16 %v2471_v12, %v2469_v60  ;;  %v4557_v2 = vpack.c.bf16 %v2476_v51, %v2474_v61  ;;  %v2817_v60 = vrot.slane %v6387_v45, 6  ;;  %v2753_v61 = vld [vmem:[#allocation17 + $0x440] sm:$0xff] }
 0x5da   : > { %v2581_v8 = vsel %vm2120_vm1, %v2576_v57, %v2580_v5  ;;  %4522 = vmatprep.subr.bf16.mxu0 %v4521_v7  ;;  %v2467_v57 = vld [vmem:[#allocation17 + $0x110] sm:$0xff]  ;;  %v4553_v7 = vpack.c.bf16 %v2472_v9, %v2470_v58  ;;  %v2478_v5 = vld [vmem:[#allocation17 + $0x168] sm:$0xff]  ;;  %v2756_v9 = vld [vmem:[#allocation17 + $0x458] sm:$0xff] }
 0x5db   : > { %2656 = vmatprep.mubr.f32.mxu0 %v2581_v8  ;;  %v4551_v15 = vpack.c.bf16 %v2467_v57, %v2465_v54  ;;  %v4559_v8 = vpack.c.bf16 %v2475_v18, %v2473_v16  ;;  %v2751_v54 = vld [vmem:[#allocation17 + $0x430] sm:$0xff]  ;;  %v2429_v57 = vld [vmem:[#allocation4] sm:$0xff]  ;;  %v2754_v58 = vld [vmem:[#allocation17 + $0x448] sm:$0xff] }
 0x5dc   : > { %2657 = vmatmul.mubr.f32.gmra.mrb[6].mxu0 %v2579_v20  ;;  %v2482_v20 = vld [vmem:[#allocation17 + $0x188] sm:$0xff]  ;;  %v4589_v12 = vpack.c.bf16 %v2756_v9, %v2754_v58  ;;  %v2755_v51 = vld [vmem:[#allocation17 + $0x450] sm:$0xff]  ;;  %v2777_v42 = vld [vmem:[#allocation17 + $0x500] sm:$0xff] }
 0x5dd   : > { %4524 = vmatpush1.bf16.msra.mxu0 %v4523_v6  ;;  %2727 = vmatprep.mubr.f32.mxu0 %v2430_v23  ;;  %v2480_v6 = vld [vmem:[#allocation17 + $0x178] sm:$0xff]  ;;  %v4565_v23 = vpack.c.bf16 %v2484_v21, %v2482_v20  ;;  %v4591_v18 = vpack.c.bf16 %v2755_v51, %v2753_v61  ;;  %v2761_v21 = vld [vmem:[#allocation17 + $0x480] sm:$0xff]  ;;  %v2787_v58 = vld [vmem:[#allocation17 + $0x550] sm:$0xff] }
 0x5de   : > { %4526 = vmatprep.subr.bf16.mxu0 %v4525_v10  ;;  %v4561_v10 = vpack.c.bf16 %v2480_v6, %v2478_v5  ;;  %v2757_v6 = vld [vmem:[#allocation17 + $0x460] sm:$0xff]  ;;  %v2790_v9 = vld [vmem:[#allocation17 + $0x568] sm:$0xff]  ;;  %v2791_v51 = vld [vmem:[#allocation17 + $0x570] sm:$0xff] }
 0x5df   : > { %v2789_v61 = vld [vmem:[#allocation17 + $0x560] sm:$0xff] }
 0x5e1   : > { %4528 = vmatpush1.bf16.msra.mxu0 %v4527_v24  ;;  %v2481_v24 = vld [vmem:[#allocation17 + $0x180] sm:$0xff] }
 0x5e2   : > { %4530 = vmatprep.subr.bf16.mxu0 %v4529_v25  ;;  %v2483_v25 = vld [vmem:[#allocation17 + $0x190] sm:$0xff] }
 0x5e3   : > { %v4567_v26 = vpack.c.bf16 %v2483_v25, %v2481_v24  ;;  %v2768_v24 = vld [vmem:[#allocation17 + $0x4b8] sm:$0xff] }
 0x5e5   : > { %4532 = vmatpush1.bf16.msra.mxu0 %v4531_v28  ;;  %v2485_v28 = vld [vmem:[#allocation17 + $0x1a0] sm:$0xff] }
 0x5e6   : > { %4534 = vmatprep.subr.bf16.mxu0 %v4533_v0  ;;  %v2487_v0 = vld [vmem:[#allocation17 + $0x1b0] sm:$0xff] }
 0x5e7   : > { %v4571_v32 = vpack.c.bf16 %v2487_v0, %v2485_v28  ;;  %v2772_v28 = vld [vmem:[#allocation17 + $0x4d8] sm:$0xff] }
 0x5e9   : > { %4536 = vmatpush1.bf16.msra.mxu0 %v4535_v31  ;;  %v2489_v31 = vld [vmem:[#allocation17 + $0x1c0] sm:$0xff] }
 0x5ea   : > { %4538 = vmatprep.subr.bf16.mxu0 %v4537_v35  ;;  %v2491_v35 = vld [vmem:[#allocation17 + $0x1d0] sm:$0xff] }
 0x5eb   : > { %v4575_v37 = vpack.c.bf16 %v2491_v35, %v2489_v31  ;;  %v2776_v31 = vld [vmem:[#allocation17 + $0x4f8] sm:$0xff] }
 0x5ed   : > { %4540 = vmatpush1.bf16.msra.mxu0 %v4539_v39  ;;  %v2493_v39 = vld [vmem:[#allocation17 + $0x1e0] sm:$0xff] }
 0x5ee   : > { %4542 = vmatprep.subr.bf16.mxu0 %v4541_v41  ;;  %v2495_v41 = vld [vmem:[#allocation17 + $0x1f0] sm:$0xff] }
 0x5ef   : > { %v4579_v14 = vpack.c.bf16 %v2495_v41, %v2493_v39  ;;  %v2780_v39 = vld [vmem:[#allocation17 + $0x518] sm:$0xff] }
 0x5f1   : > { %4544 = vmatpush1.bf16.msra.mxu0 %v4543_v43  ;;  %v2745_v43 = vld [vmem:[#allocation17 + $0x400] sm:$0xff] }
 0x5f2   : > { %4546 = vmatprep.subr.bf16.mxu0 %v4545_v46  ;;  %v2747_v46 = vld [vmem:[#allocation17 + $0x410] sm:$0xff] }
 0x5f3   : > { %v4583_v47 = vpack.c.bf16 %v2747_v46, %v2745_v43  ;;  %v2784_v43 = vld [vmem:[#allocation17 + $0x538] sm:$0xff] }
 0x5f5   : > { %4548 = vmatpush1.bf16.msra.mxu0 %v4547_v50  ;;  %v4585_v50 = vpack.c.bf16 %v2752_v17, %v2750_v48  ;;  %v2781_v17 = vld [vmem:[#allocation17 + $0x520] sm:$0xff] }
 0x5f6   : > { %4550 = vmatprep.subr.bf16.mxu0 %v4549_v53  ;;  %v2749_v53 = vld [vmem:[#allocation17 + $0x420] sm:$0xff] }
 0x5f9   : > { %4552 = vmatpush1.bf16.msra.mxu0 %v4551_v15  ;;  %v2816_v15 = vrot.slane %v2741_v49, 6  ;;  %v2786_v49 = vld [vmem:[#allocation17 + $0x548] sm:$0xff] }
 0x5fa   : > { %4554 = vmatprep.subr.bf16.mxu0 %v4553_v7  ;;  %v4587_v7 = vpack.c.bf16 %v2751_v54, %v2749_v53 }
 0x5fb   : > { %v2818_v16 = vsel %vm1547_vm15, %v2816_v15, %v2817_v60  ;;  %v2792_v15 = vld [vmem:[#allocation17 + $0x578] sm:$0xff] }
 0x5fd   : > { %4556 = vmatpush1.bf16.msra.mxu0 %v4555_v63  ;;  %v2758_v63 = vld [vmem:[#allocation17 + $0x468] sm:$0xff] }
 0x5fe   : > { %4558 = vmatprep.subr.bf16.mxu0 %v4557_v2  ;;  %v2760_v2 = vld [vmem:[#allocation17 + $0x478] sm:$0xff] }
 0x5ff   : > { %v4593_v5 = vpack.c.bf16 %v2760_v2, %v2758_v63  ;;  %v2794_v63 = vld [vmem:[#allocation17 + $0x588] sm:$0xff]  ;;  %v2796_v2 = vld [vmem:[#allocation17 + $0x598] sm:$0xff] }
 0x601   : > { %4560 = vmatpush1.bf16.msra.mxu0 %v4559_v8  ;;  %v2759_v8 = vld [vmem:[#allocation17 + $0x470] sm:$0xff] }
 0x602   : > { %4562 = vmatprep.subr.bf16.mxu0 %v4561_v10  ;;  %v2762_v10 = vld [vmem:[#allocation17 + $0x488] sm:$0xff]  ;;  %v4595_v13 = vpack.c.bf16 %v2759_v8, %v2757_v6  ;;  %v2795_v6 = vld [vmem:[#allocation17 + $0x590] sm:$0xff] }
 0x603   : > { %v4597_v20 = vpack.c.bf16 %v2764_v4, %v2762_v10  ;;  %v2798_v8 = vld [vmem:[#allocation17 + $0x5a8] sm:$0xff]  ;;  %v2800_v10 = vld [vmem:[#allocation17 + $0x5b8] sm:$0xff] }
 0x605   : > { %4564 = vmatpush1.bf16.msra.mxu0 %v4563_v22  ;;  %v2763_v22 = vld [vmem:[#allocation17 + $0x490] sm:$0xff] }
 0x606   : > { %4566 = vmatprep.subr.bf16.mxu0 %v4565_v23  ;;  %v2766_v23 = vld [vmem:[#allocation17 + $0x4a8] sm:$0xff]  ;;  %v4599_v25 = vpack.c.bf16 %v2763_v22, %v2761_v21  ;;  %v2799_v21 = vld [vmem:[#allocation17 + $0x5b0] sm:$0xff] }
 0x607   : > { %v4601_v19 = vpack.c.bf16 %v2768_v24, %v2766_v23  ;;  %v2802_v22 = vld [vmem:[#allocation17 + $0x5c8] sm:$0xff]  ;;  %v2804_v23 = vld [vmem:[#allocation17 + $0x5d8] sm:$0xff] }
 0x609   : > { %4568 = vmatpush1.bf16.msra.mxu0 %v4567_v26  ;;  %v2767_v26 = vld [vmem:[#allocation17 + $0x4b0] sm:$0xff] }
 0x60a   : > { %4570 = vmatprep.subr.bf16.mxu0 %v4569_v27  ;;  %v2770_v27 = vld [vmem:[#allocation17 + $0x4c8] sm:$0xff]  ;;  %v4603_v0 = vpack.c.bf16 %v2767_v26, %v2765_v62  ;;  %v2803_v62 = vld [vmem:[#allocation17 + $0x5d0] sm:$0xff] }
 0x60b   : > { %v4605_v29 = vpack.c.bf16 %v2772_v28, %v2770_v27  ;;  %v2806_v26 = vld [vmem:[#allocation17 + $0x5e8] sm:$0xff]  ;;  %v2808_v27 = vld [vmem:[#allocation17 + $0x5f8] sm:$0xff] }
 0x60d   : > { %4572 = vmatpush1.bf16.msra.mxu0 %v4571_v32  ;;  %v2771_v32 = vld [vmem:[#allocation17 + $0x4d0] sm:$0xff] }
 0x60e   : > { %4574 = vmatprep.subr.bf16.mxu0 %v4573_v33  ;;  %v2774_v33 = vld [vmem:[#allocation17 + $0x4e8] sm:$0xff]  ;;  %v4607_v35 = vpack.c.bf16 %v2771_v32, %v2769_v30  ;;  %v2807_v30 = vld [vmem:[#allocation17 + $0x5f0] sm:$0xff] }
 0x60f   : > { %v4609_v36 = vpack.c.bf16 %v2776_v31, %v2774_v33  ;;  %v2916_v32 = vld [vmem:[#allocation17 + $0x608] sm:$0xff]  ;;  %v2918_v33 = vld [vmem:[#allocation17 + $0x618] sm:$0xff]  ;;  %v2740_v31 = vld [vmem:[#allocation4] sm:$0xc0] }
 0x611   : > { %4576 = vmatpush1.bf16.msra.mxu0 %v4575_v37  ;;  %v2775_v37 = vld [vmem:[#allocation17 + $0x4f0] sm:$0xff] }
 0x612   : > { %4578 = vmatprep.subr.bf16.mxu0 %v4577_v38  ;;  %v2778_v38 = vld [vmem:[#allocation17 + $0x508] sm:$0xff]  ;;  %v4611_v41 = vpack.c.bf16 %v2775_v37, %v2773_v34  ;;  %v4645_v34 = vpack.c.bf16 %v2918_v33, %v2916_v32  ;;  %v2915_v37 = vld [vmem:[#allocation17 + $0x600] sm:$0xff]  ;;  %v2942_v33 = vld [vmem:[#allocation17 + $0x6d8] sm:$0xff] }
 0x613   : > { %v4613_v11 = vpack.c.bf16 %v2780_v39, %v2778_v38  ;;  %v2917_v38 = vld [vmem:[#allocation17 + $0x610] sm:$0xff]  ;;  %v2813_v39 = vrot.slane %v2740_v31, 6  ;;  %v2940_v32 = vld [vmem:[#allocation17 + $0x6c8] sm:$0xff]  ;;  %v5195_v31 = vld [vmem:[#allocation20 + $0x18] sm:$0xff]  }
 0x615   : > { %4580 = vmatpush1.bf16.msra.mxu0 %v4579_v14  ;;  %v2779_v14 = vld [vmem:[#allocation17 + $0x510] sm:$0xff] }
 0x616   : > { %4582 = vmatprep.subr.bf16.mxu0 %v4581_v40  ;;  %v2782_v40 = vld [vmem:[#allocation17 + $0x528] sm:$0xff]  ;;  %v4615_v46 = vpack.c.bf16 %v2779_v14, %v2777_v42  ;;  %v2742_v14 = vld [vmem:[#allocation4 + $0x20] sm:$0x3f] }
 0x617   : > { %v4617_v48 = vpack.c.bf16 %v2784_v43, %v2782_v40  ;;  %v2814_v40 = vrot.slane %v6383_v44, 6  ;;  %v4647_v43 = vpack.c.bf16 %v2917_v38, %v2915_v37  ;;  %v2939_v37 = vld [vmem:[#allocation17 + $0x6c0] sm:$0xff]  ;;  %v2941_v38 = vld [vmem:[#allocation17 + $0x6d0] sm:$0xff] }
 0x618   : > { %2728 = vmatmul.mubr.f32.vlgmr.msra.gmra.mrb[4].mxu0 %v2429_v57  ;;  %v2785_v57 = vld [vmem:[#allocation17 + $0x540] sm:$0xff] }
 0x619   : > { %2733 = vmatprep.mubr.f32.mxu0 %v6387_v45  ;;  %4584 = vmatpush1.bf16.msra.mxu0 %v4583_v47  ;;  %v2783_v47 = vld [vmem:[#allocation17 + $0x530] sm:$0xff] }
 0x61a   : > { %4586 = vmatprep.subr.bf16.mxu0 %v4585_v50  ;;  %v2788_v50 = vld [vmem:[#allocation17 + $0x558] sm:$0xff]  ;;  %v4619_v53 = vpack.c.bf16 %v2783_v47, %v2781_v17  ;;  %v2919_v47 = vld [vmem:[#allocation17 + $0x620] sm:$0xff] }
 0x61b   : > { %v4621_v54 = vpack.c.bf16 %v2788_v50, %v2786_v49  ;;  %v2921_v49 = vld [vmem:[#allocation17 + $0x630] sm:$0xff]  ;;  %v2815_v50 = vsel %vm1547_vm15, %v2813_v39, %v2814_v40  ;;  %v2944_v39 = vld [vmem:[#allocation17 + $0x6e8] sm:$0xff] }
 0x61c   : > { %2734 = vmatmul.mubr.f32.gmra.mrb[6].mxu0 %v6383_v44 }
 0x61d   : > { %4588 = vmatpush1.bf16.msra.mxu0 %v4587_v7  ;;  %2891 = vmatprep.mubr.f32.mxu0 %v2818_v16  ;;  %v4623_v7 = vpack.c.bf16 %v2787_v58, %v2785_v57  ;;  %v4627_v16 = vpack.c.bf16 %v2791_v51, %v2789_v61  ;;  %v2926_v57 = vld [vmem:[#allocation17 + $0x658] sm:$0xff]  ;;  %v2925_v61 = vld [vmem:[#allocation17 + $0x650] sm:$0xff] }
 0x61e   : > { %4590 = vmatprep.subr.bf16.mxu0 %v4589_v12  ;;  %v4625_v12 = vpack.c.bf16 %v2792_v15, %v2790_v9  ;;  %v4651_v15 = vpack.c.bf16 %v2921_v49, %v2919_v47 }
 0x621   : > { %4592 = vmatpush1.bf16.msra.mxu0 %v4591_v18  ;;  %v4629_v18 = vpack.c.bf16 %v2796_v2, %v2794_v63  ;;  %v2928_v63 = vld [vmem:[#allocation17 + $0x668] sm:$0xff]  ;;  %v2930_v2 = vld [vmem:[#allocation17 + $0x678] sm:$0xff] }
 0x622   : > { %4594 = vmatprep.subr.bf16.mxu0 %v4593_v5  ;;  %v2793_v5 = vld [vmem:[#allocation17 + $0x580] sm:$0xff] }
 0x623   : > { %v4631_v4 = vpack.c.bf16 %v2795_v6, %v2793_v5  ;;  %v4657_v6 = vpack.c.bf16 %v2930_v2, %v2928_v63  ;;  %v2955_v2 = vld [vmem:[#allocation17 + $0x740] sm:$0xff] }
 0x625   : > { %4596 = vmatpush1.bf16.msra.mxu0 %v4595_v13  ;;  %v4633_v13 = vpack.c.bf16 %v2800_v10, %v2798_v8  ;;  %v2927_v8 = vld [vmem:[#allocation17 + $0x660] sm:$0xff]  ;;  %v2929_v10 = vld [vmem:[#allocation17 + $0x670] sm:$0xff] }
 0x626   : > { %4598 = vmatprep.subr.bf16.mxu0 %v4597_v20  ;;  %v2797_v20 = vld [vmem:[#allocation17 + $0x5a0] sm:$0xff] }
 0x627   : > { %v4635_v24 = vpack.c.bf16 %v2799_v21, %v2797_v20  ;;  %v5191_v20 = vld [vmem:[#allocation20 + $0x8] sm:$0xff]   ;;  %v5192_v21 = vld [vmem:[#allocation20 + $0x50] sm:$0xff]  }
 0x629   : > { %4600 = vmatpush1.bf16.msra.mxu0 %v4599_v25  ;;  %v4637_v25 = vpack.c.bf16 %v2804_v23, %v2802_v22  ;;  %v4659_v22 = vpack.c.bf16 %v2929_v10, %v2927_v8  ;;  %v2961_v8 = vld [vmem:[#allocation17 + $0x770] sm:$0xff]  ;;  %v2964_v10 = vld [vmem:[#allocation17 + $0x788] sm:$0xff] }
 0x62a   : > { %4602 = vmatprep.subr.bf16.mxu0 %v4601_v19  ;;  %v2801_v19 = vld [vmem:[#allocation17 + $0x5c0] sm:$0xff] }
 0x62b   : > { %v4639_v28 = vpack.c.bf16 %v2803_v62, %v2801_v19  ;;  %v2936_v19 = vld [vmem:[#allocation17 + $0x6a8] sm:$0xff]  ;;  %v2938_v62 = vld [vmem:[#allocation17 + $0x6b8] sm:$0xff] }
 0x62d   : > { %4604 = vmatpush1.bf16.msra.mxu0 %v4603_v0  ;;  %v4641_v0 = vpack.c.bf16 %v2808_v27, %v2806_v26  ;;  %v5193_v26 = vld [vmem:[#allocation20 + $0x10] sm:$0xff]   ;;  %v5194_v27 = vld [vmem:[#allocation20 + $0x58] sm:$0xff]  }
 0x62e   : > { %4606 = vmatprep.subr.bf16.mxu0 %v4605_v29  ;;  %v2805_v29 = vld [vmem:[#allocation17 + $0x5e0] sm:$0xff] }
 0x631   : > { %4608 = vmatpush1.bf16.msra.mxu0 %v4607_v35  ;;  %v4643_v35 = vpack.c.bf16 %v2807_v30, %v2805_v29  ;;  %v2935_v29 = vld [vmem:[#allocation17 + $0x6a0] sm:$0xff]  ;;  %v2937_v30 = vld [vmem:[#allocation17 + $0x6b0] sm:$0xff] }
 0x632   : > { %4610 = vmatprep.subr.bf16.mxu0 %v4609_v36  ;;  %v2743_v36 = vld [vmem:[#allocation4 + $0x28] sm:$0x3f] }
 0x633   : > { %v2821_v42 = vrot.slane %v2743_v36, 6  ;;  %v4667_v36 = vpack.c.bf16 %v2937_v30, %v2935_v29  ;;  %v2971_v30 = vld [vmem:[#allocation17 + $0x7c0] sm:$0xff] }
 0x635   : > { %4612 = vmatpush1.bf16.msra.mxu0 %v4611_v41  ;;  %v2920_v41 = vld [vmem:[#allocation17 + $0x628] sm:$0xff]  ;;  %v2822_v58 = vsel %vm1547_vm15, %v2817_v60, %v2821_v42  ;;  %v4671_v42 = vpack.c.bf16 %v2941_v38, %v2939_v37  ;;  %v2977_v37 = vld [vmem:[#allocation17 + $0x7f0] sm:$0xff] }
 0x636   : > { %4614 = vmatprep.subr.bf16.mxu0 %v4613_v11  ;;  %v2922_v11 = vld [vmem:[#allocation17 + $0x638] sm:$0xff]  ;;  %v5188_v60 = vld [vmem:[#allocation20 + $0x40] sm:$0xff]  }
 0x637   : > { %v4649_v17 = vpack.c.bf16 %v2922_v11, %v2920_v41  ;;  %4005 = vmatprep.subr.bf16.mxu1 %v5188_v60  ;;  %v2946_v41 = vld [vmem:[#allocation17 + $0x6f8] sm:$0xff]  ;;  %v5197_v11 = vld [vmem:[#allocation20 + $0x20] sm:$0xff]  }
 0x638   : > { %v2960_v60 = vld [vmem:[#allocation17 + $0x768] sm:$0xff] }
 0x639   : > { %4616 = vmatpush1.bf16.msra.mxu0 %v4615_v46  ;;  %v2909_v46 = vld [vmem:[#allocation4 + $0x18] sm:$0xfe]  ;;  %v3086_v38 = vld [vmem:[#allocation17 + $0x808] sm:$0xff] }
 0x63a   : > { %4618 = vmatprep.subr.bf16.mxu0 %v4617_v48  ;;  %v6403_v48 = vld [vmem:[#allocation4 + $0x28] sm:$0xff]  ;;  %v2988_v9 = vrot.slane %v2909_v46, 1 }
 0x63b   : > { %v2989_v44 = vrot.slane %v6403_v48, 1  ;;  %v2948_v46 = vld [vmem:[#allocation17 + $0x708] sm:$0xff] }
 0x63d   : > { %4620 = vmatpush1.bf16.msra.mxu0 %v4619_v53  ;;  %v2819_v53 = vrot.slane %v2742_v14, 6  ;;  %v2990_v45 = vsel %vm1038_vm10, %v2988_v9, %v2989_v44  ;;  %v4673_v14 = vpack.c.bf16 %v2946_v41, %v2944_v39  ;;  %v3088_v39 = vld [vmem:[#allocation17 + $0x818] sm:$0xff]  ;;  %v2908_v41 = vld [vmem:[#allocation4 + $0x10] sm:$0xfe] }
 0x63e   : > { %4622 = vmatprep.subr.bf16.mxu0 %v4621_v54  ;;  %v2924_v54 = vld [vmem:[#allocation17 + $0x648] sm:$0xff] }
 0x63f   : > { %v2820_v51 = vsel %vm1547_vm15, %v2814_v40, %v2819_v53  ;;  %v2943_v40 = vld [vmem:[#allocation17 + $0x6e0] sm:$0xff]  ;;  %v2949_v53 = vld [vmem:[#allocation17 + $0x710] sm:$0xff] }
 0x641   : > { %4624 = vmatpush1.bf16.msra.mxu0 %v4623_v7  ;;  %v4653_v7 = vpack.c.bf16 %v2926_v57, %v2924_v54  ;;  %v2952_v54 = vld [vmem:[#allocation17 + $0x728] sm:$0xff]  ;;  %v2954_v57 = vld [vmem:[#allocation17 + $0x738] sm:$0xff] }
 0x642   : > { %4626 = vmatprep.subr.bf16.mxu0 %v4625_v12  ;;  %v2923_v12 = vld [vmem:[#allocation17 + $0x640] sm:$0xff]  ;;  %v4681_v9 = vpack.c.bf16 %v2954_v57, %v2952_v54  ;;  %v2912_v54 = vld [vmem:[#allocation4 + $0x30] sm:$0x1] }
 0x643   : > { %v4655_v5 = vpack.c.bf16 %v2925_v61, %v2923_v12  ;;  %v2956_v12 = vld [vmem:[#allocation17 + $0x748] sm:$0xff]  ;;  %v2958_v61 = vld [vmem:[#allocation17 + $0x758] sm:$0xff] }
 0x644   : > { %v4685_v63 = vpack.c.bf16 %v2958_v61, %v2956_v12  ;;  %v2991_v61 = vrot.slane %v2912_v54, 1  ;;  %v3124_v54 = vld [vmem:[#allocation17 + $0x938] sm:$0xff] }
 0x645   : > { %4628 = vmatpush1.bf16.msra.mxu0 %v4627_v16  ;;  %v5189_v16 = vld [vmem:[#allocation20] sm:$0xff]  }
 0x646   : > { %4630 = vmatprep.subr.bf16.mxu0 %v4629_v18  ;;  %v5190_v18 = vld [vmem:[#allocation20 + $0x48] sm:$0xff]   ;;  %4006 = vmatpush3.bf16.msra.mxu1 %v5189_v16  ;;  %v2962_v16 = vld [vmem:[#allocation17 + $0x778] sm:$0xff] }
 0x647   : > { %4007 = vmatprep.subr.bf16.mxu1 %v5190_v18 }
 0x649   : > { %4632 = vmatpush1.bf16.msra.mxu0 %v4631_v4  ;;  %v2932_v4 = vld [vmem:[#allocation17 + $0x688] sm:$0xff] }
 0x64a   : > { %4634 = vmatprep.subr.bf16.mxu0 %v4633_v13  ;;  %v2934_v13 = vld [vmem:[#allocation17 + $0x698] sm:$0xff]  ;;  %4008 = vmatpush3.bf16.msra.mxu1 %v5191_v20 }
 0x64b   : > { %v4661_v23 = vpack.c.bf16 %v2934_v13, %v2932_v4  ;;  %4009 = vmatprep.subr.bf16.mxu1 %v5192_v21  ;;  %v2966_v4 = vld [vmem:[#allocation17 + $0x798] sm:$0xff]  ;;  %v2963_v21 = vld [vmem:[#allocation17 + $0x780] sm:$0xff] }
 0x64c   : > { %v4693_v20 = vpack.c.bf16 %v2966_v4, %v2964_v10  ;;  %v3098_v10 = vld [vmem:[#allocation17 + $0x868] sm:$0xff]  ;;  %v3100_v4 = vld [vmem:[#allocation17 + $0x878] sm:$0xff] }
 0x64d   : > { %4636 = vmatpush1.bf16.msra.mxu0 %v4635_v24  ;;  %v2931_v24 = vld [vmem:[#allocation17 + $0x680] sm:$0xff] }
 0x64e   : > { %4638 = vmatprep.subr.bf16.mxu0 %v4637_v25  ;;  %v2933_v25 = vld [vmem:[#allocation17 + $0x690] sm:$0xff]  ;;  %4010 = vmatpush3.bf16.msra.mxu1 %v5193_v26 }
 0x64f   : > { %4011 = vmatprep.subr.bf16.mxu1 %v5194_v27  ;;  %v2969_v26 = vld [vmem:[#allocation17 + $0x7b0] sm:$0xff]  ;;  %v2972_v27 = vld [vmem:[#allocation17 + $0x7c8] sm:$0xff] }
 0x651   : > { %4640 = vmatpush1.bf16.msra.mxu0 %v4639_v28  ;;  %v4663_v28 = vpack.c.bf16 %v2933_v25, %v2931_v24  ;;  %v2970_v24 = vld [vmem:[#allocation17 + $0x7b8] sm:$0xff] }
 0x652   : > { %4642 = vmatprep.subr.bf16.mxu0 %v4641_v0  ;;  %v4665_v0 = vpack.c.bf16 %v2938_v62, %v2936_v19  ;;  %4012 = vmatpush3.bf16.msra.mxu1 %v5195_v31  ;;  %v2967_v62 = vld [vmem:[#allocation17 + $0x7a0] sm:$0xff]  ;;  %v2978_v31 = vld [vmem:[#allocation17 + $0x7f8] sm:$0xff] }
 0x655   : > { %4644 = vmatpush1.bf16.msra.mxu0 %v4643_v35  ;;  %v5196_v35 = vld [vmem:[#allocation20 + $0x60] sm:$0xff]  }
 0x656   : > { %4646 = vmatprep.subr.bf16.mxu0 %v4645_v34  ;;  %v4669_v34 = vpack.c.bf16 %v2942_v33, %v2940_v32  ;;  %4013 = vmatprep.subr.bf16.mxu1 %v5196_v35  ;;  %v2973_v32 = vld [vmem:[#allocation17 + $0x7d0] sm:$0xff]  ;;  %v2976_v33 = vld [vmem:[#allocation17 + $0x7e8] sm:$0xff] }
 0x657   : > { %4014 = vmatpush3.bf16.msra.mxu1 %v5197_v11  ;;  %v4703_v35 = vpack.c.bf16 %v2973_v32, %v2971_v30  ;;  %v6414_v11 = vld [vmem:[#allocation4 + $0x20] sm:$0xff]  ;;  %v3107_v32 = vld [vmem:[#allocation17 + $0x8b0] sm:$0xff] }
 0x658   : > { %2892 = vmatmul.mubr.f32.vlgmr.msra.gmra.mrb[4].mxu0 %v2815_v50  ;;  %v2947_v50 = vld [vmem:[#allocation17 + $0x700] sm:$0xff] }
 0x659   : > { %2897 = vmatprep.mubr.f32.mxu0 %v2822_v58  ;;  %4648 = vmatpush1.bf16.msra.mxu0 %v4647_v43  ;;  %v2945_v43 = vld [vmem:[#allocation17 + $0x6f0] sm:$0xff]  ;;  %v4679_v58 = vpack.c.bf16 %v2949_v53, %v2947_v50  ;;  %v3092_v50 = vld [vmem:[#allocation17 + $0x838] sm:$0xff]  ;;  %v3105_v30 = vld [vmem:[#allocation17 + $0x8a0] sm:$0xff] }
 0x65a   : > { %4650 = vmatprep.subr.bf16.mxu0 %v4649_v17  ;;  %v2950_v17 = vld [vmem:[#allocation17 + $0x718] sm:$0xff]  ;;  %v4675_v47 = vpack.c.bf16 %v2945_v43, %v2943_v40  ;;  %v4709_v40 = vpack.c.bf16 %v3088_v39, %v3086_v38  ;;  %v3085_v43 = vld [vmem:[#allocation17 + $0x800] sm:$0xff]  ;;  %v3114_v38 = vld [vmem:[#allocation17 + $0x8e8] sm:$0xff] }
 0x65b   : > { %v4677_v49 = vpack.c.bf16 %v2950_v17, %v2948_v46  ;;  %v3087_v46 = vld [vmem:[#allocation17 + $0x810] sm:$0xff]  ;;  %v2985_v17 = vrot.slane %v2908_v41, 1  ;;  %v3116_v39 = vld [vmem:[#allocation17 + $0x8f8] sm:$0xff] }
 0x65c   : > { %2898 = vmatmul.mubr.f32.gmra.mrb[6].mxu0 %v2820_v51  ;;  %v4711_v57 = vpack.c.bf16 %v3087_v46, %v3085_v43  ;;  %v3118_v43 = vld [vmem:[#allocation17 + $0x908] sm:$0xff]  ;;  %v3120_v46 = vld [vmem:[#allocation17 + $0x918] sm:$0xff] }
 0x65d   : > { %4652 = vmatpush1.bf16.msra.mxu0 %v4651_v15  ;;  %3063 = vmatprep.mubr.f32.mxu0 %v2990_v45  ;;  %v2951_v15 = vld [vmem:[#allocation17 + $0x720] sm:$0xff]  ;;  %v2957_v45 = vld [vmem:[#allocation17 + $0x750] sm:$0xff] }
 0x65e   : > { %4654 = vmatprep.subr.bf16.mxu0 %v4653_v7  ;;  %v2953_v7 = vld [vmem:[#allocation17 + $0x730] sm:$0xff]  ;;  %v4687_v18 = vpack.c.bf16 %v2957_v45, %v2955_v2 }
 0x65f   : > { %v4683_v51 = vpack.c.bf16 %v2953_v7, %v2951_v15  ;;  %v3089_v15 = vld [vmem:[#allocation17 + $0x820] sm:$0xff]  ;;  %v3091_v7 = vld [vmem:[#allocation17 + $0x830] sm:$0xff] }
 0x661   : > { %4656 = vmatpush1.bf16.msra.mxu0 %v4655_v5  ;;  %v4689_v5 = vpack.c.bf16 %v2962_v16, %v2960_v60  ;;  %v3157_v60 = vrot.slane %v6403_v48, 4  ;;  %v4715_v16 = vpack.c.bf16 %v3091_v7, %v3089_v15  ;;  %v3123_v15 = vld [vmem:[#allocation17 + $0x930] sm:$0xff]  ;;  %v3126_v7 = vld [vmem:[#allocation17 + $0x948] sm:$0xff] }
 0x662   : > { %4658 = vmatprep.subr.bf16.mxu0 %v4657_v6  ;;  %v2959_v6 = vld [vmem:[#allocation17 + $0x760] sm:$0xff]  ;;  %v3450_v48 = vld [vmem:[#allocation23 + $0x10] sm:$0xff] }
 0x663   : > { %v4691_v13 = vpack.c.bf16 %v2961_v8, %v2959_v6  ;;  %v3095_v6 = vld [vmem:[#allocation17 + $0x850] sm:$0xff] }
 0x665   : > { %4660 = vmatpush1.bf16.msra.mxu0 %v4659_v22  ;;  %v2965_v22 = vld [vmem:[#allocation17 + $0x790] sm:$0xff] }
 0x666   : > { %4662 = vmatprep.subr.bf16.mxu0 %v4661_v23  ;;  %v2968_v23 = vld [vmem:[#allocation17 + $0x7a8] sm:$0xff]  ;;  %v4695_v25 = vpack.c.bf16 %v2965_v22, %v2963_v21  ;;  %v3097_v21 = vld [vmem:[#allocation17 + $0x860] sm:$0xff]  ;;  %v3099_v22 = vld [vmem:[#allocation17 + $0x870] sm:$0xff] }
 0x667   : > { %v4697_v19 = vpack.c.bf16 %v2970_v24, %v2968_v23  ;;  %v3102_v23 = vld [vmem:[#allocation17 + $0x888] sm:$0xff]  ;;  %v3104_v24 = vld [vmem:[#allocation17 + $0x898] sm:$0xff] }
 0x669   : > { %4664 = vmatpush1.bf16.msra.mxu0 %v4663_v28  ;;  %v2974_v28 = vld [vmem:[#allocation17 + $0x7d8] sm:$0xff] }
 0x66a   : > { %4666 = vmatprep.subr.bf16.mxu0 %v4665_v0  ;;  %v4699_v0 = vpack.c.bf16 %v2969_v26, %v2967_v62  ;;  %v4701_v29 = vpack.c.bf16 %v2974_v28, %v2972_v27  ;;  %v3101_v62 = vld [vmem:[#allocation17 + $0x880] sm:$0xff]  ;;  %v3103_v26 = vld [vmem:[#allocation17 + $0x890] sm:$0xff]  ;;  %v3106_v27 = vld [vmem:[#allocation17 + $0x8a8] sm:$0xff] }
 0x66b   : > { %v3108_v28 = vld [vmem:[#allocation17 + $0x8b8] sm:$0xff] }
 0x66d   : > { %4668 = vmatpush1.bf16.msra.mxu0 %v4667_v36  ;;  %v4705_v36 = vpack.c.bf16 %v2978_v31, %v2976_v33  ;;  %v3110_v33 = vld [vmem:[#allocation17 + $0x8c8] sm:$0xff]  ;;  %v3112_v31 = vld [vmem:[#allocation17 + $0x8d8] sm:$0xff] }
 0x66e   : > { %4670 = vmatprep.subr.bf16.mxu0 %v4669_v34  ;;  %v2975_v34 = vld [vmem:[#allocation17 + $0x7e0] sm:$0xff] }
 0x671   : > { %4672 = vmatpush1.bf16.msra.mxu0 %v4671_v42  ;;  %v4707_v42 = vpack.c.bf16 %v2977_v37, %v2975_v34  ;;  %v3109_v34 = vld [vmem:[#allocation17 + $0x8c0] sm:$0xff]  ;;  %v3111_v37 = vld [vmem:[#allocation17 + $0x8d0] sm:$0xff] }
 0x672   : > { %4674 = vmatprep.subr.bf16.mxu0 %v4673_v14  ;;  %v2913_v14 = vld [vmem:[#allocation4 + $0x38] sm:$0x1]  ;;  %v4735_v41 = vpack.c.bf16 %v3111_v37, %v3109_v34  ;;  %v3080_v37 = vld [vmem:[#allocation4 + $0x10] sm:$0xf0] }
 0x673   : > { %v2993_v53 = vrot.slane %v2913_v14, 1  ;;  %v3113_v14 = vld [vmem:[#allocation17 + $0x8e0] sm:$0xff]  ;;  %v3147_v34 = vld [vmem:[#allocation17 + $0x9f0] sm:$0xff] }
 0x675   : > { %4676 = vmatpush1.bf16.msra.mxu0 %v4675_v47  ;;  %v2986_v47 = vrot.slane %v6414_v11, 1  ;;  %v2994_v2 = vsel %vm1038_vm10, %v2989_v44, %v2993_v53  ;;  %v3122_v53 = vld [vmem:[#allocation17 + $0x928] sm:$0xff] }
 0x676   : > { %4678 = vmatprep.subr.bf16.mxu0 %v4677_v49  ;;  %v3090_v49 = vld [vmem:[#allocation17 + $0x828] sm:$0xff] }
 0x677   : > { %v2987_v12 = vsel %vm1038_vm10, %v2985_v17, %v2986_v47  ;;  %v2992_v8 = vsel %vm1038_vm10, %v2986_v47, %v2991_v61  ;;  %v4741_v47 = vpack.c.bf16 %v3120_v46, %v3118_v43 }
 0x679   : > { %4680 = vmatpush1.bf16.msra.mxu0 %v4679_v58  ;;  %v3081_v58 = vld [vmem:[#allocation4 + $0x18] sm:$0xf0] }
 0x67a   : > { %4682 = vmatprep.subr.bf16.mxu0 %v4681_v9  ;;  %v4713_v9 = vpack.c.bf16 %v3092_v50, %v3090_v49  ;;  %v3156_v45 = vrot.slane %v3081_v58, 4  ;;  %v3117_v49 = vld [vmem:[#allocation17 + $0x900] sm:$0xff]  ;;  %v3119_v50 = vld [vmem:[#allocation17 + $0x910] sm:$0xff]  ;;  %v4745_v58 = vpack.c.bf16 %v3124_v54, %v3122_v53 }
 0x67b   : > { %v5201_v53 = vld [vmem:[#allocation20 + $0x30] sm:$0xff]   ;;  %v5202_v54 = vld [vmem:[#allocation20 + $0x78] sm:$0xff]  }
 0x67d   : > { %4684 = vmatpush1.bf16.msra.mxu0 %v4683_v51  ;;  %v3094_v51 = vld [vmem:[#allocation17 + $0x848] sm:$0xff] }
 0x67e   : > { %4686 = vmatprep.subr.bf16.mxu0 %v4685_v63  ;;  %v3096_v63 = vld [vmem:[#allocation17 + $0x858] sm:$0xff] }
 0x681   : > { %4688 = vmatpush1.bf16.msra.mxu0 %v4687_v18  ;;  %v4717_v18 = vpack.c.bf16 %v3096_v63, %v3094_v51  ;;  %v3125_v63 = vld [vmem:[#allocation17 + $0x940] sm:$0xff] }
 0x682   : > { %4690 = vmatprep.subr.bf16.mxu0 %v4689_v5  ;;  %v3093_v5 = vld [vmem:[#allocation17 + $0x840] sm:$0xff] }
 0x683   : > { %v4719_v44 = vpack.c.bf16 %v3095_v6, %v3093_v5  ;;  %v3129_v6 = vld [vmem:[#allocation17 + $0x960] sm:$0xff] }
 0x685   : > { %4692 = vmatpush1.bf16.msra.mxu0 %v4691_v13  ;;  %v3158_v13 = vsel %vm703_vm6, %v3156_v45, %v3157_v60  ;;  %v3130_v45 = vld [vmem:[#allocation17 + $0x968] sm:$0xff] }
 0x686   : > { %4694 = vmatprep.subr.bf16.mxu0 %v4693_v20  ;;  %v4721_v20 = vpack.c.bf16 %v3100_v4, %v3098_v10  ;;  %v3134_v10 = vld [vmem:[#allocation17 + $0x988] sm:$0xff]  ;;  %v3136_v4 = vld [vmem:[#allocation17 + $0x998] sm:$0xff] }
 0x689   : > { %4696 = vmatpush1.bf16.msra.mxu0 %v4695_v25  ;;  %v4723_v25 = vpack.c.bf16 %v3099_v22, %v3097_v21  ;;  %v3135_v21 = vld [vmem:[#allocation17 + $0x990] sm:$0xff]  ;;  %v3138_v22 = vld [vmem:[#allocation17 + $0x9a8] sm:$0xff] }
 0x68a   : > { %4698 = vmatprep.subr.bf16.mxu0 %v4697_v19  ;;  %v4725_v19 = vpack.c.bf16 %v3104_v24, %v3102_v23  ;;  %v3140_v23 = vld [vmem:[#allocation17 + $0x9b8] sm:$0xff] }
 0x68d   : > { %4700 = vmatpush1.bf16.msra.mxu0 %v4699_v0  ;;  %v4727_v0 = vpack.c.bf16 %v3103_v26, %v3101_v62  ;;  %v3139_v62 = vld [vmem:[#allocation17 + $0x9b0] sm:$0xff]  ;;  %v3142_v26 = vld [vmem:[#allocation17 + $0x9c8] sm:$0xff] }
 0x68e   : > { %4702 = vmatprep.subr.bf16.mxu0 %v4701_v29  ;;  %v4729_v29 = vpack.c.bf16 %v3108_v28, %v3106_v27  ;;  %v3144_v27 = vld [vmem:[#allocation17 + $0x9d8] sm:$0xff] }
 0x691   : > { %4704 = vmatpush1.bf16.msra.mxu0 %v4703_v35  ;;  %v4731_v35 = vpack.c.bf16 %v3107_v32, %v3105_v30  ;;  %v3143_v30 = vld [vmem:[#allocation17 + $0x9d0] sm:$0xff]  ;;  %v3146_v32 = vld [vmem:[#allocation17 + $0x9e8] sm:$0xff] }
 0x692   : > { %4706 = vmatprep.subr.bf16.mxu0 %v4705_v36  ;;  %v4733_v36 = vpack.c.bf16 %v3112_v31, %v3110_v33  ;;  %v3148_v33 = vld [vmem:[#allocation17 + $0x9f8] sm:$0xff] }
 0x695   : > { %4708 = vmatpush1.bf16.msra.mxu0 %v4707_v42  ;;  %v4737_v42 = vpack.c.bf16 %v3116_v39, %v3114_v38  ;;  %v3083_v39 = vld [vmem:[#allocation4 + $0x38] sm:$0xf] }
 0x696   : > { %4710 = vmatprep.subr.bf16.mxu0 %v4709_v40  ;;  %v3115_v40 = vld [vmem:[#allocation17 + $0x8f0] sm:$0xff] }
 0x697   : > { %v4739_v17 = vpack.c.bf16 %v3115_v40, %v3113_v14  ;;  %v3161_v14 = vrot.slane %v3083_v39, 4  ;;  %v3082_v40 = vld [vmem:[#allocation4 + $0x30] sm:$0xf] }
 0x698   : > { %3064 = vmatmul.mubr.f32.vlgmr.msra.gmra.mrb[4].mxu0 %v2987_v12  ;;  %v3128_v12 = vld [vmem:[#allocation17 + $0x958] sm:$0xff]  ;;  %v3159_v46 = vrot.slane %v3082_v40, 4 }
 0x699   : > { %3069 = vmatprep.mubr.f32.mxu0 %v2994_v2  ;;  %4712 = vmatpush1.bf16.msra.mxu0 %v4711_v57  ;;  %v4743_v57 = vpack.c.bf16 %v3119_v50, %v3117_v49  ;;  %v4749_v51 = vpack.c.bf16 %v3128_v12, %v3126_v7  ;;  %v3127_v2 = vld [vmem:[#allocation17 + $0x950] sm:$0xff]  ;;  %v3452_v12 = vld [vmem:[#allocation23 + $0x20] sm:$0xff] }
 0x69a   : > { %4714 = vmatprep.subr.bf16.mxu0 %v4713_v9  ;;  %v3121_v9 = vld [vmem:[#allocation17 + $0x920] sm:$0xff]  ;;  %v5198_v49 = vld [vmem:[#allocation20 + $0x68] sm:$0xff]  }
 0x69b   : > { %v4747_v61 = vpack.c.bf16 %v3123_v15, %v3121_v9  ;;  %v5199_v50 = vld [vmem:[#allocation20 + $0x28] sm:$0xff]   ;;  %4015 = vmatprep.subr.bf16.mxu1 %v5198_v49 }
 0x69c   : > { %3070 = vmatmul.mubr.f32.gmra.mrb[6].mxu0 %v2992_v8  ;;  %v3131_v8 = vld [vmem:[#allocation17 + $0x970] sm:$0xff]  ;;  %4016 = vmatpush3.bf16.msra.mxu1 %v5199_v50 }
 0x69d   : > { %4716 = vmatpush1.bf16.msra.mxu0 %v4715_v16  ;;  %3231 = vmatprep.mubr.f32.mxu0 %v3158_v13  ;;  %v3132_v16 = vld [vmem:[#allocation17 + $0x978] sm:$0xff]  ;;  %v4755_v13 = vpack.c.bf16 %v3131_v8, %v3129_v6  ;;  %v3449_v9 = vld [vmem:[#allocation23 + $0x8] sm:$0xff] }
 0x69e   : > { %4718 = vmatprep.subr.bf16.mxu0 %v4717_v18  ;;  %v4751_v18 = vpack.c.bf16 %v3127_v2, %v3125_v63  ;;  %v4753_v5 = vpack.c.bf16 %v3132_v16, %v3130_v45  ;;  %v3454_v63 = vld [vmem:[#allocation23 + $0x30] sm:$0xff]  ;;  %v3455_v2 = vld [vmem:[#allocation23 + $0x38] sm:$0xff]  ;;  %v3456_v16 = vld [vmem:[#allocation23 + $0x40] sm:$0xff] }
 0x69f   : > { %v4785_v45 = vpack.c.bf16 %v3455_v2, %v3454_v63  ;;  %v3458_v6 = vld [vmem:[#allocation23 + $0x50] sm:$0xff]  ;;  %v3459_v8 = vld [vmem:[#allocation23 + $0x58] sm:$0xff] }
 0x6a1   : > { %4720 = vmatpush1.bf16.msra.mxu0 %v4719_v44  ;;  %v4757_v44 = vpack.c.bf16 %v3136_v4, %v3134_v10  ;;  %v4793_v10 = vpack.c.bf16 %v3459_v8, %v3458_v6  ;;  %v3248_v4 = vld [vmem:[#allocation19] sm:$0x3] }
 0x6a2   : > { %4722 = vmatprep.subr.bf16.mxu0 %v4721_v20  ;;  %v3133_v20 = vld [vmem:[#allocation17 + $0x980] sm:$0xff] }
 0x6a3   : > { %v4759_v24 = vpack.c.bf16 %v3135_v21, %v3133_v20  ;;  %v3257_v20 = vrot.slane %v3248_v4, %v6280_v3  ;;  %v3460_v3 = vld [vmem:[#allocation23 + $0x60] sm:$0xff] }
 0x6a5   : > { %4724 = vmatpush1.bf16.msra.mxu0 %v4723_v25  ;;  %v4761_v25 = vpack.c.bf16 %v3140_v23, %v3138_v22 }
 0x6a6   : > { %4726 = vmatprep.subr.bf16.mxu0 %v4725_v19  ;;  %v3137_v19 = vld [vmem:[#allocation17 + $0x9a0] sm:$0xff] }
 0x6a7   : > { %v4763_v28 = vpack.c.bf16 %v3139_v62, %v3137_v19 }
 0x6a9   : > { %4728 = vmatpush1.bf16.msra.mxu0 %v4727_v0  ;;  %v4765_v0 = vpack.c.bf16 %v3144_v27, %v3142_v26 }
 0x6aa   : > { %4730 = vmatprep.subr.bf16.mxu0 %v4729_v29  ;;  %v3141_v29 = vld [vmem:[#allocation17 + $0x9c0] sm:$0xff] }
 0x6ab   : > { %v4767_v31 = vpack.c.bf16 %v3143_v30, %v3141_v29 }
 0x6ad   : > { %4732 = vmatpush1.bf16.msra.mxu0 %v4731_v35  ;;  %v4769_v35 = vpack.c.bf16 %v3148_v33, %v3146_v32  ;;  %v3977_v33 = vld [vmem:[#allocation22] ss:$0 sm:$0xff] }
 0x6ae   : > { %4734 = vmatprep.subr.bf16.mxu0 %v4733_v36  ;;  %v3145_v36 = vld [vmem:[#allocation17 + $0x9e0] sm:$0xff] }
 0x6af   : > { %v4771_v38 = vpack.c.bf16 %v3147_v34, %v3145_v36 }
 0x6b1   : > { %4736 = vmatpush1.bf16.msra.mxu0 %v4735_v41  ;;  %v3153_v41 = vrot.slane %v3080_v37, 4 }
 0x6b2   : > { %4738 = vmatprep.subr.bf16.mxu0 %v4737_v42  ;;  %v3154_v42 = vrot.slane %v6414_v11, 4  ;;  %v5200_v11 = vld [vmem:[#allocation20 + $0x70] sm:$0xff]  }
 0x6b3   : > { %4017 = vmatprep.subr.bf16.mxu1 %v5200_v11 }
 0x6b4   : > { %v3155_v43 = vsel %vm703_vm6, %v3153_v41, %v3154_v42  ;;  %4018 = vmatpush3.bf16.msra.mxu1 %v5201_v53  ;;  %v5226_v41 = vld [vmem:[%s6212_s1] sm:$0xff] }
 0x6b5   : > { %4740 = vmatpush1.bf16.msra.mxu0 %v4739_v17  ;;  %v3162_v17 = vsel %vm703_vm6, %v3157_v60, %v3161_v14  ;;  %4019 = vmatprep.subr.bf16.mxu1 %v5202_v54  ;;  %v3451_v60 = vld [vmem:[#allocation23 + $0x18] sm:$0xff] }
 0x6b6   : > { %4742 = vmatprep.subr.bf16.mxu0 %v4741_v47  ;;  %v3160_v47 = vsel %vm703_vm6, %v3154_v42, %v3159_v46  ;;  %v4777_v7 = vpack.c.bf16 %v3451_v60, %v3450_v48  ;;  %v5227_v14 = vld [vmem:[%s6212_s1 + $0x8] sm:$0xff]  ;;  %s5628_s1 = scalar_lea.vmem %s5627_s26, 512 }
 0x6b7   : > { %p5630_p9 = scmp.lt.s32.totalorder %s5628_s1, %s5622_s17 }
 0x6b9   : > { %4744 = vmatpush1.bf16.msra.mxu0 %v4743_v57  ;;  %v5203_v57 = vld [vmem:[#allocation20 + $0x38] sm:$0xff]   ;;  %p5631_p7 = por %p5630_p9, %p5629_p5 }
 0x6ba   : > { %4746 = vmatprep.subr.bf16.mxu0 %v4745_v58  ;;  %v3448_v58 = vld [vmem:[#allocation23] sm:$0xff]  ;;  %4020 = vmatpush3.bf16.msra.mxu1 %v5203_v57 }
 0x6bb   : > { %v4773_v15 = vpack.c.bf16 %v3449_v9, %v3448_v58  ;;  %p5632_p4 = pnand %p5631_p7, %p5625_p0 }
 0x6bd   : > { %4748 = vmatpush1.bf16.msra.mxu0 %v4747_v61  ;;  %v3453_v61 = vld [vmem:[#allocation23 + $0x28] sm:$0xff]  ;;  %4806 = vmatprep.subr.bf16.mxu1 %v4773_v15 }
 0x6be   : > { %4750 = vmatprep.subr.bf16.mxu0 %v4749_v51  ;;  %v4781_v51 = vpack.c.bf16 %v3453_v61, %v3452_v12  ;;  %v3995_v12 = vld [vmem:[#allocation26] ss:$0 sm:$0xff] }
 0x6c1   : > { %4752 = vmatpush1.bf16.msra.mxu0 %v4751_v18  ;;  %v3457_v18 = vld [vmem:[#allocation23 + $0x48] sm:$0xff] }
 0x6c2   : > { %4754 = vmatprep.subr.bf16.mxu0 %v4753_v5  ;;  %v4789_v5 = vpack.c.bf16 %v3457_v18, %v3456_v16 }
 0x6c5   : > { %4756 = vmatpush1.bf16.msra.mxu0 %v4755_v13  ;;  %v3253_v13 = vrot.slane %v3248_v4, %v6278_v1 }
 0x6c6   : > { %4758 = vmatprep.subr.bf16.mxu0 %v4757_v44 }
 0x6c9   : > { %4760 = vmatpush1.bf16.msra.mxu0 %v4759_v24 }
 0x6ca   : > { %4762 = vmatprep.subr.bf16.mxu0 %v4761_v25 }
 0x6cd   : > { %4764 = vmatpush1.bf16.msra.mxu0 %v4763_v28 }
 0x6ce   : > { %4766 = vmatprep.subr.bf16.mxu0 %v4765_v0 }
 0x6d1   : > { %4768 = vmatpush1.bf16.msra.mxu0 %v4767_v31 }
 0x6d2   : > { %4770 = vmatprep.subr.bf16.mxu0 %v4769_v35 }
 0x6d5   : > { %4772 = vmatpush1.bf16.msra.mxu0 %v4771_v38 }
 0x6d6   : > { %4774 = vmatprep.subr.bf16.mxu0 %v4773_v15 }
 0x6d8   : > { %3232 = vmatmul.mubr.f32.vlgmr.msra.gmra.mrb[4].mxu0 %v3155_v43 }
 0x6d9   : > { %3237 = vmatprep.mubr.f32.mxu0 %v3162_v17  ;;  %4776 = vmatpush3.bf16.msra.mxu0 %v4773_v15 }
 0x6da   : > { %4778 = vmatprep.subr.bf16.mxu0 %v4777_v7 }
 0x6dc   : > { %3238 = vmatmul.mubr.f32.gmra.mrb[6].mxu0 %v3160_v47 }
 0x6dd   : > { %4780 = vmatpush3.bf16.msra.mxu0 %v4777_v7 }
 0x6de   : > { %4782 = vmatprep.subr.bf16.mxu0 %v4781_v51 }
 0x6e1   : > { %4784 = vmatpush3.bf16.msra.mxu0 %v4781_v51 }
 0x6e2   : > { %4786 = vmatprep.subr.bf16.mxu0 %v4785_v45 }
 0x6e5   : > { %4788 = vmatpush3.bf16.msra.mxu0 %v4785_v45 }
 0x6e6   : > { %4790 = vmatprep.subr.bf16.mxu0 %v4789_v5 }
 0x6e9   : > { %4792 = vmatpush3.bf16.msra.mxu0 %v4789_v5 }
 0x6ea   : > { %4794 = vmatprep.subr.bf16.mxu0 %v4793_v10 }
 0x6ed   : > { %4796 = vmatpush3.bf16.msra.mxu0 %v4793_v10 }
 0x7ab   : > { %v3233_v44 = vpop.f32.mrb[4].mxu0 }
 0x7ac   : > { %v3235_v21 = vpop.f32.mrb[5].mxu0  ;;  %v3260_v22 = vadd.f32 %v3253_v13, %v3233_v44 }
 0x7ad   : > { %v3261_v23 = vadd.f32 %v3257_v20, %v3235_v21 }
 0x7ae   : > { %v3264_v26 = vmul.f32 %v3260_v22, %v6322_v59  ;;  %v3463_v59 = vld [vmem:[#allocation23 + $0x78] sm:$0xff] }
 0x7af   : > { %v3239_v24 = vpop.f32.mrb[6].mxu0  ;;  %v3265_v28 = vmul.f32 %v3261_v23, %v6318_v55 }
 0x7b0   : > { %v3262_v25 = vadd.f32 %v3253_v13, %v3239_v24  ;;  %v3241_v19 = vpop.f32.mrb[7].mxu0 }
 0x7b1   : > { %v3263_v62 = vadd.f32 %v3257_v20, %v3241_v19 }
 0x7b2   : > { %v3266_v27 = vmul.f32 %v3262_v25, %v6316_v52  ;;  %v3461_v52 = vld [vmem:[#allocation23 + $0x68] sm:$0xff] }
 0x7b3   : > { %v3267_v0 = vmul.f32 %v3263_v62, %v6320_v56  ;;  %v4797_v55 = vpack.c.bf16 %v3461_v52, %v3460_v3  ;;  %v3462_v56 = vld [vmem:[#allocation23 + $0x70] sm:$0xff] }
 0x7b4   : > { %v3268_v29 = vpack.c.bf16 %v3266_v27, %v3264_v26  ;;  %v4801_v30 = vpack.c.bf16 %v3463_v59, %v3462_v56 }
 0x7b5   : > { %v3269_v1 = vpack.c.bf16 %v3267_v0, %v3265_v28  ;;  %4798 = vmatprep.subr.bf16.mxu0 %v4797_v55 }
 0x7b6   : > { %4800 = vmatpush3.bf16.msra.mxu0 %v4797_v55 }
 0x7b7   : > { %3437 = vmatprep.mubr.bf16.mxu1 %v3269_v1  ;;  %4802 = vmatprep.subr.bf16.mxu0 %v4801_v30 }
 0x7b8   : > { %3438 = vmatmul.mubr.bf16.vlgmr.msra.gmra.mrb[8].mxu1 %v3268_v29 }
 0x7b9   : > { %4808 = vmatpush3.bf16.msra.mxu1 %v4773_v15  ;;  %v3994_v15 = vld [vmem:[#allocation25] ss:$0 sm:$0xff] }
 0x7ba   : > { %4810 = vmatprep.subr.bf16.mxu1 %v4777_v7  ;;  %4804 = vmatpush3.bf16.msra.mxu0 %v4801_v30 }
 0x7bd   : > { %4812 = vmatpush3.bf16.msra.mxu1 %v4777_v7 }
 0x7be   : > { %4814 = vmatprep.subr.bf16.mxu1 %v4781_v51 }
 0x7c1   : > { %4816 = vmatpush3.bf16.msra.mxu1 %v4781_v51 }
 0x7c2   : > { %4818 = vmatprep.subr.bf16.mxu1 %v4785_v45 }
 0x7c5   : > { %4820 = vmatpush3.bf16.msra.mxu1 %v4785_v45 }
 0x7c6   : > { %4822 = vmatprep.subr.bf16.mxu1 %v4789_v5 }
 0x7c9   : > { %4824 = vmatpush3.bf16.msra.mxu1 %v4789_v5 }
 0x7ca   : > { %4826 = vmatprep.subr.bf16.mxu1 %v4793_v10 }
 0x7cd   : > { %4828 = vmatpush3.bf16.msra.mxu1 %v4793_v10 }
 0x7ce   : > { %4830 = vmatprep.subr.bf16.mxu1 %v4797_v55 }
 0x7d1   : > { %4832 = vmatpush3.bf16.msra.mxu1 %v4797_v55 }
 0x7d2   : > { %4834 = vmatprep.subr.bf16.mxu1 %v4801_v30 }
 0x7d5   : > { %4836 = vmatpush3.bf16.msra.mxu1 %v4801_v30 }
 0x88b   : > { %v4021_v32 = vpop.f32.mrb[8].mxu1 }
 0x88c   : > { %v4022_v31 = vpop.f32.mrb[9].mxu1 }
 0x88d   : > { %v4023_v35 = vadd.f32 %v4022_v31, %v4021_v32  ;;  %v4024_v36 = vpop.f32.mrb[10].mxu1 }
 0x88e   : > { %v4025_v34 = vpop.f32.mrb[11].mxu1 }
 0x88f   : > { %v3440_v37 = vadd.f32 %v4023_v35, %v3977_v33  ;;  %v4026_v38 = vadd.f32 %v4025_v34, %v4024_v36 }
 0x891   : > { %v3443_v39 = vadd.f32 %v4026_v38, %v3977_v33  ;;  %v3446_v42 = vadd.f32 %v5226_v41, %v3440_v37 }
 0x893   : > { %v3447_v40 = vadd.f32 %v5227_v14, %v3443_v39  ;;  %4095 = vmatprep.mubr.f32.mxu0 %v3446_v42 }
 0x895   : > { %4096 = vmatmul.mubr.f32.vlgmr.msra.gmra.mrb[8].mxu0 %v3447_v40 }
 0x968   : > { %v4097_v43 = vpop.f32.mrb[8].mxu0 }
 0x969   : > { %v3540_v46 = vsub.f32 %v3447_v40, %v4097_v43  ;;  %v3530_v17 = vpop.f32.mrb[9].mxu0 }
 0x96a   : > { %v3539_v47 = vsub.f32 %v3446_v42, %v3530_v17 }
 0x96b   : > { %v3542_v50 = vmul.f32 %v3540_v46, %v3540_v46 }
 0x96c   : > { %v3541_v49 = vmul.f32 %v3539_v47, %v3539_v47 }
 0x96e   : > { %4130 = vmatprep.mubr.f32.mxu1 %v3541_v49 }
 0x96f   : > { %4131 = vmatmul.mubr.f32.vlgmr.msra.gmra.mrb[12].mxu1 %v3542_v50 }
 0xa42   : > { %v4132_v11 = vpop.f32.mrb[12].mxu1 }
 0xa43   : > { %v3619_v53 = vmax.f32 %v4132_v11, 0.0  ;;  %v3609_v54 = vpop.f32.mrb[13].mxu1 }
 0xa44   : > { %v3618_v57 = vmax.f32 %v3609_v54, 0.0 }
 0xa45   : > { %v3621_v58 = vadd.f32 1e-05, %v3619_v53 }
 0xa46   : > { %v3620_v9 = vadd.f32 1e-05, %v3618_v57 }
 0xa47   : > { %5220 = vrsqrt.f32 %v3621_v58 }
 0xa48   : > { %5222 = vrsqrt.f32 %v3620_v9 }
 0xa51   : > { %v5221_v48 = vpop.eup %5220 }
 0xa52   : > { %v5223_v60 = vpop.eup %5222  ;;  %v3625_v7 = vmul.f32 %v5221_v48, %v3540_v46 }
 0xa53   : > { %v3624_v61 = vmul.f32 %v5223_v60, %v3539_v47 }
 0xa54   : > { %v3634_v51 = vmul.f32 %v3994_v15, %v3625_v7 }
 0xa55   : > { %v3633_v63 = vmul.f32 %v3994_v15, %v3624_v61 }
 0xa56   : > { %v3643_v2 = vadd.f32 %v3995_v12, %v3634_v51 }
 0xa57   : > { %v3642_v45 = vadd.f32 %v3995_v12, %v3633_v63 }
 0xa58   : > { %3645 = vst [vmem:[%s660_s29 + $0x8] sm:$0xff] %v3643_v2 }
 0xa59   : > { %3644 = vst [vmem:[%s660_s29] sm:$0xff] %v3642_v45 }
 0xa5a   : > { %5635 = shalt.err (!%p5632_p4)
}
 0xa5b   : > { %s5636_s18 = scalar_lea.hbm %s6446_s28, 256  ;;  %s5640_s22 = scalar_lea.hbm %s6571_s24, 512 }
 0xa5c   : > { %p5637_p12 = scmp.ne.s32.totalorder %s6446_s28, %s5636_s18  ;;  %p5641_p3 = scmp.lt.u32.totalorder %s6446_s28, %s6571_s24 }
 0xa5d   : > { %p5642_p2 = scmp.lt.u32.totalorder %s5640_s22, %s5636_s18  ;;  %p5644_p6 = scmp.lt.u32.totalorder %s5636_s18, %s6446_s28 }
 0xa5e   : > { %p5638_p13 = pnand %p5637_p12, %p6572_p10 }
 0xa5f   : > { %p5643_p8 = por %p5642_p2, %p5641_p3 }
 0xa60   : > { %p5639_p1 = pneg %p5638_p13 }
 0xa61   : > { %p5645_p11 = por %p5644_p6, %p5643_p8 }
 0xa63   : > { %p5646_p0 = pnand %p5645_p11, %p5639_p1 }
 0xa65   : > { %5649 = shalt.err (!%p5646_p0)
}
 0xa66   : > { %s5742_s17 = smov 128   ;;  %s5743_s26 = smov 8  }
 0xa67   : > { %4931 = dma.vmem_to_hbm [thread:$0]  (%p6572_p10), %s6448_s21, 256, %s6446_s28, %s3647_s2, %s5742_s17, %s5742_s17, %s5743_s26  }
 0xa68 PF: > { %s6573_s1 = sld [smem:[#allocation38_spill]]  ;;  %p6574_p5 = scmp.ne.s32.totalorder %s6544_s19, 0 }
 0xa69   : > { %p6575_p9 = scmp.ge.s32.totalorder %s5716_s16, 2 }
 0xa6b   : > { %p4978_p7 = pnand %p6575_p9, %p6574_p5 }
 0xa6e   : > { %s3675_s0 = sand.u32 1, %s6573_s1  }
 0xa6f   : > { %s3676_s18 = scalar_lea.sflag [#allocation7], %s3675_s0 }
 0xa70   : > { %5699 = dma.done.wait (!%p4978_p7), %s3676_s18, 256  }
 0xa71   : > { %5701 = vsyncadd (!%p4978_p7), %s3676_s18, 4294967040  ;;  %s6576_s29 = sld [smem:[#allocation39_spill]]  ;;  %p34_p4 = scmp.ge.s32.totalorder %s6130_s23, 4  }
 0xa72   : > { %s6577_s30 = smov %s5712_s15  ;;  %s6578_s15 = smov %s6142_s3 }
 0xa73   : > { %s6579_s16 = smov %s6130_s23  ;;  %36 = sbr.rel (!%p34_p4) target bundleno = 18 (0x12), region = 183 }
 0xa7a   :  { %3681 = vsyncpa [#allocation6], 1 }
 0xa7b   :  { %3683 = vsyncpa [#allocation6 + $0x1], 1 }
 0xa7c   :  { %3684 = vsyncpa [#allocation9], 1 }
 0xa7d   :  { %3685 = vsyncpa [#allocation12], 1 }
 0xa7e   :  { %3686 = vsyncpa [#allocation15], 1 }
 0xa7f   :  { %3687 = vsyncpa [#allocation18], 1 }
 0xa80   :  { %3688 = vsyncpa [#allocation21], 1 }
 0xa81   :  { %3689 = vsyncpa [#allocation24], 1 }
 0xa82   :  { %3690 = vsyncpa [#allocation27], 1 }
 0xa83   :  { %3691 = vsyncpa [#allocation7], 1 }
 0xa84   :  { %3693 = vsyncpa [#allocation7 + $0x1], 1 }

</bundles_post_ra>
